<compile_context>
chip_gen: v5e
topology: v5e:2x2
jax: 0.10.0
libtpu: 0.0.40
codegen_flags: <defaults>
</compile_context>

<pallas_src>
import jax
import jax.numpy as jnp
import numpy as np
from jax import lax
from jax.experimental import pallas as pl
from jax.experimental.pallas import tpu as pltpu


# ----------------------------------------------------------------------------
# Fused Pallas kernel
# ----------------------------------------------------------------------------
def _maxpool_compact(z, row_stride, sel):
    """2x2 / stride-2 max pool of z: (C, cols), columns ordered (img, y, x).

    The 3 non-top-left taps come from XLU lane-rolls (shift-left by 1, W, W+1);
    `sel` is a precomputed one-hot matrix picking the top-left column of every
    pooling window (wrapped / cross-image columns are never selected)."""
    cols = z.shape[1]
    m = z
    for off in (1, row_stride, row_stride + 1):
        m = jnp.maximum(m, pltpu.roll(z, shift=cols - off, axis=1))
    return jnp.dot(m, sel, preferred_element_type=jnp.float32)


def _lenet_kernel(p1t_ref, w1_ref, b1_ref, selp1_ref,
                  w2_ref, b2_ref, selc2_ref, selp2_ref,
                  wexp_ref, fc1b_ref, selimg_ref,
                  fc2w_ref, fc2b_ref, fc3w_ref, fc3b_ref,
                  out_ref, stacked_ref):
    f32 = jnp.float32

    # ---- conv1 (5x5, 1->6, Cout padded to 8) + bias + ReLU -> (8, n*24*24) ----------
    a1 = jnp.maximum(
        jnp.dot(w1_ref[...], p1t_ref[...], preferred_element_type=f32) + b1_ref[...], 0.0)

    # ---- maxpool 2x2 -> (8, P1); P1 = n*144 real columns + zero pad to 128 multiple --
    p1 = _maxpool_compact(a1, 24, selp1_ref[...])

    # ---- conv2 (5x5, 6->12, Cout padded to 16) ---------------------------------------
    # im2col: 25 lane-rolled copies of p1 stacked into an 8-row-aligned VMEM scratch,
    # then ONE (16,200)@(200,P1) GEMM and ONE column compaction down to (16, n*64).
    P1 = p1.shape[1]
    for t in range(25):
        i, j = divmod(t, 5)
        off = i * 12 + j                       # tap offset in the 12x12 pooled map
        r = p1 if off == 0 else pltpu.roll(p1, shift=P1 - off, axis=1)
        stacked_ref[t * 8:(t + 1) * 8, :] = r  # rows 6,7 of p1 are exact zeros
    z2f = jnp.dot(w2_ref[...], stacked_ref[...], preferred_element_type=f32)   # (16, P1)
    z2 = jnp.dot(z2f, selc2_ref[...], preferred_element_type=f32)              # (16, n*64)
    a2 = jnp.maximum(z2 + b2_ref[...], 0.0)

    # ---- maxpool 2x2 -> (16, n*16) ----------------------------------------------------
    p2 = _maxpool_compact(a2, 8, selp2_ref[...])

    # ---- fc1 (192->120): NCHW flatten folded into 12 channel-wise FMAs + one image
    # compaction matmul (no 16 tiny K=12 matmuls, no scratch reshapes) ------------------
    t_acc = wexp_ref[0] * p2[0:1, :]
    for c in range(1, 12):
        t_acc = t_acc + wexp_ref[c] * p2[c:c + 1, :]
    h1 = jnp.maximum(
        jnp.dot(t_acc, selimg_ref[...], preferred_element_type=f32) + fc1b_ref[...], 0.0)

    # ---- fc2 (120->60) + ReLU, fc3 (60->10) -------------------------------------------
    h2 = jnp.maximum(
        jnp.dot(fc2w_ref[...], h1, preferred_element_type=f32) + fc2b_ref[...], 0.0)
    z3 = jnp.dot(fc3w_ref[...], h2, preferred_element_type=f32) + fc3b_ref[...]
    out_ref[...] = z3.astype(out_ref.dtype)


# ----------------------------------------------------------------------------
# Precomputed one-hot compaction matrices (compile-time numpy constants)
# ----------------------------------------------------------------------------
def _one_hot_cols(in_cols, src, out_cols):
    m = np.zeros((in_cols, out_cols), np.float32)
    m[src, np.arange(len(src))] = 1.0
    return m


def _pool_sel(n, h, w, out_cols_padded):
    ho, wo = h // 2, w // 2
    o = np.arange(n * ho * wo)
    img, rem = o // (ho * wo), o % (ho * wo)
    y, x = rem // wo, rem % wo
    src = img * (h * w) + (2 * y) * w + 2 * x          # top-left tap of each window
    return _one_hot_cols(n * h * w, src, out_cols_padded)


def _conv2_sel(n, in_cols_padded):
    q = np.arange(n * 64)
    img, rem = q // 64, q % 64
    y, x = rem // 8, rem % 8
    src = img * 144 + y * 12 + x                       # base column of each conv2 output
    return _one_hot_cols(in_cols_padded, src, n * 64)


def _img_sel(n):
    j = np.arange(n * 16)
    m = np.zeros((n * 16, n), np.float32)
    m[j, j // 16] = 1.0
    return m


def _vspec(shape):
    return pl.BlockSpec(shape, lambda: (0,) * len(shape))


# ----------------------------------------------------------------------------
# Wrapper: one pallas_call for the whole network
# ----------------------------------------------------------------------------
@jax.jit
def network_forward(params, x):
    n = x.shape[0]
    p1_cols = ((n * 144 + 127) // 128) * 128           # pooled-map columns, 128-padded

    # conv1 im2col stays in the XLA wrapper: 25 tiny slices of the raw 28x28 input.
    xs = x.reshape(n, 28, 28)
    taps = [xs[:, i:i + 24, j:j + 24] for i in range(5) for j in range(5)]
    p1t = jnp.stack(taps, axis=0).reshape(25, n * 576)          # rows (kh, kw)

    # Parameters, pre-transposed / pre-padded once.
    w1 = jnp.pad(params["conv1_w"].reshape(6, 25), ((0, 2), (0, 0)))     # (8, 25)
    b1 = jnp.pad(params["conv1_b"].reshape(6, 1), ((0, 2), (0, 0)))      # (8, 1)
    w2 = jnp.transpose(params["conv2_w"], (2, 3, 0, 1)).reshape(25, 12, 6)
    w2 = jnp.pad(w2, ((0, 0), (0, 4), (0, 2)))                           # (25, 16, 8)
    w2 = jnp.transpose(w2, (1, 0, 2)).reshape(16, 200)                   # [o, t*8 + cin]
    b2 = jnp.pad(params["conv2_b"].reshape(12, 1), ((0, 4), (0, 0)))     # (16, 1)
    wexp = jnp.transpose(params["fc1_w"].reshape(120, 12, 16), (1, 0, 2))
    wexp = jnp.tile(wexp, (1, 1, n))                                     # (12, 120, n*16)
    fc1b = params["fc1_b"].reshape(120, 1)
    fc2w, fc2b = params["fc2_w"], params["fc2_b"].reshape(60, 1)
    fc3w, fc3b = params["fc3_w"], params["fc3_b"].reshape(10, 1)

    # One-hot compaction constants (~2 MB total at n=2).
    selp1 = jnp.asarray(_pool_sel(n, 24, 24, p1_cols))   # (n*576, P1)
    selc2 = jnp.asarray(_conv2_sel(n, p1_cols))          # (P1, n*64)
    selp2 = jnp.asarray(_pool_sel(n, 8, 8, n * 16))      # (n*64, n*16)
    selimg = jnp.asarray(_img_sel(n))                    # (n*16, n)

    ins = (p1t, w1, b1, selp1, w2, b2, selc2, selp2, wexp, fc1b, selimg,
           fc2w, fc2b, fc3w, fc3b)
    out_t = pl.pallas_call(
        _lenet_kernel,
        out_shape=jax.ShapeDtypeStruct((10, n), jnp.float32),
        in_specs=[_vspec(a.shape) for a in ins],
        out_specs=_vspec((10, n)),
        scratch_shapes=[pltpu.VMEM((200, p1_cols), jnp.float32)],
        compiler_params=pltpu.CompilerParams(vmem_limit_bytes=32 * 1024 * 1024),
    )(*ins)
    return jnp.transpose(out_t)                          # (n, 10)


# ----------------------------------------------------------------------------
# Parameter init (PyTorch-style uniform) and pure-JAX reference for the check
# ----------------------------------------------------------------------------
def init_params(key):
    ks = jax.random.split(key, 10)

    def u(k, shape, fan_in):
        bound = 1.0 / np.sqrt(fan_in)
        return jax.random.uniform(k, shape, jnp.float32, -bound, bound)

    return {
        "conv1_w": u(ks[0], (6, 1, 5, 5), 1 * 5 * 5),
        "conv1_b": u(ks[1], (6,), 1 * 5 * 5),
        "conv2_w": u(ks[2], (12, 6, 5, 5), 6 * 5 * 5),
        "conv2_b": u(ks[3], (12,), 6 * 5 * 5),
        "fc1_w": u(ks[4], (120, 192), 192),
        "fc1_b": u(ks[5], (120,), 192),
        "fc2_w": u(ks[6], (60, 120), 120),
        "fc2_b": u(ks[7], (60,), 120),
        "fc3_w": u(ks[8], (10, 60), 60),
        "fc3_b": u(ks[9], (10,), 60),
    }


def reference_forward(params, t):
    def conv(x, w, b):
        y = lax.conv_general_dilated(x, w, (1, 1), "VALID",
                                     dimension_numbers=("NCHW", "OIHW", "NCHW"))
        return jax.nn.relu(y + b[None, :, None, None])

    def pool(x):
        return lax.reduce_window(x, -jnp.inf, lax.max,
                                 (1, 1, 2, 2), (1, 1, 2, 2), "VALID")

    t = pool(conv(t, params["conv1_w"], params["conv1_b"]))
    t = pool(conv(t, params["conv2_w"], params["conv2_b"]))
    t = t.reshape(-1, 192)
    t = jax.nn.relu(t @ params["fc1_w"].T + params["fc1_b"])
    t = jax.nn.relu(t @ params["fc2_w"].T + params["fc2_b"])
    return t @ params["fc3_w"].T + params["fc3_b"]


if __name__ == "__main__":
    key = jax.random.PRNGKey(0)
    kp, kx = jax.random.split(key)
    params = init_params(kp)
    # Input shape implied by fc1 (12*4*4): 28x28 single-channel images; batch=2.
    x = jax.random.normal(kx, (2, 1, 28, 28), jnp.float32)

    out = jax.block_until_ready(network_forward(params, x))
    ref = jax.block_until_ready(reference_forward(params, x))

    assert out.shape == (2, 10), out.shape
    np.testing.assert_allclose(np.asarray(out), np.asarray(ref), rtol=1e-4, atol=1e-4)
    print("KERNEL_OK")
</pallas_src>

<mosaic_0001>
module attributes {stable_mosaic.version = 11 : i64} {
  func.func @_lenet_kernel(%arg0: memref<25x1152xf32, #tpu.memory_space<vmem>>, %arg1: memref<8x25xf32, #tpu.memory_space<vmem>>, %arg2: memref<8x1xf32, #tpu.memory_space<vmem>>, %arg3: memref<1152x384xf32, #tpu.memory_space<vmem>>, %arg4: memref<16x200xf32, #tpu.memory_space<vmem>>, %arg5: memref<16x1xf32, #tpu.memory_space<vmem>>, %arg6: memref<384x128xf32, #tpu.memory_space<vmem>>, %arg7: memref<128x32xf32, #tpu.memory_space<vmem>>, %arg8: memref<12x120x32xf32, #tpu.memory_space<vmem>>, %arg9: memref<120x1xf32, #tpu.memory_space<vmem>>, %arg10: memref<32x2xf32, #tpu.memory_space<vmem>>, %arg11: memref<60x120xf32, #tpu.memory_space<vmem>>, %arg12: memref<60x1xf32, #tpu.memory_space<vmem>>, %arg13: memref<10x60xf32, #tpu.memory_space<vmem>>, %arg14: memref<10x1xf32, #tpu.memory_space<vmem>>, %arg15: memref<10x2xf32, #tpu.memory_space<vmem>>, %arg16: memref<200x384xf32, #tpu.memory_space<vmem>>) attributes {dimension_semantics = [], scalar_prefetch = 0 : i64, scratch_operands = 1 : i64, tpu.core_type = #tpu.core_type<tc>} {
    %c0 = arith.constant 0 : index
    %c0_0 = arith.constant 0 : index
    %0 = vector.load %arg1[%c0, %c0_0] : memref<8x25xf32, #tpu.memory_space<vmem>>, vector<8x25xf32>
    %c0_1 = arith.constant 0 : index
    %c0_2 = arith.constant 0 : index
    %1 = vector.load %arg0[%c0_1, %c0_2] : memref<25x1152xf32, #tpu.memory_space<vmem>>, vector<25x1152xf32>
    %cst = arith.constant dense<0.000000e+00> : vector<8x1152xf32>
    %2 = tpu.matmul %0, %1, %cst {dimension_numbers = #tpu.dot_dimension_numbers<[1], [0], [0], [1], [0, 0, 1, 1], [], []>} : vector<8x25xf32>, vector<25x1152xf32>, vector<8x1152xf32> -> vector<8x1152xf32>
    %c0_3 = arith.constant 0 : index
    %c0_4 = arith.constant 0 : index
    %3 = vector.load %arg2[%c0_3, %c0_4] : memref<8x1xf32, #tpu.memory_space<vmem>>, vector<8x1xf32>
    %4 = vector.broadcast %3 : vector<8x1xf32> to vector<8x1152xf32>
    %5 = arith.addf %2, %4 : vector<8x1152xf32>
    %cst_5 = arith.constant 0.000000e+00 : f32
    %6 = vector.broadcast %cst_5 : f32 to vector<8x1152xf32>
    %7 = arith.maximumf %5, %6 : vector<8x1152xf32>
    %c0_6 = arith.constant 0 : index
    %c0_7 = arith.constant 0 : index
    %8 = vector.load %arg3[%c0_6, %c0_7] : memref<1152x384xf32, #tpu.memory_space<vmem>>, vector<1152x384xf32>
    %c1151_i32 = arith.constant 1151 : i32
    %9 = tpu.dynamic_rotate %7 by %c1151_i32 dim 1 : vector<8x1152xf32>, i32 -> vector<8x1152xf32>
    %10 = arith.maximumf %7, %9 : vector<8x1152xf32>
    %c1128_i32 = arith.constant 1128 : i32
    %11 = tpu.dynamic_rotate %7 by %c1128_i32 dim 1 : vector<8x1152xf32>, i32 -> vector<8x1152xf32>
    %12 = arith.maximumf %10, %11 : vector<8x1152xf32>
    %c1127_i32 = arith.constant 1127 : i32
    %13 = tpu.dynamic_rotate %7 by %c1127_i32 dim 1 : vector<8x1152xf32>, i32 -> vector<8x1152xf32>
    %14 = arith.maximumf %12, %13 : vector<8x1152xf32>
    %cst_8 = arith.constant dense<0.000000e+00> : vector<8x384xf32>
    %15 = tpu.matmul %14, %8, %cst_8 {dimension_numbers = #tpu.dot_dimension_numbers<[1], [0], [0], [1], [0, 0, 1, 1], [], []>} : vector<8x1152xf32>, vector<1152x384xf32>, vector<8x384xf32> -> vector<8x384xf32>
    %c0_9 = arith.constant 0 : index
    %c0_10 = arith.constant 0 : index
    %16 = vector.load %arg16[%c0_9, %c0_10] : memref<200x384xf32, #tpu.memory_space<vmem>>, vector<8x384xf32>
    tpu.vector_store %arg16[%c0_9, %c0_10], %15 {strides = array<i32>} : memref<200x384xf32, #tpu.memory_space<vmem>>, vector<8x384xf32>,
    %c383_i32 = arith.constant 383 : i32
    %17 = tpu.dynamic_rotate %15 by %c383_i32 dim 1 : vector<8x384xf32>, i32 -> vector<8x384xf32>
    %c8 = arith.constant 8 : index
    %c0_11 = arith.constant 0 : index
    %18 = vector.load %arg16[%c8, %c0_11] : memref<200x384xf32, #tpu.memory_space<vmem>>, vector<8x384xf32>
    tpu.vector_store %arg16[%c8, %c0_11], %17 {strides = array<i32>} : memref<200x384xf32, #tpu.memory_space<vmem>>, vector<8x384xf32>,
    %c382_i32 = arith.constant 382 : i32
    %19 = tpu.dynamic_rotate %15 by %c382_i32 dim 1 : vector<8x384xf32>, i32 -> vector<8x384xf32>
    %c16 = arith.constant 16 : index
    %c0_12 = arith.constant 0 : index
    %20 = vector.load %arg16[%c16, %c0_12] : memref<200x384xf32, #tpu.memory_space<vmem>>, vector<8x384xf32>
    tpu.vector_store %arg16[%c16, %c0_12], %19 {strides = array<i32>} : memref<200x384xf32, #tpu.memory_space<vmem>>, vector<8x384xf32>,
    %c381_i32 = arith.constant 381 : i32
    %21 = tpu.dynamic_rotate %15 by %c381_i32 dim 1 : vector<8x384xf32>, i32 -> vector<8x384xf32>
    %c24 = arith.constant 24 : index
    %c0_13 = arith.constant 0 : index
    %22 = vector.load %arg16[%c24, %c0_13] : memref<200x384xf32, #tpu.memory_space<vmem>>, vector<8x384xf32>
    tpu.vector_store %arg16[%c24, %c0_13], %21 {strides = array<i32>} : memref<200x384xf32, #tpu.memory_space<vmem>>, vector<8x384xf32>,
    %c380_i32 = arith.constant 380 : i32
    %23 = tpu.dynamic_rotate %15 by %c380_i32 dim 1 : vector<8x384xf32>, i32 -> vector<8x384xf32>
    %c32 = arith.constant 32 : index
    %c0_14 = arith.constant 0 : index
    %24 = vector.load %arg16[%c32, %c0_14] : memref<200x384xf32, #tpu.memory_space<vmem>>, vector<8x384xf32>
    tpu.vector_store %arg16[%c32, %c0_14], %23 {strides = array<i32>} : memref<200x384xf32, #tpu.memory_space<vmem>>, vector<8x384xf32>,
    %c372_i32 = arith.constant 372 : i32
    %25 = tpu.dynamic_rotate %15 by %c372_i32 dim 1 : vector<8x384xf32>, i32 -> vector<8x384xf32>
    %c40 = arith.constant 40 : index
    %c0_15 = arith.constant 0 : index
    %26 = vector.load %arg16[%c40, %c0_15] : memref<200x384xf32, #tpu.memory_space<vmem>>, vector<8x384xf32>
    tpu.vector_store %arg16[%c40, %c0_15], %25 {strides = array<i32>} : memref<200x384xf32, #tpu.memory_space<vmem>>, vector<8x384xf32>,
    %c371_i32 = arith.constant 371 : i32
    %27 = tpu.dynamic_rotate %15 by %c371_i32 dim 1 : vector<8x384xf32>, i32 -> vector<8x384xf32>
    %c48 = arith.constant 48 : index
    %c0_16 = arith.constant 0 : index
    %28 = vector.load %arg16[%c48, %c0_16] : memref<200x384xf32, #tpu.memory_space<vmem>>, vector<8x384xf32>
    tpu.vector_store %arg16[%c48, %c0_16], %27 {strides = array<i32>} : memref<200x384xf32, #tpu.memory_space<vmem>>, vector<8x384xf32>,
    %c370_i32 = arith.constant 370 : i32
    %29 = tpu.dynamic_rotate %15 by %c370_i32 dim 1 : vector<8x384xf32>, i32 -> vector<8x384xf32>
    %c56 = arith.constant 56 : index
    %c0_17 = arith.constant 0 : index
    %30 = vector.load %arg16[%c56, %c0_17] : memref<200x384xf32, #tpu.memory_space<vmem>>, vector<8x384xf32>
    tpu.vector_store %arg16[%c56, %c0_17], %29 {strides = array<i32>} : memref<200x384xf32, #tpu.memory_space<vmem>>, vector<8x384xf32>,
    %c369_i32 = arith.constant 369 : i32
    %31 = tpu.dynamic_rotate %15 by %c369_i32 dim 1 : vector<8x384xf32>, i32 -> vector<8x384xf32>
    %c64 = arith.constant 64 : index
    %c0_18 = arith.constant 0 : index
    %32 = vector.load %arg16[%c64, %c0_18] : memref<200x384xf32, #tpu.memory_space<vmem>>, vector<8x384xf32>
    tpu.vector_store %arg16[%c64, %c0_18], %31 {strides = array<i32>} : memref<200x384xf32, #tpu.memory_space<vmem>>, vector<8x384xf32>,
    %c368_i32 = arith.constant 368 : i32
    %33 = tpu.dynamic_rotate %15 by %c368_i32 dim 1 : vector<8x384xf32>, i32 -> vector<8x384xf32>
    %c72 = arith.constant 72 : index
    %c0_19 = arith.constant 0 : index
    %34 = vector.load %arg16[%c72, %c0_19] : memref<200x384xf32, #tpu.memory_space<vmem>>, vector<8x384xf32>
    tpu.vector_store %arg16[%c72, %c0_19], %33 {strides = array<i32>} : memref<200x384xf32, #tpu.memory_space<vmem>>, vector<8x384xf32>,
    %c360_i32 = arith.constant 360 : i32
    %35 = tpu.dynamic_rotate %15 by %c360_i32 dim 1 : vector<8x384xf32>, i32 -> vector<8x384xf32>
    %c80 = arith.constant 80 : index
    %c0_20 = arith.constant 0 : index
    %36 = vector.load %arg16[%c80, %c0_20] : memref<200x384xf32, #tpu.memory_space<vmem>>, vector<8x384xf32>
    tpu.vector_store %arg16[%c80, %c0_20], %35 {strides = array<i32>} : memref<200x384xf32, #tpu.memory_space<vmem>>, vector<8x384xf32>,
    %c359_i32 = arith.constant 359 : i32
    %37 = tpu.dynamic_rotate %15 by %c359_i32 dim 1 : vector<8x384xf32>, i32 -> vector<8x384xf32>
    %c88 = arith.constant 88 : index
    %c0_21 = arith.constant 0 : index
    %38 = vector.load %arg16[%c88, %c0_21] : memref<200x384xf32, #tpu.memory_space<vmem>>, vector<8x384xf32>
    tpu.vector_store %arg16[%c88, %c0_21], %37 {strides = array<i32>} : memref<200x384xf32, #tpu.memory_space<vmem>>, vector<8x384xf32>,
    %c358_i32 = arith.constant 358 : i32
    %39 = tpu.dynamic_rotate %15 by %c358_i32 dim 1 : vector<8x384xf32>, i32 -> vector<8x384xf32>
    %c96 = arith.constant 96 : index
    %c0_22 = arith.constant 0 : index
    %40 = vector.load %arg16[%c96, %c0_22] : memref<200x384xf32, #tpu.memory_space<vmem>>, vector<8x384xf32>
    tpu.vector_store %arg16[%c96, %c0_22], %39 {strides = array<i32>} : memref<200x384xf32, #tpu.memory_space<vmem>>, vector<8x384xf32>,
    %c357_i32 = arith.constant 357 : i32
    %41 = tpu.dynamic_rotate %15 by %c357_i32 dim 1 : vector<8x384xf32>, i32 -> vector<8x384xf32>
    %c104 = arith.constant 104 : index
    %c0_23 = arith.constant 0 : index
    %42 = vector.load %arg16[%c104, %c0_23] : memref<200x384xf32, #tpu.memory_space<vmem>>, vector<8x384xf32>
    tpu.vector_store %arg16[%c104, %c0_23], %41 {strides = array<i32>} : memref<200x384xf32, #tpu.memory_space<vmem>>, vector<8x384xf32>,
    %c356_i32 = arith.constant 356 : i32
    %43 = tpu.dynamic_rotate %15 by %c356_i32 dim 1 : vector<8x384xf32>, i32 -> vector<8x384xf32>
    %c112 = arith.constant 112 : index
    %c0_24 = arith.constant 0 : index
    %44 = vector.load %arg16[%c112, %c0_24] : memref<200x384xf32, #tpu.memory_space<vmem>>, vector<8x384xf32>
    tpu.vector_store %arg16[%c112, %c0_24], %43 {strides = array<i32>} : memref<200x384xf32, #tpu.memory_space<vmem>>, vector<8x384xf32>,
    %c348_i32 = arith.constant 348 : i32
    %45 = tpu.dynamic_rotate %15 by %c348_i32 dim 1 : vector<8x384xf32>, i32 -> vector<8x384xf32>
    %c120 = arith.constant 120 : index
    %c0_25 = arith.constant 0 : index
    %46 = vector.load %arg16[%c120, %c0_25] : memref<200x384xf32, #tpu.memory_space<vmem>>, vector<8x384xf32>
    tpu.vector_store %arg16[%c120, %c0_25], %45 {strides = array<i32>} : memref<200x384xf32, #tpu.memory_space<vmem>>, vector<8x384xf32>,
    %c347_i32 = arith.constant 347 : i32
    %47 = tpu.dynamic_rotate %15 by %c347_i32 dim 1 : vector<8x384xf32>, i32 -> vector<8x384xf32>
    %c128 = arith.constant 128 : index
    %c0_26 = arith.constant 0 : index
    %48 = vector.load %arg16[%c128, %c0_26] : memref<200x384xf32, #tpu.memory_space<vmem>>, vector<8x384xf32>
    tpu.vector_store %arg16[%c128, %c0_26], %47 {strides = array<i32>} : memref<200x384xf32, #tpu.memory_space<vmem>>, vector<8x384xf32>,
    %c346_i32 = arith.constant 346 : i32
    %49 = tpu.dynamic_rotate %15 by %c346_i32 dim 1 : vector<8x384xf32>, i32 -> vector<8x384xf32>
    %c136 = arith.constant 136 : index
    %c0_27 = arith.constant 0 : index
    %50 = vector.load %arg16[%c136, %c0_27] : memref<200x384xf32, #tpu.memory_space<vmem>>, vector<8x384xf32>
    tpu.vector_store %arg16[%c136, %c0_27], %49 {strides = array<i32>} : memref<200x384xf32, #tpu.memory_space<vmem>>, vector<8x384xf32>,
    %c345_i32 = arith.constant 345 : i32
    %51 = tpu.dynamic_rotate %15 by %c345_i32 dim 1 : vector<8x384xf32>, i32 -> vector<8x384xf32>
    %c144 = arith.constant 144 : index
    %c0_28 = arith.constant 0 : index
    %52 = vector.load %arg16[%c144, %c0_28] : memref<200x384xf32, #tpu.memory_space<vmem>>, vector<8x384xf32>
    tpu.vector_store %arg16[%c144, %c0_28], %51 {strides = array<i32>} : memref<200x384xf32, #tpu.memory_space<vmem>>, vector<8x384xf32>,
    %c344_i32 = arith.constant 344 : i32
    %53 = tpu.dynamic_rotate %15 by %c344_i32 dim 1 : vector<8x384xf32>, i32 -> vector<8x384xf32>
    %c152 = arith.constant 152 : index
    %c0_29 = arith.constant 0 : index
    %54 = vector.load %arg16[%c152, %c0_29] : memref<200x384xf32, #tpu.memory_space<vmem>>, vector<8x384xf32>
    tpu.vector_store %arg16[%c152, %c0_29], %53 {strides = array<i32>} : memref<200x384xf32, #tpu.memory_space<vmem>>, vector<8x384xf32>,
    %c336_i32 = arith.constant 336 : i32
    %55 = tpu.dynamic_rotate %15 by %c336_i32 dim 1 : vector<8x384xf32>, i32 -> vector<8x384xf32>
    %c160 = arith.constant 160 : index
    %c0_30 = arith.constant 0 : index
    %56 = vector.load %arg16[%c160, %c0_30] : memref<200x384xf32, #tpu.memory_space<vmem>>, vector<8x384xf32>
    tpu.vector_store %arg16[%c160, %c0_30], %55 {strides = array<i32>} : memref<200x384xf32, #tpu.memory_space<vmem>>, vector<8x384xf32>,
    %c335_i32 = arith.constant 335 : i32
    %57 = tpu.dynamic_rotate %15 by %c335_i32 dim 1 : vector<8x384xf32>, i32 -> vector<8x384xf32>
    %c168 = arith.constant 168 : index
    %c0_31 = arith.constant 0 : index
    %58 = vector.load %arg16[%c168, %c0_31] : memref<200x384xf32, #tpu.memory_space<vmem>>, vector<8x384xf32>
    tpu.vector_store %arg16[%c168, %c0_31], %57 {strides = array<i32>} : memref<200x384xf32, #tpu.memory_space<vmem>>, vector<8x384xf32>,
    %c334_i32 = arith.constant 334 : i32
    %59 = tpu.dynamic_rotate %15 by %c334_i32 dim 1 : vector<8x384xf32>, i32 -> vector<8x384xf32>
    %c176 = arith.constant 176 : index
    %c0_32 = arith.constant 0 : index
    %60 = vector.load %arg16[%c176, %c0_32] : memref<200x384xf32, #tpu.memory_space<vmem>>, vector<8x384xf32>
    tpu.vector_store %arg16[%c176, %c0_32], %59 {strides = array<i32>} : memref<200x384xf32, #tpu.memory_space<vmem>>, vector<8x384xf32>,
    %c333_i32 = arith.constant 333 : i32
    %61 = tpu.dynamic_rotate %15 by %c333_i32 dim 1 : vector<8x384xf32>, i32 -> vector<8x384xf32>
    %c184 = arith.constant 184 : index
    %c0_33 = arith.constant 0 : index
    %62 = vector.load %arg16[%c184, %c0_33] : memref<200x384xf32, #tpu.memory_space<vmem>>, vector<8x384xf32>
    tpu.vector_store %arg16[%c184, %c0_33], %61 {strides = array<i32>} : memref<200x384xf32, #tpu.memory_space<vmem>>, vector<8x384xf32>,
    %c332_i32 = arith.constant 332 : i32
    %63 = tpu.dynamic_rotate %15 by %c332_i32 dim 1 : vector<8x384xf32>, i32 -> vector<8x384xf32>
    %c192 = arith.constant 192 : index
    %c0_34 = arith.constant 0 : index
    %64 = vector.load %arg16[%c192, %c0_34] : memref<200x384xf32, #tpu.memory_space<vmem>>, vector<8x384xf32>
    tpu.vector_store %arg16[%c192, %c0_34], %63 {strides = array<i32>} : memref<200x384xf32, #tpu.memory_space<vmem>>, vector<8x384xf32>,
    %c0_35 = arith.constant 0 : index
    %c0_36 = arith.constant 0 : index
    %65 = vector.load %arg4[%c0_35, %c0_36] : memref<16x200xf32, #tpu.memory_space<vmem>>, vector<16x200xf32>
    %c0_37 = arith.constant 0 : index
    %c0_38 = arith.constant 0 : index
    %66 = vector.load %arg16[%c0_37, %c0_38] : memref<200x384xf32, #tpu.memory_space<vmem>>, vector<200x384xf32>
    %cst_39 = arith.constant dense<0.000000e+00> : vector<16x384xf32>
    %67 = tpu.matmul %65, %66, %cst_39 {dimension_numbers = #tpu.dot_dimension_numbers<[1], [0], [0], [1], [0, 0, 1, 1], [], []>} : vector<16x200xf32>, vector<200x384xf32>, vector<16x384xf32> -> vector<16x384xf32>
    %c0_40 = arith.constant 0 : index
    %c0_41 = arith.constant 0 : index
    %68 = vector.load %arg6[%c0_40, %c0_41] : memref<384x128xf32, #tpu.memory_space<vmem>>, vector<384x128xf32>
    %cst_42 = arith.constant dense<0.000000e+00> : vector<16x128xf32>
    %69 = tpu.matmul %67, %68, %cst_42 {dimension_numbers = #tpu.dot_dimension_numbers<[1], [0], [0], [1], [0, 0, 1, 1], [], []>} : vector<16x384xf32>, vector<384x128xf32>, vector<16x128xf32> -> vector<16x128xf32>
    %c0_43 = arith.constant 0 : index
    %c0_44 = arith.constant 0 : index
    %70 = vector.load %arg5[%c0_43, %c0_44] : memref<16x1xf32, #tpu.memory_space<vmem>>, vector<16x1xf32>
    %71 = vector.broadcast %70 : vector<16x1xf32> to vector<16x128xf32>
    %72 = arith.addf %69, %71 : vector<16x128xf32>
    %cst_45 = arith.constant 0.000000e+00 : f32
    %73 = vector.broadcast %cst_45 : f32 to vector<16x128xf32>
    %74 = arith.maximumf %72, %73 : vector<16x128xf32>
    %c0_46 = arith.constant 0 : index
    %c0_47 = arith.constant 0 : index
    %75 = vector.load %arg7[%c0_46, %c0_47] : memref<128x32xf32, #tpu.memory_space<vmem>>, vector<128x32xf32>
    %c127_i32 = arith.constant 127 : i32
    %76 = tpu.dynamic_rotate %74 by %c127_i32 dim 1 : vector<16x128xf32>, i32 -> vector<16x128xf32>
    %77 = arith.maximumf %74, %76 : vector<16x128xf32>
    %c120_i32 = arith.constant 120 : i32
    %78 = tpu.dynamic_rotate %74 by %c120_i32 dim 1 : vector<16x128xf32>, i32 -> vector<16x128xf32>
    %79 = arith.maximumf %77, %78 : vector<16x128xf32>
    %c119_i32 = arith.constant 119 : i32
    %80 = tpu.dynamic_rotate %74 by %c119_i32 dim 1 : vector<16x128xf32>, i32 -> vector<16x128xf32>
    %81 = arith.maximumf %79, %80 : vector<16x128xf32>
    %cst_48 = arith.constant dense<0.000000e+00> : vector<16x32xf32>
    %82 = tpu.matmul %81, %75, %cst_48 {dimension_numbers = #tpu.dot_dimension_numbers<[1], [0], [0], [1], [0, 0, 1, 1], [], []>} : vector<16x128xf32>, vector<128x32xf32>, vector<16x32xf32> -> vector<16x32xf32>
    %c0_49 = arith.constant 0 : index
    %c0_50 = arith.constant 0 : index
    %c0_51 = arith.constant 0 : index
    %83 = vector.load %arg8[%c0_49, %c0_50, %c0_51] : memref<12x120x32xf32, #tpu.memory_space<vmem>>, vector<1x120x32xf32>
    %84 = vector.shape_cast %83 : vector<1x120x32xf32> to vector<120x32xf32>
    %85 = vector.extract_strided_slice %82 {offsets = [0, 0], sizes = [1, 32], strides = [1, 1]} : vector<16x32xf32> to vector<1x32xf32>
    %86 = vector.broadcast %85 : vector<1x32xf32> to vector<120x32xf32>
    %87 = arith.mulf %84, %86 : vector<120x32xf32>
    %c1 = arith.constant 1 : index
    %c0_52 = arith.constant 0 : index
    %c0_53 = arith.constant 0 : index
    %88 = vector.load %arg8[%c1, %c0_52, %c0_53] : memref<12x120x32xf32, #tpu.memory_space<vmem>>, vector<1x120x32xf32>
    %89 = vector.shape_cast %88 : vector<1x120x32xf32> to vector<120x32xf32>
    %90 = vector.extract_strided_slice %82 {offsets = [1, 0], sizes = [1, 32], strides = [1, 1]} : vector<16x32xf32> to vector<1x32xf32>
    %91 = vector.broadcast %90 : vector<1x32xf32> to vector<120x32xf32>
    %92 = arith.mulf %89, %91 : vector<120x32xf32>
    %93 = arith.addf %87, %92 : vector<120x32xf32>
    %c2 = arith.constant 2 : index
    %c0_54 = arith.constant 0 : index
    %c0_55 = arith.constant 0 : index
    %94 = vector.load %arg8[%c2, %c0_54, %c0_55] : memref<12x120x32xf32, #tpu.memory_space<vmem>>, vector<1x120x32xf32>
    %95 = vector.shape_cast %94 : vector<1x120x32xf32> to vector<120x32xf32>
    %96 = vector.extract_strided_slice %82 {offsets = [2, 0], sizes = [1, 32], strides = [1, 1]} : vector<16x32xf32> to vector<1x32xf32>
    %97 = vector.broadcast %96 : vector<1x32xf32> to vector<120x32xf32>
    %98 = arith.mulf %95, %97 : vector<120x32xf32>
    %99 = arith.addf %93, %98 : vector<120x32xf32>
    %c3 = arith.constant 3 : index
    %c0_56 = arith.constant 0 : index
    %c0_57 = arith.constant 0 : index
    %100 = vector.load %arg8[%c3, %c0_56, %c0_57] : memref<12x120x32xf32, #tpu.memory_space<vmem>>, vector<1x120x32xf32>
    %101 = vector.shape_cast %100 : vector<1x120x32xf32> to vector<120x32xf32>
    %102 = vector.extract_strided_slice %82 {offsets = [3, 0], sizes = [1, 32], strides = [1, 1]} : vector<16x32xf32> to vector<1x32xf32>
    %103 = vector.broadcast %102 : vector<1x32xf32> to vector<120x32xf32>
    %104 = arith.mulf %101, %103 : vector<120x32xf32>
    %105 = arith.addf %99, %104 : vector<120x32xf32>
    %c4 = arith.constant 4 : index
    %c0_58 = arith.constant 0 : index
    %c0_59 = arith.constant 0 : index
    %106 = vector.load %arg8[%c4, %c0_58, %c0_59] : memref<12x120x32xf32, #tpu.memory_space<vmem>>, vector<1x120x32xf32>
    %107 = vector.shape_cast %106 : vector<1x120x32xf32> to vector<120x32xf32>
    %108 = vector.extract_strided_slice %82 {offsets = [4, 0], sizes = [1, 32], strides = [1, 1]} : vector<16x32xf32> to vector<1x32xf32>
    %109 = vector.broadcast %108 : vector<1x32xf32> to vector<120x32xf32>
    %110 = arith.mulf %107, %109 : vector<120x32xf32>
    %111 = arith.addf %105, %110 : vector<120x32xf32>
    %c5 = arith.constant 5 : index
    %c0_60 = arith.constant 0 : index
    %c0_61 = arith.constant 0 : index
    %112 = vector.load %arg8[%c5, %c0_60, %c0_61] : memref<12x120x32xf32, #tpu.memory_space<vmem>>, vector<1x120x32xf32>
    %113 = vector.shape_cast %112 : vector<1x120x32xf32> to vector<120x32xf32>
    %114 = vector.extract_strided_slice %82 {offsets = [5, 0], sizes = [1, 32], strides = [1, 1]} : vector<16x32xf32> to vector<1x32xf32>
    %115 = vector.broadcast %114 : vector<1x32xf32> to vector<120x32xf32>
    %116 = arith.mulf %113, %115 : vector<120x32xf32>
    %117 = arith.addf %111, %116 : vector<120x32xf32>
    %c6 = arith.constant 6 : index
    %c0_62 = arith.constant 0 : index
    %c0_63 = arith.constant 0 : index
    %118 = vector.load %arg8[%c6, %c0_62, %c0_63] : memref<12x120x32xf32, #tpu.memory_space<vmem>>, vector<1x120x32xf32>
    %119 = vector.shape_cast %118 : vector<1x120x32xf32> to vector<120x32xf32>
    %120 = vector.extract_strided_slice %82 {offsets = [6, 0], sizes = [1, 32], strides = [1, 1]} : vector<16x32xf32> to vector<1x32xf32>
    %121 = vector.broadcast %120 : vector<1x32xf32> to vector<120x32xf32>
    %122 = arith.mulf %119, %121 : vector<120x32xf32>
    %123 = arith.addf %117, %122 : vector<120x32xf32>
    %c7 = arith.constant 7 : index
    %c0_64 = arith.constant 0 : index
    %c0_65 = arith.constant 0 : index
    %124 = vector.load %arg8[%c7, %c0_64, %c0_65] : memref<12x120x32xf32, #tpu.memory_space<vmem>>, vector<1x120x32xf32>
    %125 = vector.shape_cast %124 : vector<1x120x32xf32> to vector<120x32xf32>
    %126 = vector.extract_strided_slice %82 {offsets = [7, 0], sizes = [1, 32], strides = [1, 1]} : vector<16x32xf32> to vector<1x32xf32>
    %127 = vector.broadcast %126 : vector<1x32xf32> to vector<120x32xf32>
    %128 = arith.mulf %125, %127 : vector<120x32xf32>
    %129 = arith.addf %123, %128 : vector<120x32xf32>
    %c8_66 = arith.constant 8 : index
    %c0_67 = arith.constant 0 : index
    %c0_68 = arith.constant 0 : index
    %130 = vector.load %arg8[%c8_66, %c0_67, %c0_68] : memref<12x120x32xf32, #tpu.memory_space<vmem>>, vector<1x120x32xf32>
    %131 = vector.shape_cast %130 : vector<1x120x32xf32> to vector<120x32xf32>
    %132 = vector.extract_strided_slice %82 {offsets = [8, 0], sizes = [1, 32], strides = [1, 1]} : vector<16x32xf32> to vector<1x32xf32>
    %133 = vector.broadcast %132 : vector<1x32xf32> to vector<120x32xf32>
    %134 = arith.mulf %131, %133 : vector<120x32xf32>
    %135 = arith.addf %129, %134 : vector<120x32xf32>
    %c9 = arith.constant 9 : index
    %c0_69 = arith.constant 0 : index
    %c0_70 = arith.constant 0 : index
    %136 = vector.load %arg8[%c9, %c0_69, %c0_70] : memref<12x120x32xf32, #tpu.memory_space<vmem>>, vector<1x120x32xf32>
    %137 = vector.shape_cast %136 : vector<1x120x32xf32> to vector<120x32xf32>
    %138 = vector.extract_strided_slice %82 {offsets = [9, 0], sizes = [1, 32], strides = [1, 1]} : vector<16x32xf32> to vector<1x32xf32>
    %139 = vector.broadcast %138 : vector<1x32xf32> to vector<120x32xf32>
    %140 = arith.mulf %137, %139 : vector<120x32xf32>
    %141 = arith.addf %135, %140 : vector<120x32xf32>
    %c10 = arith.constant 10 : index
    %c0_71 = arith.constant 0 : index
    %c0_72 = arith.constant 0 : index
    %142 = vector.load %arg8[%c10, %c0_71, %c0_72] : memref<12x120x32xf32, #tpu.memory_space<vmem>>, vector<1x120x32xf32>
    %143 = vector.shape_cast %142 : vector<1x120x32xf32> to vector<120x32xf32>
    %144 = vector.extract_strided_slice %82 {offsets = [10, 0], sizes = [1, 32], strides = [1, 1]} : vector<16x32xf32> to vector<1x32xf32>
    %145 = vector.broadcast %144 : vector<1x32xf32> to vector<120x32xf32>
    %146 = arith.mulf %143, %145 : vector<120x32xf32>
    %147 = arith.addf %141, %146 : vector<120x32xf32>
    %c11 = arith.constant 11 : index
    %c0_73 = arith.constant 0 : index
    %c0_74 = arith.constant 0 : index
    %148 = vector.load %arg8[%c11, %c0_73, %c0_74] : memref<12x120x32xf32, #tpu.memory_space<vmem>>, vector<1x120x32xf32>
    %149 = vector.shape_cast %148 : vector<1x120x32xf32> to vector<120x32xf32>
    %150 = vector.extract_strided_slice %82 {offsets = [11, 0], sizes = [1, 32], strides = [1, 1]} : vector<16x32xf32> to vector<1x32xf32>
    %151 = vector.broadcast %150 : vector<1x32xf32> to vector<120x32xf32>
    %152 = arith.mulf %149, %151 : vector<120x32xf32>
    %153 = arith.addf %147, %152 : vector<120x32xf32>
    %c0_75 = arith.constant 0 : index
    %c0_76 = arith.constant 0 : index
    %154 = vector.load %arg10[%c0_75, %c0_76] : memref<32x2xf32, #tpu.memory_space<vmem>>, vector<32x2xf32>
    %cst_77 = arith.constant dense<0.000000e+00> : vector<120x2xf32>
    %155 = tpu.matmul %153, %154, %cst_77 {dimension_numbers = #tpu.dot_dimension_numbers<[1], [0], [0], [1], [0, 0, 1, 1], [], []>} : vector<120x32xf32>, vector<32x2xf32>, vector<120x2xf32> -> vector<120x2xf32>
    %c0_78 = arith.constant 0 : index
    %c0_79 = arith.constant 0 : index
    %156 = vector.load %arg9[%c0_78, %c0_79] : memref<120x1xf32, #tpu.memory_space<vmem>>, vector<120x1xf32>
    %157 = vector.broadcast %156 : vector<120x1xf32> to vector<120x2xf32>
    %158 = arith.addf %155, %157 : vector<120x2xf32>
    %cst_80 = arith.constant 0.000000e+00 : f32
    %159 = vector.broadcast %cst_80 : f32 to vector<120x2xf32>
    %160 = arith.maximumf %158, %159 : vector<120x2xf32>
    %c0_81 = arith.constant 0 : index
    %c0_82 = arith.constant 0 : index
    %161 = vector.load %arg11[%c0_81, %c0_82] : memref<60x120xf32, #tpu.memory_space<vmem>>, vector<60x120xf32>
    %cst_83 = arith.constant dense<0.000000e+00> : vector<60x2xf32>
    %162 = tpu.matmul %161, %160, %cst_83 {dimension_numbers = #tpu.dot_dimension_numbers<[1], [0], [0], [1], [0, 0, 1, 1], [], []>} : vector<60x120xf32>, vector<120x2xf32>, vector<60x2xf32> -> vector<60x2xf32>
    %c0_84 = arith.constant 0 : index
    %c0_85 = arith.constant 0 : index
    %163 = vector.load %arg12[%c0_84, %c0_85] : memref<60x1xf32, #tpu.memory_space<vmem>>, vector<60x1xf32>
    %164 = vector.broadcast %163 : vector<60x1xf32> to vector<60x2xf32>
    %165 = arith.addf %162, %164 : vector<60x2xf32>
    %cst_86 = arith.constant 0.000000e+00 : f32
    %166 = vector.broadcast %cst_86 : f32 to vector<60x2xf32>
    %167 = arith.maximumf %165, %166 : vector<60x2xf32>
    %c0_87 = arith.constant 0 : index
    %c0_88 = arith.constant 0 : index
    %168 = vector.load %arg13[%c0_87, %c0_88] : memref<10x60xf32, #tpu.memory_space<vmem>>, vector<10x60xf32>
    %cst_89 = arith.constant dense<0.000000e+00> : vector<10x2xf32>
    %169 = tpu.matmul %168, %167, %cst_89 {dimension_numbers = #tpu.dot_dimension_numbers<[1], [0], [0], [1], [0, 0, 1, 1], [], []>} : vector<10x60xf32>, vector<60x2xf32>, vector<10x2xf32> -> vector<10x2xf32>
    %c0_90 = arith.constant 0 : index
    %c0_91 = arith.constant 0 : index
    %170 = vector.load %arg14[%c0_90, %c0_91] : memref<10x1xf32, #tpu.memory_space<vmem>>, vector<10x1xf32>
    %171 = vector.broadcast %170 : vector<10x1xf32> to vector<10x2xf32>
    %172 = arith.addf %169, %171 : vector<10x2xf32>
    %c0_92 = arith.constant 0 : index
    %c0_93 = arith.constant 0 : index
    %173 = vector.load %arg15[%c0_92, %c0_93] : memref<10x2xf32, #tpu.memory_space<vmem>>, vector<10x2xf32>
    tpu.vector_store %arg15[%c0_92, %c0_93], %172 {strides = array<i32>} : memref<10x2xf32, #tpu.memory_space<vmem>>, vector<10x2xf32>,
    return
  }
}

</mosaic_0001>

<bundles_post_ra>
// kernel: network_forward.1
= control target key start
LH: loop header
LB: loop body
LE: loop exit
PB: predicated region body
PF: predicated region fallthrough
CT: control target
= control target key end

     0   :  { %vm97_vm0 = vcmask 1040384   ;;  %v3503_v3 = vmov 0   ;;  %vm93_vm1 = vcmask 203776   ;;  %s3505_s29 = smov 127   ;;  %s3506_s30 = smov 103   ;;  %s7017_s0 = inlined_call_operand.vmem [shape: f32[25,1152], index: 0, kind: input, shape index: {}]   ;;  %s7018_s1 = inlined_call_operand.vmem [shape: f32[8,25], index: 1, kind: input, shape index: {}]   ;;  %s7019_s2 = inlined_call_operand.vmem [shape: f32[8,1], index: 2, kind: input, shape index: {}]   ;;  %s7020_s3 = inlined_call_operand.vmem [shape: f32[1152,384], index: 3, kind: input, shape index: {}]   ;;  %s7021_s4 = inlined_call_operand.vmem [shape: f32[16,200], index: 4, kind: input, shape index: {}]   ;;  %s7022_s6 = inlined_call_operand.vmem [shape: f32[384,128], index: 6, kind: input, shape index: {}]   ;;  %s7023_s5 = inlined_call_operand.vmem [shape: f32[16,1], index: 5, kind: input, shape index: {}]   ;;  %s7024_s9 = inlined_call_operand.vmem [shape: f32[120,1], index: 9, kind: input, shape index: {}]   ;;  %s7025_s7 = inlined_call_operand.vmem [shape: f32[128,32], index: 7, kind: input, shape index: {}]   ;;  %s7026_s12 = inlined_call_operand.vmem [shape: f32[60,1], index: 12, kind: input, shape index: {}]   ;;  %s7027_s14 = inlined_call_operand.vmem [shape: f32[10,1], index: 14, kind: input, shape index: {}]   ;;  %s7028_s10 = inlined_call_operand.vmem [shape: f32[32,2], index: 10, kind: input, shape index: {}]   ;;  %s7029_s8 = inlined_call_operand.vmem [shape: f32[12,120,32], index: 8, kind: input, shape index: {}]   ;;  %s7030_s11 = inlined_call_operand.vmem [shape: f32[60,120], index: 11, kind: input, shape index: {}]   ;;  %s7031_s13 = inlined_call_operand.vmem [shape: f32[10,60], index: 13, kind: input, shape index: {}]   ;;  %s7032_s15 = inlined_call_operand.vmem [shape: f32[10,2], index: 15, kind: output, shape index: {}]  }
   0x1   :  { %v78_v0 = vld [vmem:[%s7017_s0 + $0xd8] sm:$0x1]  ;;  %v79_v1 = vld [vmem:[%s7017_s0 + $0xe0] sm:$0x1]  ;;  %v80_v2 = vld [vmem:[%s7017_s0 + $0xe8] sm:$0x1]  ;;  %3320 = vset.pattern.permute.xlu0 %v3503_v3  ;;  %3501 = vset.pattern.permute.xlu1 %v3503_v3 }
   0x2   :  { %3074 = vmatpush.msk.msra.mxu0 %vm97_vm0, %v78_v0  ;;  %3076 = vmatpush.msk.msra.mxu1 %vm97_vm0, %v79_v1  ;;  %v85_v4 = vld [vmem:[%s7017_s0 + $0x110] sm:$0x1]  ;;  %v70_v6 = vld [vmem:[%s7017_s0 + $0x98] sm:$0xff]  ;;  %v71_v7 = vld [vmem:[%s7017_s0 + $0xa0] sm:$0xff]  ;;  %s3508_s24 = smov 100   ;;  %s3509_s25 = smov 92  }
   0x3   :  { %v69_v5 = vld [vmem:[%s7017_s0 + $0x90] sm:$0xff]  ;;  %3078 = vmatpush.msk.msra.mxu2 %vm97_vm0, %v80_v2  ;;  %3088 = vmatpush.msk.msra.mxu3 %vm97_vm0, %v85_v4  ;;  %v76_v8 = vld [vmem:[%s7017_s0 + $0xc8] sm:$0xff]  ;;  %v62_v11 = vld [vmem:[%s7017_s0 + $0x58] sm:$0xff]  ;;  %s3510_s26 = smov 112   ;;  %s3511_s27 = smov 101  }
   0x4   :  { %v60_v9 = vld [vmem:[%s7017_s0 + $0x48] sm:$0xff]  ;;  %138 = vmatpush.msra.mxu0 %v69_v5  ;;  %158 = vmatpush.msra.mxu1 %v70_v6  ;;  %v61_v10 = vld [vmem:[%s7017_s0 + $0x50] sm:$0xff]  ;;  %v67_v12 = vld [vmem:[%s7017_s0 + $0x80] sm:$0xff]  ;;  %s3513_s28 = smov 113   ;;  %s3514_s16 = smov 79  }
   0x5   :  { %178 = vmatpush.msra.mxu2 %v71_v7  ;;  %278 = vmatpush.msra.mxu3 %v76_v8  ;;  %v51_v13 = vld [vmem:[%s7017_s0] sm:$0xff]  ;;  %v52_v14 = vld [vmem:[%s7017_s0 + $0x8] sm:$0xff]  ;;  %v53_v15 = vld [vmem:[%s7017_s0 + $0x10] sm:$0xff]  ;;  %s3515_s17 = smov 114   ;;  %s3516_s18 = smov 76  }
   0x6   :  { %139 = vmatpush.msra.mxu0 %v60_v9  ;;  %159 = vmatpush.msra.mxu1 %v61_v10  ;;  %v58_v16 = vld [vmem:[%s7017_s0 + $0x38] sm:$0xff]  ;;  %v50_v17 = vld [vmem:[%s7018_s1] sm:$0xff]  ;;  %v81_v18 = vld [vmem:[%s7017_s0 + $0xf0] sm:$0x1]  ;;  %s3512_s1 = smov 115   ;;  %s7033_s19 = smov 125  }
   0x7   :  { %179 = vmatpush.msra.mxu2 %v62_v11  ;;  %279 = vmatpush.msra.mxu3 %v67_v12  ;;  %v82_v19 = vld [vmem:[%s7017_s0 + $0xf8] sm:$0x1]  ;;  %v83_v20 = vld [vmem:[%s7017_s0 + $0x100] sm:$0x1]  ;;  %v72_v21 = vld [vmem:[%s7017_s0 + $0xa8] sm:$0xff]  ;;  %s7034_s20 = smov 78  }
   0x8   :  { %140 = vmatpush.msra.mxu0 %v51_v13  ;;  %160 = vmatpush.msra.mxu1 %v52_v14  ;;  %v73_v22 = vld [vmem:[%s7017_s0 + $0xb0] sm:$0xff]  ;;  %v87_v23 = vld [vmem:[%s7019_s2] sm:$0xff]  ;;  %v74_v24 = vld [vmem:[%s7017_s0 + $0xb8] sm:$0xff]  ;;  %s3519_s21 = smov 77   ;;  %s7035_s22 = smov 89  }
   0x9   :  { %180 = vmatpush.msra.mxu2 %v53_v15  ;;  %280 = vmatpush.msra.mxu3 %v58_v16  ;;  %v63_v25 = vld [vmem:[%s7017_s0 + $0x60] sm:$0xff]  ;;  %v64_v26 = vld [vmem:[%s7017_s0 + $0x68] sm:$0xff]  ;;  %v65_v27 = vld [vmem:[%s7017_s0 + $0x70] sm:$0xff]  ;;  %s3521_s23 = smov 124   ;;  %s3522_s2 = smov 116  }
   0xa   :  { %3075 = vmatmul.msk.f32.vlgmr.msra.gmra.mxu0 %vm93_vm1, %v50_v17  ;;  %3077 = vmatmul.msk.f32.vlgmr.msra.gmra.mxu1 %vm93_vm1, %v50_v17  ;;  %v54_v28 = vld [vmem:[%s7017_s0 + $0x18] sm:$0xff]  ;;  %v55_v29 = vld [vmem:[%s7017_s0 + $0x20] sm:$0xff]  ;;  %v56_v30 = vld [vmem:[%s7017_s0 + $0x28] sm:$0xff] }
   0xb   :  { %3079 = vmatmul.msk.f32.vlgmr.msra.gmra.mxu2 %vm93_vm1, %v50_v17  ;;  %3089 = vmatmul.msk.f32.vlgmr.msra.gmra.mxu3 %vm93_vm1, %v50_v17  ;;  %v84_v31 = vld [vmem:[%s7017_s0 + $0x108] sm:$0x1]  ;;  %v86_v32 = vld [vmem:[%s7017_s0 + $0x118] sm:$0x1]  ;;  %v75_v33 = vld [vmem:[%s7017_s0 + $0xc0] sm:$0xff] }
   0xc   :  { %3080 = vmatpush.msk.msrb.mxu2 %vm97_vm0, %v81_v18  ;;  %3082 = vmatpush.msk.msrb.mxu0 %vm97_vm0, %v82_v19  ;;  %v77_v34 = vld [vmem:[%s7017_s0 + $0xd0] sm:$0xff]  ;;  %v66_v35 = vld [vmem:[%s7017_s0 + $0x78] sm:$0xff]  ;;  %v68_v36 = vld [vmem:[%s7017_s0 + $0x88] sm:$0xff] }
   0xd   :  { %3084 = vmatpush.msk.msrb.mxu1 %vm97_vm0, %v83_v20  ;;  %90 = vperm.xlu0 %3320, %v87_v23   ;;  %v57_v37 = vld [vmem:[%s7017_s0 + $0x30] sm:$0xff]  ;;  %v59_v38 = vld [vmem:[%s7017_s0 + $0x40] sm:$0xff]  ;;  %s3504_s0 = smov 104   ;;  %v359_v55 = vld [vmem:[%s7020_s3 + $0x168] sm:$0xff] }
   0xe   :  { %198 = vmatpush.msrb.mxu2 %v72_v21  ;;  %218 = vmatpush.msrb.mxu0 %v73_v22  ;;  %v356_v56 = vld [vmem:[%s7020_s3 + $0x150] sm:$0xff]  ;;  %v455_v58 = vld [vmem:[%s7020_s3 + $0x468] sm:$0xff]  ;;  %v353_v60 = vld [vmem:[%s7020_s3 + $0x138] sm:$0xff] }
   0xf   :  { %238 = vmatpush.msrb.mxu1 %v74_v24  ;;  %3502 = vset.pattern.permute.xlu2 %v3503_v3  ;;  %v452_v61 = vld [vmem:[%s7020_s3 + $0x450] sm:$0xff]  ;;  %v449_v0 = vld [vmem:[%s7020_s3 + $0x438] sm:$0xff]  ;;  %v350_v1 = vld [vmem:[%s7020_s3 + $0x120] sm:$0xff] }
  0x10   :  { %199 = vmatpush.msrb.mxu2 %v63_v25  ;;  %219 = vmatpush.msrb.mxu0 %v64_v26  ;;  %v446_v5 = vld [vmem:[%s7020_s3 + $0x420] sm:$0xff]  ;;  %v599_v7 = vld [vmem:[%s7020_s3 + $0x8e8] sm:$0xff]  ;;  %v344_v12 = vld [vmem:[%s7020_s3 + $0xf0] sm:$0xff] }
  0x11   :  { %239 = vmatpush.msrb.mxu1 %v65_v27  ;;  %899 = vmatpush.msrb.mxu3 %v455_v58  ;;  %v347_v9 = vld [vmem:[%s7020_s3 + $0x108] sm:$0xff]  ;;  %v596_v13 = vld [vmem:[%s7020_s3 + $0x8d0] sm:$0xff]  ;;  %v341_v19 = vld [vmem:[%s7020_s3 + $0xd8] sm:$0xff] }
  0x12   :  { %200 = vmatpush.msrb.mxu2 %v54_v28  ;;  %220 = vmatpush.msrb.mxu0 %v55_v29  ;;  %v443_v10 = vld [vmem:[%s7020_s3 + $0x408] sm:$0xff]  ;;  %v440_v14 = vld [vmem:[%s7020_s3 + $0x3f0] sm:$0xff]  ;;  %v437_v20 = vld [vmem:[%s7020_s3 + $0x3d8] sm:$0xff] }
  0x13   :  { %240 = vmatpush.msrb.mxu1 %v56_v30  ;;  %3081 = vmatmul.msk.f32.vlgmr.msrb.gmra.mxu2 %vm93_vm1, %v50_v17  ;;  %v503_v15 = vld [vmem:[%s7020_s3 + $0x5e8] sm:$0xff]  ;;  %v500_v18 = vld [vmem:[%s7020_s3 + $0x5d0] sm:$0xff]  ;;  %v590_v22 = vld [vmem:[%s7020_s3 + $0x8a0] sm:$0xff] }
  0x14   :  { %3083 = vmatmul.msk.f32.vlgmr.msrb.gmra.mxu0 %vm93_vm1, %v50_v17  ;;  %3085 = vmatmul.msk.f32.vlgmr.msrb.gmra.mxu1 %vm93_vm1, %v50_v17  ;;  %v497_v23 = vld [vmem:[%s7020_s3 + $0x5b8] sm:$0xff]  ;;  %v338_v24 = vld [vmem:[%s7020_s3 + $0xc0] sm:$0xff]  ;;  %v335_v26 = vld [vmem:[%s7020_s3 + $0xa8] sm:$0xff] }
  0x15   :  { %3086 = vmatpush.msk.msra.mxu2 %vm97_vm0, %v84_v31  ;;  %3090 = vmatpush.msk.msra.mxu0 %vm97_vm0, %v86_v32  ;;  %v434_v27 = vld [vmem:[%s7020_s3 + $0x3c0] sm:$0xff]  ;;  %v587_v29 = vld [vmem:[%s7020_s3 + $0x888] sm:$0xff]  ;;  %v332_v31 = vld [vmem:[%s7020_s3 + $0x90] sm:$0xff] }
  0x16   :  { %859 = vmatpush.msra.mxu1 %v359_v55  ;;  %900 = vmatpush.msrb.mxu3 %v452_v61  ;;  %v494_v30 = vld [vmem:[%s7020_s3 + $0x5a0] sm:$0xff]  ;;  %v431_v32 = vld [vmem:[%s7020_s3 + $0x3a8] sm:$0xff]  ;;  %v317_v58 = vld [vmem:[%s7020_s3 + $0x18] sm:$0xff] }
  0x17   :  { %258 = vmatpush.msra.mxu2 %v75_v33  ;;  %298 = vmatpush.msra.mxu0 %v77_v34  ;;  %v584_v33 = vld [vmem:[%s7020_s3 + $0x870] sm:$0xff]  ;;  %v491_v34 = vld [vmem:[%s7020_s3 + $0x588] sm:$0xff]  ;;  %v422_v55 = vld [vmem:[%s7020_s3 + $0x360] sm:$0xff] }
  0x18   :  { %860 = vmatpush.msra.mxu1 %v356_v56  ;;  %901 = vmatpush.msrb.mxu3 %v449_v0  ;;  %v575_v56 = vld [vmem:[%s7020_s3 + $0x828] sm:$0xff]  ;;  %v314_v61 = vld [vmem:[%s7020_s3] sm:$0xff]  ;;  %v416_v0 = vld [vmem:[%s7020_s3 + $0x330] sm:$0xff] }
  0x19   :  { %259 = vmatpush.msra.mxu2 %v66_v35  ;;  %299 = vmatpush.msra.mxu0 %v68_v36  ;;  %v329_v36 = vld [vmem:[%s7020_s3 + $0x78] sm:$0xff] }
  0x1a   :  { %861 = vmatpush.msra.mxu1 %v353_v60  ;;  %902 = vmatpush.msrb.mxu3 %v446_v5  ;;  %v572_v60 = vld [vmem:[%s7020_s3 + $0x810] sm:$0xff]  ;;  %v413_v5 = vld [vmem:[%s7020_s3 + $0x318] sm:$0xff] }
  0x1b   :  { %260 = vmatpush.msra.mxu2 %v57_v37  ;;  %300 = vmatpush.msra.mxu0 %v59_v38  ;;  %v428_v37 = vld [vmem:[%s7020_s3 + $0x390] sm:$0xff]  ;;  %v581_v38 = vld [vmem:[%s7020_s3 + $0x858] sm:$0xff] }
  0x1c   :  { %3087 = vmatmul.msk.f32.vlgmr.msra.gmra.mxu2 %vm93_vm1, %v50_v17  ;;  %3091 = vmatmul.msk.f32.vlgmr.msra.gmra.mxu0 %vm93_vm1, %v50_v17  ;;  %v593_v17 = vld [vmem:[%s7020_s3 + $0x8b8] sm:$0xff] }
  0x1d   :  { %862 = vmatpush.msra.mxu1 %v350_v1  ;;  %959 = vmatpush.msrb.mxu2 %v599_v7  ;;  %v569_v1 = vld [vmem:[%s7020_s3 + $0x7f8] sm:$0xff] }
  0x1e   :  { %903 = vmatpush.msrb.mxu3 %v443_v10  ;;  %919 = vmatpush.msrb.mxu0 %v503_v15  ;;  %v401_v7 = vld [vmem:[%s7020_s3 + $0x2b8] sm:$0xff]  ;;  %v398_v10 = vld [vmem:[%s7020_s3 + $0x2a0] sm:$0xff]  ;;  %v479_v15 = vld [vmem:[%s7020_s3 + $0x528] sm:$0xff] }
  0x1f   :  { %863 = vmatpush.msra.mxu1 %v347_v9  ;;  %960 = vmatpush.msrb.mxu2 %v596_v13  ;;  %v647_v9 = vld [vmem:[%s7020_s3 + $0xa68] sm:$0xff] }
  0x20   :  { %904 = vmatpush.msrb.mxu3 %v440_v14  ;;  %920 = vmatpush.msrb.mxu0 %v500_v18  ;;  %v395_v13 = vld [vmem:[%s7020_s3 + $0x288] sm:$0xff]  ;;  %v644_v14 = vld [vmem:[%s7020_s3 + $0xa50] sm:$0xff] }
  0x21   :  { %864 = vmatpush.msra.mxu1 %v344_v12  ;;  %961 = vmatpush.msrb.mxu2 %v593_v17  ;;  %v482_v12 = vld [vmem:[%s7020_s3 + $0x540] sm:$0xff]  ;;  %v392_v18 = vld [vmem:[%s7020_s3 + $0x270] sm:$0xff] }
  0x22   :  { %905 = vmatpush.msrb.mxu3 %v437_v20  ;;  %921 = vmatpush.msrb.mxu0 %v497_v23  ;;  %v566_v17 = vld [vmem:[%s7020_s3 + $0x7e0] sm:$0xff]  ;;  %v476_v20 = vld [vmem:[%s7020_s3 + $0x510] sm:$0xff]  ;;  %v389_v23 = vld [vmem:[%s7020_s3 + $0x258] sm:$0xff] }
  0x23   :  { %865 = vmatpush.msra.mxu1 %v341_v19  ;;  %962 = vmatpush.msrb.mxu2 %v590_v22  ;;  %v641_v19 = vld [vmem:[%s7020_s3 + $0xa38] sm:$0xff]  ;;  %v563_v22 = vld [vmem:[%s7020_s3 + $0x7c8] sm:$0xff] }
  0x24   :  { %906 = vmatpush.msrb.mxu3 %v434_v27  ;;  %922 = vmatpush.msrb.mxu0 %v494_v30  ;;  %v386_v27 = vld [vmem:[%s7020_s3 + $0x240] sm:$0xff] }
  0x25   :  { %866 = vmatpush.msra.mxu1 %v338_v24  ;;  %963 = vmatpush.msrb.mxu2 %v587_v29  ;;  %v638_v24 = vld [vmem:[%s7020_s3 + $0xa20] sm:$0xff]  ;;  %v557_v29 = vld [vmem:[%s7020_s3 + $0x798] sm:$0xff] }
  0x26   :  { %907 = vmatpush.msrb.mxu3 %v431_v32  ;;  %923 = vmatpush.msrb.mxu0 %v491_v34  ;;  %v470_v30 = vld [vmem:[%s7020_s3 + $0x4e0] sm:$0xff]  ;;  %v632_v32 = vld [vmem:[%s7020_s3 + $0x9f0] sm:$0xff] }
  0x27   :  { %867 = vmatpush.msra.mxu1 %v335_v26  ;;  %964 = vmatpush.msrb.mxu2 %v584_v33  ;;  %v560_v26 = vld [vmem:[%s7020_s3 + $0x7b0] sm:$0xff]  ;;  %v467_v33 = vld [vmem:[%s7020_s3 + $0x4c8] sm:$0xff]  ;;  %v554_v34 = vld [vmem:[%s7020_s3 + $0x780] sm:$0xff] }
  0x28   :  { %908 = vmatpush.msrb.mxu3 %v428_v37  ;;  %v360_v37 = vld [vmem:[%s7020_s3 + $0x170] sm:$0xff] }
  0x29   :  { %868 = vmatpush.msra.mxu1 %v332_v31  ;;  %965 = vmatpush.msrb.mxu2 %v581_v38  ;;  %v383_v31 = vld [vmem:[%s7020_s3 + $0x228] sm:$0xff]  ;;  %v464_v38 = vld [vmem:[%s7020_s3 + $0x4b0] sm:$0xff] }
  0x2b   :  { %869 = vmatpush.msra.mxu1 %v329_v36  ;;  %v629_v36 = vld [vmem:[%s7020_s3 + $0x9d8] sm:$0xff] }
  0x7f   :  { %v3742_v39 = vpop.permute.xlu0 %90 }
  0x87   :  { %v142_v40 = vpop.f32.mrf.mxu0  ;;  %v162_v41 = vpop.f32.mrf.mxu1 }
  0x88   :  { %v3745_v42 = vadd.f32 %v142_v40, %v3742_v39  ;;  %v3748_v43 = vadd.f32 %v162_v41, %v3742_v39  ;;  %v326_v40 = vld [vmem:[%s7020_s3 + $0x60] sm:$0xff] }
  0x89   :  { %870 = vmatpush.msra.mxu1 %v326_v40  ;;  %v626_v40 = vld [vmem:[%s7020_s3 + $0x9c0] sm:$0xff] }
  0x8a   :  { %v305_v44 = vmax.f32 %v3745_v42, 0.0  ;;  %v306_v45 = vmax.f32 %v3748_v43, 0.0  ;;  %v545_v43 = vld [vmem:[%s7020_s3 + $0x738] sm:$0xff] }
  0x8c   :  { %v3326_v46 = vpack.i.bf16 %v306_v45, %v305_v44 }
  0x8e   :  { %v182_v47 = vpop.f32.mrf.mxu2  ;;  %3327 = vrot.lane.b32.xlu1 %v3326_v46, %s3504_s0  ;;  %3322 = vrot.lane.b32.xlu0 %v3326_v46, %s3505_s29  ;;  %v282_v2 = vpop.f32.mrf.mxu3 }
  0x8f   :  { %v3759_v48 = vadd.f32 %v182_v47, %v3742_v39  ;;  %v3824_v11 = vadd.f32 %v282_v2, %v3742_v39  ;;  %v425_v47 = vld [vmem:[%s7020_s3 + $0x378] sm:$0xff]  ;;  %v404_v2 = vld [vmem:[%s7020_s3 + $0x2d0] sm:$0xff] }
  0x90   :  { %909 = vmatpush.msrb.mxu3 %v425_v47  ;;  %v461_v47 = vld [vmem:[%s7020_s3 + $0x498] sm:$0xff] }
  0x91   :  { %v307_v51 = vmax.f32 %v3759_v48, 0.0  ;;  %v242_v53 = vpop.f32.mrf.mxu1  ;;  %v222_v62 = vpop.f32.mrf.mxu0  ;;  %v312_v21 = vmax.f32 %v3824_v11, 0.0 }
  0x92   :  { %v3780_v57 = vadd.f32 %v242_v53, %v3742_v39  ;;  %v3806_v6 = vadd.f32 %v222_v62, %v3742_v39  ;;  %v485_v53 = vld [vmem:[%s7020_s3 + $0x558] sm:$0xff]  ;;  %910 = vmatpush.msrb.mxu3 %v422_v55  ;;  %v407_v62 = vld [vmem:[%s7020_s3 + $0x2e8] sm:$0xff]  ;;  %v458_v55 = vld [vmem:[%s7020_s3 + $0x480] sm:$0xff] }
  0x94   :  { %v310_v3 = vmax.f32 %v3780_v57, 0.0  ;;  %v309_v16 = vmax.f32 %v3806_v6, 0.0  ;;  %v524_v57 = vld [vmem:[%s7020_s3 + $0x690] sm:$0xff] }
  0x96   :  { %v202_v49 = vpop.f32.mrf.mxu2  ;;  %3332 = vrot.lane.b32.xlu1 %v3326_v46, %s3506_s30  ;;  %v3351_v25 = vpack.i.bf16 %v312_v21, %v309_v16  ;;  %v323_v46 = vld [vmem:[%s7020_s3 + $0x48] sm:$0xff] }
  0x97   :  { %v3763_v50 = vadd.f32 %v202_v49, %v3742_v39  ;;  %v578_v49 = vld [vmem:[%s7020_s3 + $0x840] sm:$0xff]  ;;  %871 = vmatpush.msra.mxu1 %v323_v46  ;;  %v357_v46 = vld [vmem:[%s7020_s3 + $0x158] sm:$0xff] }
  0x98   :  { %966 = vmatpush.msrb.mxu2 %v578_v49  ;;  %v374_v49 = vld [vmem:[%s7020_s3 + $0x1e0] sm:$0xff] }
  0x99   :  { %v308_v52 = vmax.f32 %v3763_v50, 0.0  ;;  %v302_v28 = vpop.f32.mrf.mxu0 }
  0x9a   :  { %v303_v35 = vadd.f32 %v302_v28, %v3742_v39  ;;  %967 = vmatpush.msrb.mxu2 %v575_v56  ;;  %v635_v28 = vld [vmem:[%s7020_s3 + $0xa08] sm:$0xff] }
  0x9b   :  { %v3336_v54 = vpack.i.bf16 %v308_v52, %v307_v51  ;;  %v371_v56 = vld [vmem:[%s7020_s3 + $0x1c8] sm:$0xff] }
  0x9c   :  { %v3913_v41 = vmax.f32 %v303_v35, 0.0  ;;  %968 = vmatpush.msrb.mxu2 %v572_v60  ;;  %v380_v35 = vld [vmem:[%s7020_s3 + $0x210] sm:$0xff]  ;;  %v351_v60 = vld [vmem:[%s7020_s3 + $0x128] sm:$0xff] }
  0x9d   :  { %3337 = vrot.lane.b32.xlu2 %v3336_v54, %s3505_s29  ;;  %3347 = vrot.lane.b32.xlu0 %v3336_v54, %s3506_s30 }
  0x9e   :  { %969 = vmatpush.msrb.mxu2 %v569_v1  ;;  %v348_v1 = vld [vmem:[%s7020_s3 + $0x110] sm:$0xff] }
  0x9f   :  { %v262_v59 = vpop.f32.mrf.mxu2 }
  0xa0   :  { %v3792_v63 = vadd.f32 %v262_v59, %v3742_v39  ;;  %v488_v39 = vld [vmem:[%s7020_s3 + $0x570] sm:$0xff]  ;;  %v419_v59 = vld [vmem:[%s7020_s3 + $0x348] sm:$0xff]  ;;  %970 = vmatpush.msrb.mxu2 %v566_v17 }
  0xa1   :  { %924 = vmatpush.msrb.mxu0 %v488_v39  ;;  %911 = vmatpush.msrb.mxu3 %v419_v59  ;;  %v377_v39 = vld [vmem:[%s7020_s3 + $0x1f8] sm:$0xff]  ;;  %v695_v59 = vld [vmem:[%s7020_s3 + $0xbe8] sm:$0xff] }
  0xa2   :  { %v311_v4 = vmax.f32 %v3792_v63, 0.0  ;;  %971 = vmatpush.msrb.mxu2 %v563_v22  ;;  %v339_v17 = vld [vmem:[%s7020_s3 + $0xc8] sm:$0xff]  ;;  %v602_v22 = vld [vmem:[%s7020_s3 + $0x900] sm:$0xff] }
  0xa3   :  { %925 = vmatpush.msrb.mxu0 %v485_v53  ;;  %912 = vmatpush.msrb.mxu3 %v416_v0  ;;  %v623_v53 = vld [vmem:[%s7020_s3 + $0x9a8] sm:$0xff]  ;;  %v692_v0 = vld [vmem:[%s7020_s3 + $0xbd0] sm:$0xff] }
  0xa4   :  { %v3815_v8 = vpack.i.bf16 %v311_v4, %v310_v3  ;;  %972 = vmatpush.msrb.mxu2 %v560_v26  ;;  %v330_v26 = vld [vmem:[%s7020_s3 + $0x80] sm:$0xff] }
  0xa5   :  { %3342 = vrot.lane.b32.xlu2 %v3336_v54, %s3504_s0  ;;  %v320_v54 = vld [vmem:[%s7020_s3 + $0x30] sm:$0xff]  ;;  %913 = vmatpush.msrb.mxu3 %v413_v5  ;;  %v614_v5 = vld [vmem:[%s7020_s3 + $0x960] sm:$0xff] }
  0xa6   :  { %3357 = vrot.lane.b32.xlu1 %v3815_v8, %s3505_s29  ;;  %3367 = vrot.lane.b32.xlu0 %v3815_v8, %s3504_s0 }
  0xa7   :  { %872 = vmatpush.msra.mxu1 %v320_v54  ;;  %926 = vmatpush.msrb.mxu0 %v482_v12  ;;  %v354_v54 = vld [vmem:[%s7020_s3 + $0x140] sm:$0xff] }
  0xa8   :  { %973 = vmatpush.msrb.mxu2 %v557_v29  ;;  %v686_v12 = vld [vmem:[%s7020_s3 + $0xba0] sm:$0xff] }
  0xa9   :  { %873 = vmatpush.msra.mxu1 %v317_v58  ;;  %927 = vmatpush.msrb.mxu0 %v479_v15  ;;  %v620_v58 = vld [vmem:[%s7020_s3 + $0x990] sm:$0xff]  ;;  %v683_v15 = vld [vmem:[%s7020_s3 + $0xb88] sm:$0xff] }
  0xaa   :  { %974 = vmatpush.msrb.mxu2 %v554_v34  ;;  %v321_v34 = vld [vmem:[%s7020_s3 + $0x38] sm:$0xff] }
  0xab   :  { %874 = vmatpush.msra.mxu1 %v314_v61  ;;  %928 = vmatpush.msrb.mxu0 %v476_v20  ;;  %v368_v61 = vld [vmem:[%s7020_s3 + $0x1b0] sm:$0xff] }
  0xac   :  { %1039 = vmatpush.msra.mxu2 %v360_v37  ;;  %v336_v20 = vld [vmem:[%s7020_s3 + $0xb0] sm:$0xff]  ;;  %v318_v37 = vld [vmem:[%s7020_s3 + $0x20] sm:$0xff] }
  0xad   :  { %3352 = vrot.lane.b32.xlu2 %v3351_v25, %s3505_s29  ;;  %879 = vmatpush.msrb.mxu1 %v407_v62  ;;  %v617_v62 = vld [vmem:[%s7020_s3 + $0x978] sm:$0xff] }
  0xae   :  { %3362 = vrot.lane.b32.xlu1 %v3351_v25, %s3504_s0  ;;  %3372 = vrot.lane.b32.xlu0 %v3351_v25, %s3506_s30  ;;  %v473_v25 = vld [vmem:[%s7020_s3 + $0x4f8] sm:$0xff] }
  0xaf   :  { %880 = vmatpush.msrb.mxu1 %v404_v2  ;;  %929 = vmatpush.msrb.mxu0 %v473_v25  ;;  %v365_v2 = vld [vmem:[%s7020_s3 + $0x198] sm:$0xff]  ;;  %v674_v25 = vld [vmem:[%s7020_s3 + $0xb40] sm:$0xff] }
  0xb0   :  { %1040 = vmatpush.msra.mxu2 %v357_v46 }
  0xb1   :  { %881 = vmatpush.msrb.mxu1 %v401_v7  ;;  %930 = vmatpush.msrb.mxu0 %v470_v30  ;;  %v689_v7 = vld [vmem:[%s7020_s3 + $0xbb8] sm:$0xff]  ;;  %v764_v30 = vlaneseq }
  0xb2   :  { %1041 = vmatpush.msra.mxu2 %v354_v54 }
  0xb3   :  { %882 = vmatpush.msrb.mxu1 %v398_v10  ;;  %931 = vmatpush.msrb.mxu0 %v467_v33  ;;  %v611_v10 = vld [vmem:[%s7020_s3 + $0x948] sm:$0xff]  ;;  %v665_v33 = vld [vmem:[%s7020_s3 + $0xaf8] sm:$0xff] }
  0xb4   :  { %1042 = vmatpush.msra.mxu2 %v351_v60  ;;  %v653_v60 = vld [vmem:[%s7020_s3 + $0xa98] sm:$0xff] }
  0xb5   :  { %3377 = vrot.lane.b32.xlu2 %v3815_v8, %s3506_s30  ;;  %v410_v8 = vld [vmem:[%s7020_s3 + $0x300] sm:$0xff]  ;;  %883 = vmatpush.msrb.mxu1 %v395_v13 }
  0xb6   :  { %762 = vrot.lane.b32.xlu1 %v3913_v41, %s3505_s29  ;;  %838 = vrot.lane.b32.xlu0 %v3913_v41, %s3506_s30  ;;  %v342_v13 = vld [vmem:[%s7020_s3 + $0xe0] sm:$0xff] }
  0xb7   :  { %914 = vmatpush.msrb.mxu3 %v410_v8  ;;  %884 = vmatpush.msrb.mxu1 %v392_v18  ;;  %v345_v8 = vld [vmem:[%s7020_s3 + $0xf8] sm:$0xff] }
  0xb8   :  { %932 = vmatpush.msrb.mxu0 %v464_v38  ;;  %1043 = vmatpush.msra.mxu2 %v348_v1  ;;  %v605_v18 = vld [vmem:[%s7020_s3 + $0x918] sm:$0xff] }
  0xb9   :  { %979 = vmatpush.msra.mxu3 %v647_v9  ;;  %885 = vmatpush.msrb.mxu1 %v389_v23  ;;  %v362_v9 = vld [vmem:[%s7020_s3 + $0x180] sm:$0xff]  ;;  %v677_v23 = vld [vmem:[%s7020_s3 + $0xb58] sm:$0xff] }
  0xba   :  { %933 = vmatpush.msrb.mxu0 %v461_v47  ;;  %1044 = vmatpush.msra.mxu2 %v345_v8  ;;  %v659_v47 = vld [vmem:[%s7020_s3 + $0xac8] sm:$0xff] }
  0xbb   :  { %980 = vmatpush.msra.mxu3 %v644_v14  ;;  %886 = vmatpush.msrb.mxu1 %v386_v27  ;;  %v608_v14 = vld [vmem:[%s7020_s3 + $0x930] sm:$0xff]  ;;  %v671_v27 = vld [vmem:[%s7020_s3 + $0xb28] sm:$0xff] }
  0xbc   :  { %934 = vmatpush.msrb.mxu0 %v458_v55  ;;  %1045 = vmatpush.msra.mxu2 %v342_v13  ;;  %v656_v55 = vld [vmem:[%s7020_s3 + $0xab0] sm:$0xff] }
  0xbd   :  { %801 = vrot.lane.b32.xlu2 %v3913_v41, %s3504_s0  ;;  %981 = vmatpush.msra.mxu3 %v641_v19  ;;  %v680_v19 = vld [vmem:[%s7020_s3 + $0xb70] sm:$0xff] }
  0xbe   :  { %887 = vmatpush.msrb.mxu1 %v383_v31  ;;  %999 = vmatpush.msra.mxu0 %v695_v59  ;;  %v668_v31 = vld [vmem:[%s7020_s3 + $0xb10] sm:$0xff] }
  0xbf   :  { %982 = vmatpush.msra.mxu3 %v638_v24  ;;  %1046 = vmatpush.msra.mxu2 %v339_v17  ;;  %v333_v24 = vld [vmem:[%s7020_s3 + $0x98] sm:$0xff] }
  0xc0   :  { %888 = vmatpush.msrb.mxu1 %v380_v35  ;;  %1000 = vmatpush.msra.mxu0 %v692_v0  ;;  %v4183_v35 = vand.u32 127, %v764_v30  ;;  %v408_v30 = vld [vmem:[%s7020_s3 + $0x2f0] sm:$0xff] }
  0xc1   :  { %983 = vmatpush.msra.mxu3 %v635_v28  ;;  %1047 = vmatpush.msra.mxu2 %v336_v20  ;;  %v327_v28 = vld [vmem:[%s7020_s3 + $0x68] sm:$0xff] }
  0xc2   :  { %889 = vmatpush.msrb.mxu1 %v377_v39  ;;  %1001 = vmatpush.msra.mxu0 %v689_v7  ;;  %vm766_vm2 = vcmp.lt.s32.totalorder %v4183_v35, 127  ;;  %vm803_vm3 = vcmp.lt.s32.totalorder %v4183_v35, 104  ;;  %vm840_vm4 = vcmp.lt.s32.totalorder %v4183_v35, 103  ;;  %vm1587_vm5 = vcmp.lt.s32.totalorder %v4183_v35, 92 }
  0xc3   :  { %984 = vmatpush.msra.mxu3 %v632_v32  ;;  %1048 = vmatpush.msra.mxu2 %v333_v24  ;;  %v324_v32 = vld [vmem:[%s7020_s3 + $0x50] sm:$0xff]  ;;  %vm1574_vm6 = vcmp.lt.s32.totalorder %v4183_v35, 100  ;;  %vm1561_vm7 = vcmp.lt.s32.totalorder %v4183_v35, 101  ;;  %vm1548_vm8 = vcmp.lt.s32.totalorder %v4183_v35, 102  ;;  %vm1511_vm9 = vcmp.lt.s32.totalorder %v4183_v35, 112 }
  0xc4   :  { %890 = vmatpush.msrb.mxu1 %v374_v49  ;;  %1002 = vmatpush.msra.mxu0 %v686_v12  ;;  %v315_v49 = vld [vmem:[%s7020_s3 + $0x8] sm:$0xff]  ;;  %vm1498_vm10 = vcmp.lt.s32.totalorder %v4183_v35, 113  ;;  %vm1485_vm11 = vcmp.lt.s32.totalorder %v4183_v35, 114  ;;  %vm1472_vm12 = vcmp.lt.s32.totalorder %v4183_v35, 115  ;;  %vm1704_vm13 = vcmp.lt.s32.totalorder %v4183_v35, 76 }
  0xc5   :  { %985 = vmatpush.msra.mxu3 %v629_v36  ;;  %1049 = vmatpush.msra.mxu2 %v330_v26  ;;  %v662_v36 = vld [vmem:[%s7020_s3 + $0xae0] sm:$0xff]  ;;  %vm7038_vm14 = vcmp.lt.s32.totalorder %v4183_v35, 77  ;;  %vm7037_vm15 = vcmp.lt.s32.totalorder %v4183_v35, 78  ;;  %vm1665_vm0 = vcmp.lt.s32.totalorder %v4183_v35, 79  ;;  %vm7039_vm1 = vcmp.lt.s32.totalorder %v4183_v35, 116 }
  0xc6   :  { %891 = vmatpush.msrb.mxu1 %v371_v56  ;;  %1003 = vmatpush.msra.mxu0 %v683_v15 }
  0xc7   :  { %986 = vmatpush.msra.mxu3 %v626_v40  ;;  %1050 = vmatpush.msra.mxu2 %v327_v28 }
  0xc8   :  { %892 = vmatpush.msrb.mxu1 %v368_v61  ;;  %1004 = vmatpush.msra.mxu0 %v680_v19  ;;  %v650_v61 = vld [vmem:[%s7020_s3 + $0xa80] sm:$0xff]  ;;  %v548_v19 = vld [vmem:[%s7020_s3 + $0x750] sm:$0xff] }
  0xc9   :  { %987 = vmatpush.msra.mxu3 %v623_v53  ;;  %1051 = vmatpush.msra.mxu2 %v324_v32  ;;  %v539_v32 = vld [vmem:[%s7020_s3 + $0x708] sm:$0xff] }
  0xca   :  { %893 = vmatpush.msrb.mxu1 %v365_v2  ;;  %1005 = vmatpush.msra.mxu0 %v677_v23 }
  0xcb   :  { %988 = vmatpush.msra.mxu3 %v620_v58  ;;  %1052 = vmatpush.msra.mxu2 %v321_v34  ;;  %v536_v34 = vld [vmem:[%s7020_s3 + $0x6f0] sm:$0xff] }
  0xcc   :  { %894 = vmatpush.msrb.mxu1 %v362_v9  ;;  %1006 = vmatpush.msra.mxu0 %v674_v25 }
  0xcd   :  { %989 = vmatpush.msra.mxu3 %v617_v62  ;;  %1053 = vmatpush.msra.mxu2 %v318_v37  ;;  %v402_v37 = vld [vmem:[%s7020_s3 + $0x2c0] sm:$0xff] }
  0xce   :  { %1007 = vmatpush.msra.mxu0 %v671_v27  ;;  %v542_v27 = vld [vmem:[%s7020_s3 + $0x720] sm:$0xff] }
  0xcf   :  { %990 = vmatpush.msra.mxu3 %v614_v5  ;;  %1054 = vmatpush.msra.mxu2 %v315_v49  ;;  %v533_v49 = vld [vmem:[%s7020_s3 + $0x6d8] sm:$0xff] }
  0xd0   :  { %1008 = vmatpush.msra.mxu0 %v668_v31 }
  0xd1   :  { %991 = vmatpush.msra.mxu3 %v611_v10 }
  0xd2   :  { %1009 = vmatpush.msra.mxu0 %v665_v33  ;;  %v405_v33 = vld [vmem:[%s7020_s3 + $0x2d8] sm:$0xff] }
  0xd3   :  { %992 = vmatpush.msra.mxu3 %v608_v14  ;;  %v551_v14 = vld [vmem:[%s7020_s3 + $0x768] sm:$0xff] }
  0xd4   :  { %1010 = vmatpush.msra.mxu0 %v662_v36 }
  0xd5   :  { %993 = vmatpush.msra.mxu3 %v605_v18 }
  0xd6   :  { %1011 = vmatpush.msra.mxu0 %v659_v47 }
  0xd7   :  { %994 = vmatpush.msra.mxu3 %v602_v22 }
  0xd8   :  { %1012 = vmatpush.msra.mxu0 %v656_v55 }
  0xda   :  { %1013 = vmatpush.msra.mxu0 %v653_v60  ;;  %v399_v60 = vld [vmem:[%s7020_s3 + $0x2a8] sm:$0xff] }
  0xdc   :  { %1014 = vmatpush.msra.mxu0 %v650_v61  ;;  %v530_v61 = vld [vmem:[%s7020_s3 + $0x6c0] sm:$0xff] }
  0xf7   :  { %v4169_v29 = vpop.permute.xlu2 %3337 }
  0xf8   :  { %v3340_v62 = vunpack.i.h.bf16 %v4169_v29  ;;  %v3339_v0 = vunpack.i.l.bf16 %v4169_v29 }
  0xfa   :  { %v772_v12 = vsel %vm766_vm2, %v3339_v0, %v3340_v62 }
  0xfb   :  { %v778_v20 = vmax.f32 %v307_v51, %v772_v12 }
  0xff   :  { %v4204_v53 = vpop.permute.xlu2 %3342 }
 0x100   :  { %v4191_v38 = vpop.permute.xlu1 %3327  ;;  %v4193_v39 = vpop.permute.xlu0 %3322  ;;  %v3345_v5 = vunpack.i.h.bf16 %v4204_v53  ;;  %v3344_v7 = vunpack.i.l.bf16 %v4204_v53 }
 0x101   :  { %v3325_v40 = vunpack.i.h.bf16 %v4193_v39  ;;  %v3324_v46 = vunpack.i.l.bf16 %v4193_v39  ;;  %v3330_v56 = vunpack.i.h.bf16 %v4191_v38  ;;  %v3329_v58 = vunpack.i.l.bf16 %v4191_v38  ;;  %v453_v39 = vld [vmem:[%s7020_s3 + $0x458] sm:$0xff]  ;;  %v450_v38 = vld [vmem:[%s7020_s3 + $0x440] sm:$0xff] }
 0x102   :  { %v809_v17 = vsel %vm803_vm3, %v3344_v7, %v3345_v5 }
 0x103   :  { %v774_v54 = vsel %vm766_vm2, %v3324_v46, %v3325_v40  ;;  %v811_v42 = vsel %vm803_vm3, %v3329_v58, %v3330_v56  ;;  %v773_v9 = vsel %vm766_vm2, %v3325_v40, %v3339_v0  ;;  %v815_v25 = vmax.f32 %v778_v20, %v809_v17  ;;  %v393_v17 = vld [vmem:[%s7020_s3 + $0x278] sm:$0xff]  ;;  %v390_v20 = vld [vmem:[%s7020_s3 + $0x260] sm:$0xff] }
 0x104   :  { %v776_v59 = vmax.f32 %v305_v44, %v774_v54  ;;  %v777_v18 = vmax.f32 %v306_v45, %v773_v9  ;;  %v810_v45 = vsel %vm803_vm3, %v3330_v56, %v3344_v7 }
 0x106   :  { %v813_v8 = vmax.f32 %v776_v59, %v811_v42  ;;  %v814_v26 = vmax.f32 %v777_v18, %v810_v45 }
 0x107   :  { %v4252_v15 = vpop.permute.xlu2 %3352 }
 0x108   :  { %v4227_v1 = vpop.permute.xlu1 %3332  ;;  %v3354_v0 = vunpack.i.l.bf16 %v4252_v15  ;;  %v3355_v12 = vunpack.i.h.bf16 %v4252_v15 }
 0x109   :  { %v3335_v44 = vunpack.i.h.bf16 %v4227_v1  ;;  %v3334_v2 = vunpack.i.l.bf16 %v4227_v1  ;;  %v447_v1 = vld [vmem:[%s7020_s3 + $0x428] sm:$0xff] }
 0x10b   :  { %v848_v10 = vsel %vm840_vm4, %v3334_v2, %v3335_v44 }
 0x10c   :  { %v4247_v13 = vmax.f32 %v813_v8, %v848_v10  ;;  %v396_v8 = vld [vmem:[%s7020_s3 + $0x290] sm:$0xff]  ;;  %v527_v10 = vld [vmem:[%s7020_s3 + $0x6a8] sm:$0xff] }
 0x10e   :  { %875 = vmatmul.f32.vlgmr.msra.gmra.mxu1 %v4247_v13 }
 0x10f   :  { %v4266_v22 = vpop.permute.xlu0 %3347  ;;  %939 = vmatpush.msra.mxu1 %v551_v14  ;;  %v4302_v36 = vpop.permute.xlu2 %3377 }
 0x110   :  { %v3350_v23 = vunpack.i.h.bf16 %v4266_v22  ;;  %v3349_v24 = vunpack.i.l.bf16 %v4266_v22  ;;  %v3380_v42 = vunpack.i.h.bf16 %v4302_v36  ;;  %v381_v22 = vld [vmem:[%s7020_s3 + $0x218] sm:$0xff] }
 0x111   :  { %940 = vmatpush.msra.mxu1 %v548_v19 }
 0x112   :  { %v847_v48 = vsel %vm840_vm4, %v3335_v44, %v3349_v24  ;;  %v846_v51 = vsel %vm840_vm4, %v3349_v24, %v3350_v23  ;;  %v3379_v44 = vunpack.i.l.bf16 %v4302_v36  ;;  %v444_v36 = vld [vmem:[%s7020_s3 + $0x410] sm:$0xff] }
 0x113   :  { %941 = vmatpush.msra.mxu1 %v545_v43  ;;  %v4284_v28 = vmax.f32 %v815_v25, %v846_v51  ;;  %v4289_v31 = vmax.f32 %v814_v26, %v847_v48  ;;  %v521_v51 = vld [vmem:[%s7020_s3 + $0x678] sm:$0xff] }
 0x114   :  { %v843_v15 = vsel %vm840_vm4, %v3379_v44, %v3380_v42 }
 0x115   :  { %915 = vmatmul.f32.vlgmr.msrb.gmra.mxu3 %v4284_v28  ;;  %942 = vmatpush.msra.mxu1 %v542_v27 }
 0x116   :  { %1059 = vmatpush.msrb.mxu3 %v408_v30  ;;  %895 = vmatmul.f32.vlgmr.msrb.gmra.mxu1 %v4289_v31 }
 0x117   :  { %943 = vmatpush.msra.mxu1 %v539_v32  ;;  %v387_v32 = vld [vmem:[%s7020_s3 + $0x248] sm:$0xff] }
 0x118   :  { %v4307_v40 = vpop.permute.xlu1 %3357  ;;  %v4309_v47 = vpop.permute.xlu0 %3367  ;;  %1060 = vmatpush.msrb.mxu3 %v405_v33  ;;  %v549_v33 = vld [vmem:[%s7020_s3 + $0x758] sm:$0xff] }
 0x119   :  { %v3360_v54 = vunpack.i.h.bf16 %v4307_v40  ;;  %v3359_v55 = vunpack.i.l.bf16 %v4307_v40  ;;  %v3370_v56 = vunpack.i.h.bf16 %v4309_v47  ;;  %v3369_v59 = vunpack.i.l.bf16 %v4309_v47  ;;  %944 = vmatpush.msra.mxu1 %v536_v34  ;;  %v543_v40 = vld [vmem:[%s7020_s3 + $0x728] sm:$0xff] }
 0x11a   :  { %1061 = vmatpush.msrb.mxu3 %v402_v37  ;;  %v384_v37 = vld [vmem:[%s7020_s3 + $0x230] sm:$0xff] }
 0x11b   :  { %v769_v7 = vsel %vm766_vm2, %v3359_v55, %v3360_v54  ;;  %945 = vmatpush.msra.mxu1 %v533_v49  ;;  %v806_v14 = vsel %vm803_vm3, %v3369_v59, %v3370_v56  ;;  %v768_v19 = vsel %vm766_vm2, %v3360_v54, %v3355_v12  ;;  %v546_v49 = vld [vmem:[%s7020_s3 + $0x740] sm:$0xff]  ;;  %v515_v54 = vld [vmem:[%s7020_s3 + $0x648] sm:$0xff] }
 0x11c   :  { %v781_v9 = vmax.f32 %v310_v3, %v769_v7  ;;  %1062 = vmatpush.msrb.mxu3 %v399_v60  ;;  %v771_v3 = vsel %vm766_vm2, %v3340_v62, %v3354_v0  ;;  %v552_v62 = vld [vmem:[%s7020_s3 + $0x770] sm:$0xff]  ;;  %v782_v30 = vmax.f32 %v311_v4, %v768_v19 }
 0x11d   :  { %946 = vmatpush.msra.mxu1 %v530_v61  ;;  %v779_v27 = vmax.f32 %v308_v52, %v771_v3  ;;  %v518_v52 = vld [vmem:[%s7020_s3 + $0x660] sm:$0xff]  ;;  %v770_v61 = vsel %vm766_vm2, %v3354_v0, %v3359_v55  ;;  %v512_v55 = vld [vmem:[%s7020_s3 + $0x630] sm:$0xff] }
 0x11e   :  { %v818_v18 = vmax.f32 %v781_v9, %v806_v14  ;;  %1063 = vmatpush.msrb.mxu3 %v396_v8  ;;  %v780_v47 = vmax.f32 %v309_v16, %v770_v61  ;;  %v509_v16 = vld [vmem:[%s7020_s3 + $0x618] sm:$0xff]  ;;  %v372_v19 = vld [vmem:[%s7020_s3 + $0x1d0] sm:$0xff]  ;;  %v594_v61 = vld [vmem:[%s7020_s3 + $0x8c0] sm:$0xff] }
 0x11f   :  { %947 = vmatpush.msra.mxu1 %v527_v10  ;;  %v378_v10 = vld [vmem:[%s7020_s3 + $0x200] sm:$0xff] }
 0x120   :  { %v3363_v24 = vpop.permute.xlu1 %3362  ;;  %v4363_v43 = vpop.permute.xlu0 %3372  ;;  %1064 = vmatpush.msrb.mxu3 %v393_v17  ;;  %v4365_v29 = vmax.f32 %v818_v18, %v843_v15  ;;  %v506_v15 = vld [vmem:[%s7020_s3 + $0x600] sm:$0xff] }
 0x121   :  { %v3365_v45 = vunpack.i.h.bf16 %v3363_v24  ;;  %v3364_v25 = vunpack.i.l.bf16 %v3363_v24  ;;  %v3375_v26 = vunpack.i.h.bf16 %v4363_v43  ;;  %v3374_v48 = vunpack.i.l.bf16 %v4363_v43  ;;  %948 = vmatpush.msra.mxu1 %v524_v57  ;;  %v740_v43 = vld [vmem:[%s7020_s3 + $0xd50] sm:$0xff] }
 0x122   :  { %975 = vmatmul.f32.vlgmr.msrb.gmra.mxu2 %v4365_v29  ;;  %1065 = vmatpush.msrb.mxu3 %v390_v20 }
 0x123   :  { %v805_v34 = vsel %vm803_vm3, %v3370_v56, %v3365_v45  ;;  %v808_v50 = vsel %vm803_vm3, %v3345_v5, %v3364_v25  ;;  %1119 = vmatpush.msrb.mxu2 %v552_v62  ;;  %949 = vmatpush.msra.mxu1 %v521_v51  ;;  %v842_v53 = vsel %vm840_vm4, %v3380_v42, %v3375_v26  ;;  %v802_v42 = vpop.permute.xlu2 %801  ;;  %v441_v51 = vld [vmem:[%s7020_s3 + $0x3f8] sm:$0xff] }
 0x124   :  { %v816_v63 = vmax.f32 %v779_v27, %v808_v50  ;;  %v819_v4 = vmax.f32 %v782_v30, %v805_v34  ;;  %v845_v5 = vsel %vm840_vm4, %v3350_v23, %v3374_v48  ;;  %1066 = vmatpush.msrb.mxu3 %v387_v32  ;;  %v456_v23 = vld [vmem:[%s7020_s3 + $0x470] sm:$0xff]  ;;  %v807_v0 = vsel %vm803_vm3, %v3364_v25, %v3369_v59  ;;  %v743_v25 = vld [vmem:[%s7020_s3 + $0xd68] sm:$0xff]  ;;  %v737_v30 = vld [vmem:[%s7020_s3 + $0xd38] sm:$0xff] }
 0x125   :  { %1120 = vmatpush.msrb.mxu2 %v549_v33  ;;  %950 = vmatpush.msra.mxu1 %v518_v52  ;;  %v812_v6 = vsel %vm803_vm3, %v802_v42, %v3329_v58  ;;  %v804_v11 = vsel %vm803_vm3, %v3365_v45, %v802_v42  ;;  %v537_v58 = vld [vmem:[%s7020_s3 + $0x6f8] sm:$0xff]  ;;  %v844_v62 = vsel %vm840_vm4, %v3374_v48, %v3379_v44  ;;  %v531_v44 = vld [vmem:[%s7020_s3 + $0x6c8] sm:$0xff]  ;;  %v366_v48 = vld [vmem:[%s7020_s3 + $0x1a0] sm:$0xff] }
 0x126   :  { %v4414_v56 = vmax.f32 %v816_v63, %v845_v5  ;;  %v4416_v60 = vmax.f32 %v819_v4, %v842_v53  ;;  %1067 = vmatpush.msrb.mxu3 %v384_v37  ;;  %v528_v27 = vld [vmem:[%s7020_s3 + $0x6b0] sm:$0xff]  ;;  %v363_v32 = vld [vmem:[%s7020_s3 + $0x188] sm:$0xff]  ;;  %v438_v33 = vld [vmem:[%s7020_s3 + $0x3e0] sm:$0xff] }
 0x127   :  { %1121 = vmatpush.msrb.mxu2 %v546_v49  ;;  %951 = vmatpush.msra.mxu1 %v515_v54  ;;  %v525_v34 = vld [vmem:[%s7020_s3 + $0x698] sm:$0xff]  ;;  %v734_v50 = vld [vmem:[%s7020_s3 + $0xd20] sm:$0xff]  ;;  %v600_v52 = vld [vmem:[%s7020_s3 + $0x8f0] sm:$0xff] }
 0x128   :  { %v763_v7 = vpop.permute.xlu1 %762  ;;  %935 = vmatmul.f32.vlgmr.msrb.gmra.mxu0 %v4414_v56  ;;  %995 = vmatmul.f32.vlgmr.msra.gmra.mxu3 %v4416_v60  ;;  %v435_v63 = vld [vmem:[%s7020_s3 + $0x3c8] sm:$0xff]  ;;  %v522_v4 = vld [vmem:[%s7020_s3 + $0x680] sm:$0xff]  ;;  %v597_v49 = vld [vmem:[%s7020_s3 + $0x8d8] sm:$0xff] }
 0x129   :  { %v767_v8 = vsel %vm766_vm2, %v3355_v12, %v763_v7  ;;  %v775_v9 = vsel %vm766_vm2, %v763_v7, %v3324_v46  ;;  %v839_v12 = vpop.permute.xlu0 %838  ;;  %1068 = vmatpush.msrb.mxu3 %v381_v22  ;;  %1079 = vmatpush.msrb.mxu0 %v456_v23  ;;  %v540_v46 = vld [vmem:[%s7020_s3 + $0x710] sm:$0xff]  ;;  %v731_v37 = vld [vmem:[%s7020_s3 + $0xd08] sm:$0xff]  ;;  %v429_v22 = vld [vmem:[%s7020_s3 + $0x398] sm:$0xff] }
 0x12a   :  { %v783_v59 = vmax.f32 %v312_v21, %v767_v8  ;;  %v784_v14 = vmax.f32 %v3913_v41, %v775_v9  ;;  %1122 = vmatpush.msrb.mxu2 %v543_v40  ;;  %952 = vmatpush.msra.mxu1 %v512_v55  ;;  %v375_v21 = vld [vmem:[%s7020_s3 + $0x1e8] sm:$0xff]  ;;  %v817_v41 = vmax.f32 %v780_v47, %v807_v0  ;;  %v432_v53 = vld [vmem:[%s7020_s3 + $0x3b0] sm:$0xff]  ;;  %v725_v42 = vld [vmem:[%s7020_s3 + $0xcd8] sm:$0xff] }
 0x12b   :  { %1055 = vmatmul.f32.vlgmr.msra.gmra.mxu2 %v4247_v13  ;;  %1069 = vmatpush.msrb.mxu3 %v378_v10  ;;  %v841_v57 = vsel %vm840_vm4, %v3375_v26, %v839_v12  ;;  %v849_v3 = vsel %vm840_vm4, %v839_v12, %v3334_v2  ;;  %v534_v2 = vld [vmem:[%s7020_s3 + $0x6e0] sm:$0xff]  ;;  %v369_v26 = vld [vmem:[%s7020_s3 + $0x1b8] sm:$0xff]  ;;  %v519_v5 = vld [vmem:[%s7020_s3 + $0x668] sm:$0xff] }
 0x12c   :  { %v820_v17 = vmax.f32 %v783_v59, %v804_v11  ;;  %v821_v18 = vmax.f32 %v784_v14, %v812_v6  ;;  %1080 = vmatpush.msrb.mxu0 %v453_v39  ;;  %1123 = vmatpush.msrb.mxu2 %v540_v46  ;;  %v4509_v45 = vmax.f32 %v817_v41, %v844_v62  ;;  %v728_v54 = vld [vmem:[%s7020_s3 + $0xcf0] sm:$0xff]  ;;  %v591_v7 = vld [vmem:[%s7020_s3 + $0x8a8] sm:$0xff]  ;;  %v426_v40 = vld [vmem:[%s7020_s3 + $0x380] sm:$0xff] }
 0x12d   :  { %953 = vmatpush.msra.mxu1 %v509_v16  ;;  %1070 = vmatpush.msrb.mxu3 %v375_v21  ;;  %v516_v23 = vld [vmem:[%s7020_s3 + $0x650] sm:$0xff]  ;;  %v513_v55 = vld [vmem:[%s7020_s3 + $0x638] sm:$0xff]  ;;  %v722_v0 = vld [vmem:[%s7020_s3 + $0xcc0] sm:$0xff] }
 0x12e   :  { %v4493_v20 = vmax.f32 %v820_v17, %v841_v57  ;;  %v4495_v24 = vmax.f32 %v821_v18, %v849_v3  ;;  %1081 = vmatpush.msrb.mxu0 %v450_v38  ;;  %1124 = vmatpush.msrb.mxu2 %v537_v58  ;;  %v588_v8 = vld [vmem:[%s7020_s3 + $0x890] sm:$0xff]  ;;  %v423_v9 = vld [vmem:[%s7020_s3 + $0x368] sm:$0xff]  ;;  %v510_v10 = vld [vmem:[%s7020_s3 + $0x620] sm:$0xff] }
 0x12f   :  { %954 = vmatpush.msra.mxu1 %v506_v15  ;;  %1071 = vmatpush.msrb.mxu3 %v372_v19  ;;  %v719_v47 = vld [vmem:[%s7020_s3 + $0xca8] sm:$0xff]  ;;  %v585_v59 = vld [vmem:[%s7020_s3 + $0x878] sm:$0xff]  ;;  %v420_v14 = vld [vmem:[%s7020_s3 + $0x350] sm:$0xff] }
 0x130   :  { %1082 = vmatpush.msrb.mxu0 %v447_v1  ;;  %1125 = vmatpush.msrb.mxu2 %v534_v2  ;;  %v507_v12 = vld [vmem:[%s7020_s3 + $0x608] sm:$0xff]  ;;  %v716_v39 = vld [vmem:[%s7020_s3 + $0xc90] sm:$0xff]  ;;  %v582_v46 = vld [vmem:[%s7020_s3 + $0x860] sm:$0xff] }
 0x131   :  { %955 = vmatmul.f32.vlgmr.msra.gmra.mxu1 %v4509_v45  ;;  %1015 = vmatmul.f32.vlgmr.msra.gmra.mxu0 %v4493_v20  ;;  %v744_v6 = vld [vmem:[%s7020_s3 + $0xd70] sm:$0xff]  ;;  %v417_v11 = vld [vmem:[%s7020_s3 + $0x338] sm:$0xff]  ;;  %v579_v21 = vld [vmem:[%s7020_s3 + $0x848] sm:$0xff] }
 0x132   :  { %1019 = vmatpush.msrb.mxu1 %v743_v25  ;;  %1072 = vmatpush.msrb.mxu3 %v369_v26  ;;  %v713_v16 = vld [vmem:[%s7020_s3 + $0xc78] sm:$0xff]  ;;  %v414_v17 = vld [vmem:[%s7020_s3 + $0x320] sm:$0xff]  ;;  %v576_v38 = vld [vmem:[%s7020_s3 + $0x830] sm:$0xff] }
 0x133   :  { %1083 = vmatpush.msrb.mxu0 %v444_v36  ;;  %1126 = vmatpush.msrb.mxu2 %v531_v44  ;;  %v741_v41 = vld [vmem:[%s7020_s3 + $0xd58] sm:$0xff]  ;;  %v710_v18 = vld [vmem:[%s7020_s3 + $0xc60] sm:$0xff]  ;;  %v411_v57 = vld [vmem:[%s7020_s3 + $0x308] sm:$0xff] }
 0x134   :  { %1020 = vmatpush.msrb.mxu1 %v740_v43  ;;  %1073 = vmatpush.msrb.mxu3 %v366_v48  ;;  %v738_v58 = vld [vmem:[%s7020_s3 + $0xd40] sm:$0xff]  ;;  %v707_v3 = vld [vmem:[%s7020_s3 + $0xc48] sm:$0xff]  ;;  %v573_v15 = vld [vmem:[%s7020_s3 + $0x818] sm:$0xff] }
 0x135   :  { %1084 = vmatpush.msrb.mxu0 %v441_v51  ;;  %1127 = vmatpush.msrb.mxu2 %v528_v27  ;;  %v648_v19 = vld [vmem:[%s7020_s3 + $0xa70] sm:$0xff]  ;;  %v735_v1 = vld [vmem:[%s7020_s3 + $0xd28] sm:$0xff]  ;;  %v570_v62 = vld [vmem:[%s7020_s3 + $0x800] sm:$0xff] }
 0x136   :  { %1021 = vmatpush.msrb.mxu1 %v737_v30  ;;  %1074 = vmatpush.msrb.mxu3 %v363_v32  ;;  %v704_v2 = vld [vmem:[%s7020_s3 + $0xc30] sm:$0xff]  ;;  %v645_v25 = vld [vmem:[%s7020_s3 + $0xa58] sm:$0xff]  ;;  %v567_v44 = vld [vmem:[%s7020_s3 + $0x7e8] sm:$0xff] }
 0x137   :  { %1085 = vmatpush.msrb.mxu0 %v438_v33  ;;  %1128 = vmatpush.msrb.mxu2 %v525_v34  ;;  %v732_v26 = vld [vmem:[%s7020_s3 + $0xd10] sm:$0xff]  ;;  %v701_v36 = vld [vmem:[%s7020_s3 + $0xc18] sm:$0xff]  ;;  %v642_v43 = vld [vmem:[%s7020_s3 + $0xa40] sm:$0xff] }
 0x138   :  { %1022 = vmatpush.msrb.mxu1 %v734_v50  ;;  %1075 = vmatmul.f32.vlgmr.msrb.gmra.mxu3 %v4289_v31  ;;  %v729_v48 = vld [vmem:[%s7020_s3 + $0xcf8] sm:$0xff]  ;;  %v698_v51 = vld [vmem:[%s7020_s3 + $0xc00] sm:$0xff]  ;;  %v564_v27 = vld [vmem:[%s7020_s3 + $0x7d0] sm:$0xff] }
 0x139   :  { %1139 = vmatpush.msra.mxu3 %v600_v52  ;;  %1086 = vmatpush.msrb.mxu0 %v435_v63  ;;  %v639_v30 = vld [vmem:[%s7020_s3 + $0xa28] sm:$0xff]  ;;  %v726_v32 = vld [vmem:[%s7020_s3 + $0xce0] sm:$0xff]  ;;  %v504_v33 = vld [vmem:[%s7020_s3 + $0x5f0] sm:$0xff] }
 0x13a   :  { %1129 = vmatpush.msrb.mxu2 %v522_v4  ;;  %1023 = vmatpush.msrb.mxu1 %v731_v37  ;;  %v561_v34 = vld [vmem:[%s7020_s3 + $0x7b8] sm:$0xff]  ;;  %v636_v50 = vld [vmem:[%s7020_s3 + $0xa10] sm:$0xff]  ;;  %v723_v52 = vld [vmem:[%s7020_s3 + $0xcc8] sm:$0xff] }
 0x13b   :  { %1140 = vmatpush.msra.mxu3 %v597_v49  ;;  %1087 = vmatpush.msrb.mxu0 %v432_v53  ;;  %v501_v63 = vld [vmem:[%s7020_s3 + $0x5d8] sm:$0xff]  ;;  %v558_v4 = vld [vmem:[%s7020_s3 + $0x7a0] sm:$0xff]  ;;  %v720_v49 = vld [vmem:[%s7020_s3 + $0xcb0] sm:$0xff] }
 0x13c   :  { %1130 = vmatpush.msrb.mxu2 %v519_v5  ;;  %1024 = vmatpush.msrb.mxu1 %v728_v54  ;;  %v633_v37 = vld [vmem:[%s7020_s3 + $0x9f8] sm:$0xff]  ;;  %v498_v53 = vld [vmem:[%s7020_s3 + $0x5c0] sm:$0xff]  ;;  %v555_v5 = vld [vmem:[%s7020_s3 + $0x788] sm:$0xff] }
 0x13d   :  { %1141 = vmatpush.msra.mxu3 %v594_v61  ;;  %1088 = vmatpush.msrb.mxu0 %v429_v22  ;;  %v630_v54 = vld [vmem:[%s7020_s3 + $0x9e0] sm:$0xff]  ;;  %v717_v61 = vld [vmem:[%s7020_s3 + $0xc98] sm:$0xff]  ;;  %v495_v22 = vld [vmem:[%s7020_s3 + $0x5a8] sm:$0xff] }
 0x13e   :  { %1131 = vmatpush.msrb.mxu2 %v516_v23  ;;  %1025 = vmatpush.msrb.mxu1 %v725_v42  ;;  %v361_v23 = vld [vmem:[%s7020_s3 + $0x178] sm:$0xff]  ;;  %v627_v42 = vld [vmem:[%s7020_s3 + $0x9c8] sm:$0xff] }
 0x13f   :  { %1142 = vmatpush.msra.mxu3 %v591_v7  ;;  %1089 = vmatpush.msrb.mxu0 %v426_v40  ;;  %v714_v7 = vld [vmem:[%s7020_s3 + $0xc80] sm:$0xff]  ;;  %v492_v40 = vld [vmem:[%s7020_s3 + $0x590] sm:$0xff] }
 0x140   :  { %1132 = vmatpush.msrb.mxu2 %v513_v55  ;;  %1026 = vmatpush.msrb.mxu1 %v722_v0  ;;  %v358_v55 = vld [vmem:[%s7020_s3 + $0x160] sm:$0xff]  ;;  %v624_v0 = vld [vmem:[%s7020_s3 + $0x9b0] sm:$0xff] }
 0x141   :  { %1143 = vmatpush.msra.mxu3 %v588_v8  ;;  %1090 = vmatpush.msrb.mxu0 %v423_v9  ;;  %v711_v8 = vld [vmem:[%s7020_s3 + $0xc68] sm:$0xff]  ;;  %v489_v9 = vld [vmem:[%s7020_s3 + $0x578] sm:$0xff] }
 0x142   :  { %1133 = vmatpush.msrb.mxu2 %v510_v10  ;;  %1027 = vmatpush.msrb.mxu1 %v719_v47  ;;  %v355_v10 = vld [vmem:[%s7020_s3 + $0x148] sm:$0xff]  ;;  %v621_v47 = vld [vmem:[%s7020_s3 + $0x998] sm:$0xff] }
 0x143   :  { %1144 = vmatpush.msra.mxu3 %v585_v59  ;;  %1091 = vmatpush.msrb.mxu0 %v420_v14  ;;  %v708_v59 = vld [vmem:[%s7020_s3 + $0xc50] sm:$0xff]  ;;  %v486_v14 = vld [vmem:[%s7020_s3 + $0x560] sm:$0xff] }
 0x144   :  { %1134 = vmatpush.msrb.mxu2 %v507_v12  ;;  %1028 = vmatpush.msrb.mxu1 %v716_v39  ;;  %v352_v12 = vld [vmem:[%s7020_s3 + $0x130] sm:$0xff]  ;;  %v618_v39 = vld [vmem:[%s7020_s3 + $0x980] sm:$0xff] }
 0x145   :  { %1135 = vmatmul.f32.vlgmr.msrb.gmra.mxu2 %v4509_v45  ;;  %1145 = vmatpush.msra.mxu3 %v582_v46  ;;  %v705_v46 = vld [vmem:[%s7020_s3 + $0xc38] sm:$0xff] }
 0x146   :  { %1199 = vmatpush.msra.mxu2 %v744_v6  ;;  %1092 = vmatpush.msrb.mxu0 %v417_v11  ;;  %v483_v6 = vld [vmem:[%s7020_s3 + $0x548] sm:$0xff]  ;;  %v349_v11 = vld [vmem:[%s7020_s3 + $0x118] sm:$0xff] }
 0x147   :  { %1029 = vmatpush.msrb.mxu1 %v713_v16  ;;  %1146 = vmatpush.msra.mxu3 %v579_v21  ;;  %v615_v16 = vld [vmem:[%s7020_s3 + $0x968] sm:$0xff]  ;;  %v702_v21 = vld [vmem:[%s7020_s3 + $0xc20] sm:$0xff] }
 0x148   :  { %1200 = vmatpush.msra.mxu2 %v741_v41  ;;  %1093 = vmatpush.msrb.mxu0 %v414_v17  ;;  %v480_v41 = vld [vmem:[%s7020_s3 + $0x530] sm:$0xff]  ;;  %v346_v17 = vld [vmem:[%s7020_s3 + $0x100] sm:$0xff] }
 0x149   :  { %1030 = vmatpush.msrb.mxu1 %v710_v18  ;;  %1147 = vmatpush.msra.mxu3 %v576_v38  ;;  %v612_v18 = vld [vmem:[%s7020_s3 + $0x950] sm:$0xff]  ;;  %v699_v38 = vld [vmem:[%s7020_s3 + $0xc08] sm:$0xff] }
 0x14a   :  { %1201 = vmatpush.msra.mxu2 %v738_v58  ;;  %1094 = vmatpush.msrb.mxu0 %v411_v57  ;;  %v477_v58 = vld [vmem:[%s7020_s3 + $0x518] sm:$0xff]  ;;  %v343_v57 = vld [vmem:[%s7020_s3 + $0xe8] sm:$0xff] }
 0x14b   :  { %1031 = vmatpush.msrb.mxu1 %v707_v3  ;;  %1095 = vmatmul.f32.vlgmr.msrb.gmra.mxu0 %v4284_v28  ;;  %v505_v3 = vld [vmem:[%s7020_s3 + $0x5f8] sm:$0xff] }
 0x14c   :  { %1148 = vmatpush.msra.mxu3 %v573_v15  ;;  %1159 = vmatpush.msra.mxu0 %v648_v19  ;;  %v609_v15 = vld [vmem:[%s7020_s3 + $0x938] sm:$0xff]  ;;  %v474_v19 = vld [vmem:[%s7020_s3 + $0x500] sm:$0xff] }
 0x14d   :  { %1202 = vmatpush.msra.mxu2 %v735_v1  ;;  %1032 = vmatpush.msrb.mxu1 %v704_v2  ;;  %v340_v1 = vld [vmem:[%s7020_s3 + $0xd0] sm:$0xff]  ;;  %v502_v2 = vld [vmem:[%s7020_s3 + $0x5e0] sm:$0xff] }
 0x14e   :  { %1149 = vmatpush.msra.mxu3 %v570_v62  ;;  %1160 = vmatpush.msra.mxu0 %v645_v25  ;;  %v606_v62 = vld [vmem:[%s7020_s3 + $0x920] sm:$0xff]  ;;  %v471_v25 = vld [vmem:[%s7020_s3 + $0x4e8] sm:$0xff] }
 0x14f   :  { %1203 = vmatpush.msra.mxu2 %v732_v26  ;;  %1033 = vmatpush.msrb.mxu1 %v701_v36  ;;  %v337_v26 = vld [vmem:[%s7020_s3 + $0xb8] sm:$0xff]  ;;  %v499_v36 = vld [vmem:[%s7020_s3 + $0x5c8] sm:$0xff] }
 0x150   :  { %1150 = vmatpush.msra.mxu3 %v567_v44  ;;  %1161 = vmatpush.msra.mxu0 %v642_v43  ;;  %v603_v44 = vld [vmem:[%s7020_s3 + $0x908] sm:$0xff]  ;;  %v468_v43 = vld [vmem:[%s7020_s3 + $0x4d0] sm:$0xff] }
 0x151   :  { %1204 = vmatpush.msra.mxu2 %v729_v48  ;;  %1034 = vmatpush.msrb.mxu1 %v698_v51  ;;  %v334_v48 = vld [vmem:[%s7020_s3 + $0xa0] sm:$0xff]  ;;  %v409_v51 = vld [vmem:[%s7020_s3 + $0x2f8] sm:$0xff] }
 0x152   :  { %1151 = vmatpush.msra.mxu3 %v564_v27  ;;  %1162 = vmatpush.msra.mxu0 %v639_v30  ;;  %v496_v27 = vld [vmem:[%s7020_s3 + $0x5b0] sm:$0xff]  ;;  %v465_v30 = vld [vmem:[%s7020_s3 + $0x4b8] sm:$0xff] }
 0x153   :  { %1205 = vmatpush.msra.mxu2 %v726_v32  ;;  %1035 = vmatmul.f32.vlgmr.msrb.gmra.mxu1 %v4495_v24  ;;  %v331_v32 = vld [vmem:[%s7020_s3 + $0x88] sm:$0xff] }
 0x154   :  { %1099 = vmatpush.msra.mxu1 %v504_v33  ;;  %1152 = vmatpush.msra.mxu3 %v561_v34  ;;  %v406_v33 = vld [vmem:[%s7020_s3 + $0x2e0] sm:$0xff]  ;;  %v493_v34 = vld [vmem:[%s7020_s3 + $0x598] sm:$0xff] }
 0x155   :  { %1163 = vmatpush.msra.mxu0 %v636_v50  ;;  %1206 = vmatpush.msra.mxu2 %v723_v52  ;;  %v462_v50 = vld [vmem:[%s7020_s3 + $0x4a0] sm:$0xff]  ;;  %v328_v52 = vld [vmem:[%s7020_s3 + $0x70] sm:$0xff] }
 0x156   :  { %1100 = vmatpush.msra.mxu1 %v501_v63  ;;  %1153 = vmatpush.msra.mxu3 %v558_v4  ;;  %v403_v63 = vld [vmem:[%s7020_s3 + $0x2c8] sm:$0xff]  ;;  %v490_v4 = vld [vmem:[%s7020_s3 + $0x580] sm:$0xff] }
 0x157   :  { %1164 = vmatpush.msra.mxu0 %v633_v37  ;;  %1207 = vmatpush.msra.mxu2 %v720_v49  ;;  %v459_v37 = vld [vmem:[%s7020_s3 + $0x488] sm:$0xff]  ;;  %v325_v49 = vld [vmem:[%s7020_s3 + $0x58] sm:$0xff] }
 0x158   :  { %1101 = vmatpush.msra.mxu1 %v498_v53  ;;  %1154 = vmatpush.msra.mxu3 %v555_v5  ;;  %v400_v53 = vld [vmem:[%s7020_s3 + $0x2b0] sm:$0xff]  ;;  %v487_v5 = vld [vmem:[%s7020_s3 + $0x568] sm:$0xff] }
 0x159   :  { %1165 = vmatpush.msra.mxu0 %v630_v54  ;;  %1208 = vmatpush.msra.mxu2 %v717_v61  ;;  %v696_v54 = vld [vmem:[%s7020_s3 + $0xbf0] sm:$0xff]  ;;  %v322_v61 = vld [vmem:[%s7020_s3 + $0x40] sm:$0xff] }
 0x15a   :  { %1102 = vmatpush.msra.mxu1 %v495_v22  ;;  %1155 = vmatmul.f32.vlgmr.msra.gmra.mxu3 %v4365_v29  ;;  %v397_v22 = vld [vmem:[%s7020_s3 + $0x298] sm:$0xff] }
 0x15b   :  { %1219 = vmatpush.msrb.mxu3 %v361_v23  ;;  %1166 = vmatpush.msra.mxu0 %v627_v42  ;;  %v484_v23 = vld [vmem:[%s7020_s3 + $0x550] sm:$0xff]  ;;  %v693_v42 = vld [vmem:[%s7020_s3 + $0xbd8] sm:$0xff] }
 0x15c   :  { %1209 = vmatpush.msra.mxu2 %v714_v7  ;;  %1103 = vmatpush.msra.mxu1 %v492_v40  ;;  %v319_v7 = vld [vmem:[%s7020_s3 + $0x28] sm:$0xff]  ;;  %v394_v40 = vld [vmem:[%s7020_s3 + $0x280] sm:$0xff] }
 0x15d   :  { %1220 = vmatpush.msrb.mxu3 %v358_v55  ;;  %1167 = vmatpush.msra.mxu0 %v624_v0  ;;  %v481_v55 = vld [vmem:[%s7020_s3 + $0x538] sm:$0xff]  ;;  %v690_v0 = vld [vmem:[%s7020_s3 + $0xbc0] sm:$0xff] }
 0x15e   :  { %1210 = vmatpush.msra.mxu2 %v711_v8  ;;  %1104 = vmatpush.msra.mxu1 %v489_v9  ;;  %v316_v8 = vld [vmem:[%s7020_s3 + $0x10] sm:$0xff]  ;;  %v391_v9 = vld [vmem:[%s7020_s3 + $0x268] sm:$0xff] }
 0x15f   :  { %1221 = vmatpush.msrb.mxu3 %v355_v10  ;;  %1168 = vmatpush.msra.mxu0 %v621_v47  ;;  %v478_v10 = vld [vmem:[%s7020_s3 + $0x520] sm:$0xff]  ;;  %v687_v47 = vld [vmem:[%s7020_s3 + $0xba8] sm:$0xff] }
 0x160   :  { %1211 = vmatpush.msra.mxu2 %v708_v59  ;;  %1105 = vmatpush.msra.mxu1 %v486_v14  ;;  %v553_v59 = vld [vmem:[%s7020_s3 + $0x778] sm:$0xff]  ;;  %v388_v14 = vld [vmem:[%s7020_s3 + $0x250] sm:$0xff] }
 0x161   :  { %1222 = vmatpush.msrb.mxu3 %v352_v12  ;;  %1169 = vmatpush.msra.mxu0 %v618_v39  ;;  %v475_v12 = vld [vmem:[%s7020_s3 + $0x508] sm:$0xff]  ;;  %v684_v39 = vld [vmem:[%s7020_s3 + $0xb90] sm:$0xff] }
 0x162   :  { %1212 = vmatpush.msra.mxu2 %v705_v46  ;;  %1106 = vmatpush.msra.mxu1 %v483_v6  ;;  %v550_v46 = vld [vmem:[%s7020_s3 + $0x760] sm:$0xff]  ;;  %v385_v6 = vld [vmem:[%s7020_s3 + $0x238] sm:$0xff] }
 0x163   :  { %1223 = vmatpush.msrb.mxu3 %v349_v11  ;;  %1170 = vmatpush.msra.mxu0 %v615_v16  ;;  %v472_v11 = vld [vmem:[%s7020_s3 + $0x4f0] sm:$0xff]  ;;  %v681_v16 = vld [vmem:[%s7020_s3 + $0xb78] sm:$0xff] }
 0x164   :  { %1213 = vmatpush.msra.mxu2 %v702_v21  ;;  %1107 = vmatpush.msra.mxu1 %v480_v41  ;;  %v382_v21 = vld [vmem:[%s7020_s3 + $0x220] sm:$0xff]  ;;  %v469_v41 = vld [vmem:[%s7020_s3 + $0x4d8] sm:$0xff] }
 0x165   :  { %1224 = vmatpush.msrb.mxu3 %v346_v17  ;;  %1171 = vmatpush.msra.mxu0 %v612_v18  ;;  %v678_v17 = vld [vmem:[%s7020_s3 + $0xb60] sm:$0xff]  ;;  %v544_v18 = vld [vmem:[%s7020_s3 + $0x730] sm:$0xff] }
 0x166   :  { %1214 = vmatpush.msra.mxu2 %v699_v38  ;;  %1108 = vmatpush.msra.mxu1 %v477_v58  ;;  %v379_v38 = vld [vmem:[%s7020_s3 + $0x208] sm:$0xff]  ;;  %v466_v58 = vld [vmem:[%s7020_s3 + $0x4c0] sm:$0xff] }
 0x167   :  { %1215 = vmatmul.f32.vlgmr.msra.gmra.mxu2 %v4495_v24  ;;  %1225 = vmatpush.msrb.mxu3 %v343_v57  ;;  %v675_v57 = vld [vmem:[%s7020_s3 + $0xb48] sm:$0xff] }
 0x168   :  { %1279 = vmatpush.msrb.mxu2 %v505_v3  ;;  %1172 = vmatpush.msra.mxu0 %v609_v15  ;;  %v541_v3 = vld [vmem:[%s7020_s3 + $0x718] sm:$0xff]  ;;  %v376_v15 = vld [vmem:[%s7020_s3 + $0x1f0] sm:$0xff] }
 0x169   :  { %1109 = vmatpush.msra.mxu1 %v474_v19  ;;  %1226 = vmatpush.msrb.mxu3 %v340_v1  ;;  %v463_v19 = vld [vmem:[%s7020_s3 + $0x4a8] sm:$0xff]  ;;  %v672_v1 = vld [vmem:[%s7020_s3 + $0xb30] sm:$0xff] }
 0x16a   :  { %1280 = vmatpush.msrb.mxu2 %v502_v2  ;;  %1173 = vmatpush.msra.mxu0 %v606_v62  ;;  %v538_v2 = vld [vmem:[%s7020_s3 + $0x700] sm:$0xff]  ;;  %v373_v62 = vld [vmem:[%s7020_s3 + $0x1d8] sm:$0xff] }
 0x16b   :  { %1110 = vmatpush.msra.mxu1 %v471_v25  ;;  %1227 = vmatpush.msrb.mxu3 %v337_v26  ;;  %v460_v25 = vld [vmem:[%s7020_s3 + $0x490] sm:$0xff]  ;;  %v669_v26 = vld [vmem:[%s7020_s3 + $0xb18] sm:$0xff] }
 0x16c   :  { %1281 = vmatpush.msrb.mxu2 %v499_v36  ;;  %1174 = vmatpush.msra.mxu0 %v603_v44  ;;  %v535_v36 = vld [vmem:[%s7020_s3 + $0x6e8] sm:$0xff]  ;;  %v697_v44 = vld [vmem:[%s7020_s3 + $0xbf8] sm:$0xff] }
 0x16d   :  { %1111 = vmatpush.msra.mxu1 %v468_v43  ;;  %1175 = vmatmul.f32.vlgmr.msra.gmra.mxu0 %v4416_v60  ;;  %v370_v43 = vld [vmem:[%s7020_s3 + $0x1c0] sm:$0xff] }
 0x16e   :  { %1228 = vmatpush.msrb.mxu3 %v334_v48  ;;  %1239 = vmatpush.msrb.mxu0 %v409_v51  ;;  %v666_v48 = vld [vmem:[%s7020_s3 + $0xb00] sm:$0xff]  ;;  %v532_v51 = vld [vmem:[%s7020_s3 + $0x6d0] sm:$0xff] }
 0x16f   :  { %1282 = vmatpush.msrb.mxu2 %v496_v27  ;;  %1112 = vmatpush.msra.mxu1 %v465_v30  ;;  %v694_v27 = vld [vmem:[%s7020_s3 + $0xbe0] sm:$0xff]  ;;  %v367_v30 = vld [vmem:[%s7020_s3 + $0x1a8] sm:$0xff] }
 0x170   :  { %1229 = vmatpush.msrb.mxu3 %v331_v32  ;;  %1240 = vmatpush.msrb.mxu0 %v406_v33  ;;  %v663_v32 = vld [vmem:[%s7020_s3 + $0xae8] sm:$0xff]  ;;  %v529_v33 = vld [vmem:[%s7020_s3 + $0x6b8] sm:$0xff] }
 0x171   :  { %1283 = vmatpush.msrb.mxu2 %v493_v34  ;;  %1113 = vmatpush.msra.mxu1 %v462_v50  ;;  %v364_v34 = vld [vmem:[%s7020_s3 + $0x190] sm:$0xff] }
 0x172   :  { %1230 = vmatpush.msrb.mxu3 %v328_v52  ;;  %1241 = vmatpush.msrb.mxu0 %v403_v63  ;;  %v660_v50 = vld [vmem:[%s7020_s3 + $0xad0] sm:$0xff]  ;;  %v526_v52 = vld [vmem:[%s7020_s3 + $0x6a0] sm:$0xff]  ;;  %v601_v63 = vld [vmem:[%s7020_s3 + $0x8f8] sm:$0xff] }
 0x173   :  { %1284 = vmatpush.msrb.mxu2 %v490_v4  ;;  %1114 = vmatpush.msra.mxu1 %v459_v37  ;;  %v688_v4 = vld [vmem:[%s7020_s3 + $0xbb0] sm:$0xff]  ;;  %v657_v37 = vld [vmem:[%s7020_s3 + $0xab8] sm:$0xff] }
 0x174   :  { %1231 = vmatpush.msrb.mxu3 %v325_v49  ;;  %1242 = vmatpush.msrb.mxu0 %v400_v53  ;;  %v523_v49 = vld [vmem:[%s7020_s3 + $0x688] sm:$0xff]  ;;  %v598_v53 = vld [vmem:[%s7020_s3 + $0x8e0] sm:$0xff] }
 0x175   :  { %1285 = vmatpush.msrb.mxu2 %v487_v5  ;;  %1115 = vmatmul.f32.vlgmr.msra.gmra.mxu1 %v4414_v56  ;;  %v685_v5 = vld [vmem:[%s7020_s3 + $0xb98] sm:$0xff] }
 0x176   :  { %1179 = vmatpush.msrb.mxu1 %v696_v54  ;;  %1232 = vmatpush.msrb.mxu3 %v322_v61  ;;  %v654_v54 = vld [vmem:[%s7020_s3 + $0xaa0] sm:$0xff]  ;;  %v595_v61 = vld [vmem:[%s7020_s3 + $0x8c8] sm:$0xff] }
 0x177   :  { %1243 = vmatpush.msrb.mxu0 %v397_v22  ;;  %1286 = vmatpush.msrb.mxu2 %v484_v23  ;;  %v682_v22 = vld [vmem:[%s7020_s3 + $0xb80] sm:$0xff]  ;;  %v651_v23 = vld [vmem:[%s7020_s3 + $0xa88] sm:$0xff] }
 0x178   :  { %1180 = vmatpush.msrb.mxu1 %v693_v42  ;;  %1233 = vmatpush.msrb.mxu3 %v319_v7  ;;  %v517_v42 = vld [vmem:[%s7020_s3 + $0x658] sm:$0xff]  ;;  %v592_v7 = vld [vmem:[%s7020_s3 + $0x8b0] sm:$0xff] }
 0x179   :  { %1244 = vmatpush.msrb.mxu0 %v394_v40  ;;  %1287 = vmatpush.msrb.mxu2 %v481_v55  ;;  %v679_v40 = vld [vmem:[%s7020_s3 + $0xb68] sm:$0xff]  ;;  %v457_v55 = vld [vmem:[%s7020_s3 + $0x478] sm:$0xff] }
 0x17a   :  { %1181 = vmatpush.msrb.mxu1 %v690_v0  ;;  %1234 = vmatpush.msrb.mxu3 %v316_v8  ;;  %v514_v0 = vld [vmem:[%s7020_s3 + $0x640] sm:$0xff]  ;;  %v589_v8 = vld [vmem:[%s7020_s3 + $0x898] sm:$0xff] }
 0x17b   :  { %1245 = vmatpush.msrb.mxu0 %v391_v9  ;;  %1288 = vmatpush.msrb.mxu2 %v478_v10  ;;  %v676_v9 = vld [vmem:[%s7020_s3 + $0xb50] sm:$0xff]  ;;  %v454_v10 = vld [vmem:[%s7020_s3 + $0x460] sm:$0xff] }
 0x17c   :  { %1182 = vmatpush.msrb.mxu1 %v687_v47  ;;  %1235 = vmatmul.f32.vlgmr.msrb.gmra.mxu3 %v4247_v13  ;;  %v547_v13 = vld [vmem:[%s7020_s3 + $0x748] sm:$0xff] }
 0x17d   :  { %1299 = vmatpush.msra.mxu3 %v553_v59  ;;  %1246 = vmatpush.msrb.mxu0 %v388_v14  ;;  %v511_v47 = vld [vmem:[%s7020_s3 + $0x628] sm:$0xff]  ;;  %v586_v59 = vld [vmem:[%s7020_s3 + $0x880] sm:$0xff]  ;;  %v673_v14 = vld [vmem:[%s7020_s3 + $0xb38] sm:$0xff] }
 0x17e   :  { %1289 = vmatpush.msrb.mxu2 %v475_v12  ;;  %1183 = vmatpush.msrb.mxu1 %v684_v39  ;;  %v451_v12 = vld [vmem:[%s7020_s3 + $0x448] sm:$0xff]  ;;  %v508_v39 = vld [vmem:[%s7020_s3 + $0x610] sm:$0xff] }
 0x17f   :  { %1300 = vmatpush.msra.mxu3 %v550_v46  ;;  %1247 = vmatpush.msrb.mxu0 %v385_v6  ;;  %v583_v46 = vld [vmem:[%s7020_s3 + $0x868] sm:$0xff]  ;;  %v670_v6 = vld [vmem:[%s7020_s3 + $0xb20] sm:$0xff] }
 0x180   :  { %1290 = vmatpush.msrb.mxu2 %v472_v11  ;;  %1184 = vmatpush.msrb.mxu1 %v681_v16  ;;  %v448_v11 = vld [vmem:[%s7020_s3 + $0x430] sm:$0xff]  ;;  %v745_v16 = vld [vmem:[%s7020_s3 + $0xd78] sm:$0xff] }
 0x181   :  { %1301 = vmatpush.msra.mxu3 %v547_v13  ;;  %1248 = vmatpush.msrb.mxu0 %v382_v21  ;;  %v580_v13 = vld [vmem:[%s7020_s3 + $0x850] sm:$0xff]  ;;  %v667_v21 = vld [vmem:[%s7020_s3 + $0xb08] sm:$0xff] }
 0x182   :  { %1291 = vmatpush.msrb.mxu2 %v469_v41  ;;  %1185 = vmatpush.msrb.mxu1 %v678_v17  ;;  %v445_v41 = vld [vmem:[%s7020_s3 + $0x418] sm:$0xff]  ;;  %v742_v17 = vld [vmem:[%s7020_s3 + $0xd60] sm:$0xff] }
 0x183   :  { %1302 = vmatpush.msra.mxu3 %v544_v18  ;;  %1249 = vmatpush.msrb.mxu0 %v379_v38  ;;  %v577_v18 = vld [vmem:[%s7020_s3 + $0x838] sm:$0xff]  ;;  %v664_v38 = vld [vmem:[%s7020_s3 + $0xaf0] sm:$0xff] }
 0x184   :  { %1292 = vmatpush.msrb.mxu2 %v466_v58  ;;  %1186 = vmatpush.msrb.mxu1 %v675_v57  ;;  %v442_v58 = vld [vmem:[%s7020_s3 + $0x400] sm:$0xff] }
 0x185   :  { %1303 = vmatpush.msra.mxu3 %v541_v3  ;;  %1250 = vmatpush.msrb.mxu0 %v376_v15  ;;  %v574_v57 = vld [vmem:[%s7020_s3 + $0x820] sm:$0xff]  ;;  %v661_v3 = vld [vmem:[%s7020_s3 + $0xad8] sm:$0xff]  ;;  %v439_v15 = vld [vmem:[%s7020_s3 + $0x3e8] sm:$0xff] }
 0x186   :  { %1293 = vmatpush.msrb.mxu2 %v463_v19  ;;  %1187 = vmatpush.msrb.mxu1 %v672_v1  ;;  %v736_v19 = vld [vmem:[%s7020_s3 + $0xd30] sm:$0xff]  ;;  %v571_v1 = vld [vmem:[%s7020_s3 + $0x808] sm:$0xff] }
 0x187   :  { %1304 = vmatpush.msra.mxu3 %v538_v2  ;;  %1251 = vmatpush.msrb.mxu0 %v373_v62  ;;  %v658_v2 = vld [vmem:[%s7020_s3 + $0xac0] sm:$0xff]  ;;  %v436_v62 = vld [vmem:[%s7020_s3 + $0x3d0] sm:$0xff] }
 0x188   :  { %1294 = vmatpush.msrb.mxu2 %v460_v25  ;;  %1188 = vmatpush.msrb.mxu1 %v669_v26  ;;  %v733_v25 = vld [vmem:[%s7020_s3 + $0xd18] sm:$0xff]  ;;  %v568_v26 = vld [vmem:[%s7020_s3 + $0x7f0] sm:$0xff] }
 0x189   :  { %1295 = vmatmul.f32.vlgmr.msrb.gmra.mxu2 %v4414_v56  ;;  %1305 = vmatpush.msra.mxu3 %v535_v36  ;;  %v691_v56 = vld [vmem:[%s7020_s3 + $0xbc8] sm:$0xff] }
 0x18a   :  { %1359 = vmatpush.msra.mxu2 %v697_v44  ;;  %1252 = vmatpush.msrb.mxu0 %v370_v43  ;;  %v655_v36 = vld [vmem:[%s7020_s3 + $0xaa8] sm:$0xff]  ;;  %v433_v44 = vld [vmem:[%s7020_s3 + $0x3b8] sm:$0xff]  ;;  %v730_v43 = vld [vmem:[%s7020_s3 + $0xd00] sm:$0xff] }
 0x18b   :  { %1189 = vmatpush.msrb.mxu1 %v666_v48  ;;  %1306 = vmatpush.msra.mxu3 %v532_v51  ;;  %v565_v48 = vld [vmem:[%s7020_s3 + $0x7d8] sm:$0xff]  ;;  %v652_v51 = vld [vmem:[%s7020_s3 + $0xa90] sm:$0xff] }
 0x18c   :  { %1360 = vmatpush.msra.mxu2 %v694_v27  ;;  %1253 = vmatpush.msrb.mxu0 %v367_v30  ;;  %v430_v27 = vld [vmem:[%s7020_s3 + $0x3a0] sm:$0xff]  ;;  %v727_v30 = vld [vmem:[%s7020_s3 + $0xce8] sm:$0xff] }
 0x18d   :  { %1190 = vmatpush.msrb.mxu1 %v663_v32  ;;  %1307 = vmatpush.msra.mxu3 %v529_v33  ;;  %v562_v32 = vld [vmem:[%s7020_s3 + $0x7c0] sm:$0xff]  ;;  %v427_v33 = vld [vmem:[%s7020_s3 + $0x388] sm:$0xff] }
 0x18e   :  { %1361 = vmatpush.msra.mxu2 %v691_v56  ;;  %1254 = vmatpush.msrb.mxu0 %v364_v34  ;;  %v724_v56 = vld [vmem:[%s7020_s3 + $0xcd0] sm:$0xff]  ;;  %v559_v34 = vld [vmem:[%s7020_s3 + $0x7a8] sm:$0xff] }
 0x18f   :  { %1191 = vmatpush.msrb.mxu1 %v660_v50  ;;  %1255 = vmatmul.f32.vlgmr.msrb.gmra.mxu0 %v4289_v31  ;;  %v520_v31 = vld [vmem:[%s7020_s3 + $0x670] sm:$0xff] }
 0x190   :  { %1308 = vmatpush.msra.mxu3 %v526_v52  ;;  %1319 = vmatpush.msra.mxu0 %v601_v63  ;;  %v424_v50 = vld [vmem:[%s7020_s3 + $0x370] sm:$0xff]  ;;  %v721_v52 = vld [vmem:[%s7020_s3 + $0xcb8] sm:$0xff] }
 0x191   :  { %1362 = vmatpush.msra.mxu2 %v688_v4  ;;  %1192 = vmatpush.msrb.mxu1 %v657_v37  ;;  %v421_v63 = vld [vmem:[%s7020_s3 + $0x358] sm:$0xff]  ;;  %v718_v4 = vld [vmem:[%s7020_s3 + $0xca0] sm:$0xff] }
 0x192   :  { %1309 = vmatpush.msra.mxu3 %v523_v49  ;;  %1320 = vmatpush.msra.mxu0 %v598_v53  ;;  %v418_v37 = vld [vmem:[%s7020_s3 + $0x340] sm:$0xff]  ;;  %v715_v49 = vld [vmem:[%s7020_s3 + $0xc88] sm:$0xff] }
 0x193   :  { %1363 = vmatpush.msra.mxu2 %v685_v5  ;;  %1193 = vmatpush.msrb.mxu1 %v654_v54  ;;  %v415_v53 = vld [vmem:[%s7020_s3 + $0x328] sm:$0xff]  ;;  %v712_v5 = vld [vmem:[%s7020_s3 + $0xc70] sm:$0xff] }
 0x194   :  { %1310 = vmatpush.msra.mxu3 %v520_v31  ;;  %1321 = vmatpush.msra.mxu0 %v595_v61  ;;  %v412_v54 = vld [vmem:[%s7020_s3 + $0x310] sm:$0xff]  ;;  %v649_v31 = vld [vmem:[%s7020_s3 + $0xa78] sm:$0xff]  ;;  %v706_v61 = vld [vmem:[%s7020_s3 + $0xc40] sm:$0xff] }
 0x195   :  { %1364 = vmatpush.msra.mxu2 %v682_v22  ;;  %1194 = vmatpush.msrb.mxu1 %v651_v23  ;;  %v646_v22 = vld [vmem:[%s7020_s3 + $0xa60] sm:$0xff]  ;;  %v703_v23 = vld [vmem:[%s7020_s3 + $0xc28] sm:$0xff] }
 0x196   :  { %1311 = vmatpush.msra.mxu3 %v517_v42  ;;  %1322 = vmatpush.msra.mxu0 %v592_v7  ;;  %v643_v42 = vld [vmem:[%s7020_s3 + $0xa48] sm:$0xff]  ;;  %v700_v7 = vld [vmem:[%s7020_s3 + $0xc10] sm:$0xff] }
 0x197   :  { %1365 = vmatpush.msra.mxu2 %v679_v40  ;;  %1195 = vmatmul.f32.vlgmr.msrb.gmra.mxu1 %v4493_v20  ;;  %v637_v40 = vld [vmem:[%s7020_s3 + $0xa18] sm:$0xff] }
 0x198   :  { %1259 = vmatpush.msra.mxu1 %v457_v55  ;;  %1312 = vmatpush.msra.mxu3 %v514_v0  ;;  %v634_v55 = vld [vmem:[%s7020_s3 + $0xa00] sm:$0xff]  ;;  %v631_v0 = vld [vmem:[%s7020_s3 + $0x9e8] sm:$0xff] }
 0x199   :  { %1323 = vmatpush.msra.mxu0 %v589_v8  ;;  %1366 = vmatpush.msra.mxu2 %v676_v9  ;;  %v628_v8 = vld [vmem:[%s7020_s3 + $0x9d0] sm:$0xff]  ;;  %v625_v9 = vld [vmem:[%s7020_s3 + $0x9b8] sm:$0xff] }
 0x19a   :  { %1260 = vmatpush.msra.mxu1 %v454_v10  ;;  %1313 = vmatpush.msra.mxu3 %v511_v47  ;;  %v619_v10 = vld [vmem:[%s7020_s3 + $0x988] sm:$0xff]  ;;  %v616_v47 = vld [vmem:[%s7020_s3 + $0x970] sm:$0xff] }
 0x19b   :  { %1324 = vmatpush.msra.mxu0 %v586_v59  ;;  %1367 = vmatpush.msra.mxu2 %v673_v14  ;;  %v613_v59 = vld [vmem:[%s7020_s3 + $0x958] sm:$0xff]  ;;  %v610_v14 = vld [vmem:[%s7020_s3 + $0x940] sm:$0xff] }
 0x19c   :  { %1261 = vmatpush.msra.mxu1 %v451_v12  ;;  %1314 = vmatpush.msra.mxu3 %v508_v39  ;;  %v607_v12 = vld [vmem:[%s7020_s3 + $0x928] sm:$0xff]  ;;  %v604_v39 = vld [vmem:[%s7020_s3 + $0x910] sm:$0xff] }
 0x19d   :  { %1325 = vmatpush.msra.mxu0 %v583_v46  ;;  %1368 = vmatpush.msra.mxu2 %v670_v6  ;;  %v876_v46 = vpop.f32.mrf.mxu1 }
 0x19e   :  { %1262 = vmatpush.msra.mxu1 %v448_v11  ;;  %1315 = vmatmul.f32.vlgmr.msra.gmra.mxu3 %v4509_v45  ;;  %v739_v45 = vld [vmem:[%s7020_s3 + $0xd48] sm:$0xff]  ;;  %v916_v11 = vpop.f32.mrf.mxu3 }
 0x19f   :  { %1379 = vmatpush.msrb.mxu3 %v745_v16  ;;  %1326 = vmatpush.msra.mxu0 %v580_v13 }
 0x1a0   :  { %1369 = vmatpush.msra.mxu2 %v667_v21  ;;  %1263 = vmatpush.msra.mxu1 %v445_v41 }
 0x1a1   :  { %1380 = vmatpush.msrb.mxu3 %v742_v17  ;;  %1327 = vmatpush.msra.mxu0 %v577_v18 }
 0x1a2   :  { %1370 = vmatpush.msra.mxu2 %v664_v38  ;;  %1264 = vmatpush.msra.mxu1 %v442_v58 }
 0x1a3   :  { %1381 = vmatpush.msrb.mxu3 %v739_v45  ;;  %1328 = vmatpush.msra.mxu0 %v574_v57 }
 0x1a4   :  { %1371 = vmatpush.msra.mxu2 %v661_v3  ;;  %1265 = vmatpush.msra.mxu1 %v439_v15 }
 0x1a5   :  { %1382 = vmatpush.msrb.mxu3 %v736_v19  ;;  %1329 = vmatpush.msra.mxu0 %v571_v1  ;;  %v896_v6 = vpop.f32.mrf.mxu1  ;;  %v936_v16 = vpop.f32.mrf.mxu0 }
 0x1a6   :  { %1372 = vmatpush.msra.mxu2 %v658_v2  ;;  %1266 = vmatpush.msra.mxu1 %v436_v62  ;;  %v976_v21 = vpop.f32.mrf.mxu2  ;;  %v897_v57 = vadd.f32 %v896_v6, %v876_v46 }
 0x1a7   :  { %1383 = vmatpush.msrb.mxu3 %v733_v25  ;;  %1330 = vmatpush.msra.mxu0 %v568_v26 }
 0x1a8   :  { %1373 = vmatpush.msra.mxu2 %v655_v36  ;;  %1267 = vmatpush.msra.mxu1 %v433_v44  ;;  %v917_v19 = vadd.f32 %v916_v11, %v897_v57 }
 0x1a9   :  { %1384 = vmatpush.msrb.mxu3 %v730_v43  ;;  %1331 = vmatpush.msra.mxu0 %v565_v48 }
 0x1aa   :  { %1374 = vmatpush.msra.mxu2 %v652_v51  ;;  %1268 = vmatpush.msra.mxu1 %v430_v27  ;;  %v937_v2 = vadd.f32 %v936_v16, %v917_v19 }
 0x1ab   :  { %1375 = vmatmul.f32.vlgmr.msra.gmra.mxu2 %v4493_v20  ;;  %1385 = vmatpush.msrb.mxu3 %v727_v30  ;;  %v556_v20 = vld [vmem:[%s7020_s3 + $0x790] sm:$0xff]  ;;  %v996_v41 = vpop.f32.mrf.mxu3 }
 0x1ac   :  { %1332 = vmatpush.msra.mxu0 %v562_v32  ;;  %1269 = vmatpush.msra.mxu1 %v427_v33 }
 0x1ad   :  { %1386 = vmatpush.msrb.mxu3 %v724_v56 }
 0x1ae   :  { %1333 = vmatpush.msra.mxu0 %v559_v34  ;;  %1270 = vmatpush.msra.mxu1 %v424_v50  ;;  %v956_v13 = vpop.f32.mrf.mxu1  ;;  %v1016_v17 = vpop.f32.mrf.mxu0 }
 0x1af   :  { %1387 = vmatpush.msrb.mxu3 %v721_v52  ;;  %v1056_v58 = vpop.f32.mrf.mxu2 }
 0x1b0   :  { %1334 = vmatpush.msra.mxu0 %v556_v20  ;;  %1271 = vmatpush.msra.mxu1 %v421_v63 }
 0x1b1   :  { %1335 = vmatmul.f32.vlgmr.msra.gmra.mxu0 %v4365_v29  ;;  %1388 = vmatpush.msrb.mxu3 %v718_v4  ;;  %v709_v29 = vld [vmem:[%s7020_s3 + $0xc58] sm:$0xff] }
 0x1b2   :  { %1272 = vmatpush.msra.mxu1 %v418_v37 }
 0x1b3   :  { %1389 = vmatpush.msrb.mxu3 %v715_v49 }
 0x1b4   :  { %1273 = vmatpush.msra.mxu1 %v415_v53 }
 0x1b5   :  { %1390 = vmatpush.msrb.mxu3 %v712_v5 }
 0x1b6   :  { %1274 = vmatpush.msra.mxu1 %v412_v54 }
 0x1b7   :  { %1391 = vmatpush.msrb.mxu3 %v709_v29  ;;  %1275 = vmatmul.f32.vlgmr.msra.gmra.mxu1 %v4284_v28  ;;  %v640_v28 = vld [vmem:[%s7020_s3 + $0xa30] sm:$0xff] }
 0x1b8   :  { %1339 = vmatpush.msrb.mxu1 %v649_v31 }
 0x1b9   :  { %1392 = vmatpush.msrb.mxu3 %v706_v61 }
 0x1ba   :  { %1340 = vmatpush.msrb.mxu1 %v646_v22 }
 0x1bb   :  { %1393 = vmatpush.msrb.mxu3 %v703_v23  ;;  %v1076_v38 = vpop.f32.mrf.mxu3 }
 0x1bc   :  { %1341 = vmatpush.msrb.mxu1 %v643_v42  ;;  %v1077_v3 = vadd.f32 %v1076_v38, %v1056_v58 }
 0x1bd   :  { %1394 = vmatpush.msrb.mxu3 %v700_v7 }
 0x1be   :  { %1342 = vmatpush.msrb.mxu1 %v640_v28  ;;  %1395 = vmatmul.f32.vlgmr.msrb.gmra.mxu3 %v4495_v24  ;;  %v622_v24 = vld [vmem:[%s7020_s3 + $0x9a0] sm:$0xff]  ;;  %s3507_s3 = smov 102  }
 0x1c0   :  { %1343 = vmatpush.msrb.mxu1 %v637_v40 }
 0x1c2   :  { %1344 = vmatpush.msrb.mxu1 %v634_v55 }
 0x1c4   :  { %1345 = vmatpush.msrb.mxu1 %v631_v0 }
 0x1c6   :  { %1346 = vmatpush.msrb.mxu1 %v628_v8 }
 0x1c8   :  { %1347 = vmatpush.msrb.mxu1 %v625_v9  ;;  %v1096_v45 = vpop.f32.mrf.mxu0  ;;  %v1136_v25 = vpop.f32.mrf.mxu2 }
 0x1c9   :  { %v1097_v1 = vadd.f32 %v1096_v45, %v1077_v3 }
 0x1ca   :  { %1348 = vmatpush.msrb.mxu1 %v622_v24 }
 0x1cc   :  { %1349 = vmatpush.msrb.mxu1 %v619_v10 }
 0x1ce   :  { %1350 = vmatpush.msrb.mxu1 %v616_v47 }
 0x1d0   :  { %1351 = vmatpush.msrb.mxu1 %v613_v59  ;;  %v1036_v18 = vpop.f32.mrf.mxu1 }
 0x1d2   :  { %1352 = vmatpush.msrb.mxu1 %v610_v14 }
 0x1d4   :  { %1353 = vmatpush.msrb.mxu1 %v607_v12 }
 0x1d6   :  { %1354 = vmatpush.msrb.mxu1 %v604_v39 }
 0x1d7   :  { %1355 = vmatmul.f32.vlgmr.msrb.gmra.mxu1 %v4416_v60  ;;  %v957_v60 = vadd.f32 %v956_v13, %v937_v2 }
 0x1d9   :  { %v977_v36 = vadd.f32 %v976_v21, %v957_v60 }
 0x1db   :  { %v997_v48 = vadd.f32 %v996_v41, %v977_v36 }
 0x1dd   :  { %v1156_v44 = vpop.f32.mrf.mxu3  ;;  %v1017_v32 = vadd.f32 %v1016_v17, %v997_v48 }
 0x1df   :  { %v5323_v34 = vadd.f32 %v1036_v18, %v1017_v32 }
 0x1ea   :  { %v1176_v51 = vpop.f32.mrf.mxu0  ;;  %v1216_v56 = vpop.f32.mrf.mxu2 }
 0x1f2   :  { %v1116_v15 = vpop.f32.mrf.mxu1 }
 0x1f3   :  { %v1117_v62 = vadd.f32 %v1116_v15, %v1097_v1 }
 0x1f5   :  { %v1137_v26 = vadd.f32 %v1136_v25, %v1117_v62 }
 0x1f7   :  { %v1157_v43 = vadd.f32 %v1156_v44, %v1137_v26 }
 0x1f9   :  { %v1177_v27 = vadd.f32 %v1176_v51, %v1157_v43 }
 0x1ff   :  { %v1236_v63 = vpop.f32.mrf.mxu3 }
 0x20c   :  { %v1256_v20 = vpop.f32.mrf.mxu0  ;;  %v1296_v53 = vpop.f32.mrf.mxu2 }
 0x20d   :  { %v1257_v37 = vadd.f32 %v1256_v20, %v1236_v63 }
 0x214   :  { %v1196_v30 = vpop.f32.mrf.mxu1 }
 0x215   :  { %v1197_v33 = vadd.f32 %v1196_v30, %v1177_v27 }
 0x217   :  { %v5325_v50 = vadd.f32 %v1216_v56, %v1197_v33 }
 0x219   :  { %v5329_v52 = vpack.i.bf16 %v5325_v50, %v5323_v34 }
 0x21b   :  { %3397 = vrot.lane.b32.xlu0 %v5329_v52, %s3507_s3  ;;  %3387 = vrot.lane.b32.xlu2 %v5329_v52, %s3508_s24 }
 0x21c   :  { %3382 = vrot.lane.b32.xlu1 %v5329_v52, %s3509_s25 }
 0x221   :  { %v1316_v54 = vpop.f32.mrf.mxu3 }
 0x223   :  { %3412 = vrot.lane.b32.xlu0 %v5329_v52, %s3510_s26  ;;  %3402 = vrot.lane.b32.xlu2 %v5329_v52, %s3506_s30 }
 0x224   :  { %3392 = vrot.lane.b32.xlu1 %v5329_v52, %s3511_s27 }
 0x22b   :  { %3437 = vrot.lane.b32.xlu0 %v5329_v52, %s3512_s1  ;;  %3417 = vrot.lane.b32.xlu2 %v5329_v52, %s3513_s28 }
 0x22c   :  { %3407 = vrot.lane.b32.xlu1 %v5329_v52, %s3504_s0 }
 0x22e   :  { %v1336_v31 = vpop.f32.mrf.mxu0  ;;  %v1376_v42 = vpop.f32.mrf.mxu2 }
 0x233   :  { %3452 = vrot.lane.b32.xlu0 %v5329_v52, %s3514_s16  ;;  %3427 = vrot.lane.b32.xlu2 %v5329_v52, %s3515_s17 }
 0x234   :  { %3422 = vrot.lane.b32.xlu1 %v5329_v52, %s3516_s18  ;;  %v1276_v4 = vpop.f32.mrf.mxu1 }
 0x235   :  { %v1277_v49 = vadd.f32 %v1276_v4, %v1257_v37 }
 0x237   :  { %v1297_v5 = vadd.f32 %v1296_v53, %v1277_v49 }
 0x239   :  { %v1317_v29 = vadd.f32 %v1316_v54, %v1297_v5 }
 0x23b   :  { %3467 = vrot.lane.b32.xlu0 %v5329_v52, %s7033_s19  ;;  %3442 = vrot.lane.b32.xlu2 %v5329_v52, %s7034_s20  ;;  %s7036_s19 = smov 88   ;;  %s3524_s20 = smov 80   ;;  %v1337_v61 = vadd.f32 %v1336_v31, %v1317_v29 }
 0x23c   :  { %3432 = vrot.lane.b32.xlu1 %v5329_v52, %s3519_s21 }
 0x241   :  { %v1396_v28 = vpop.f32.mrf.mxu3 }
 0x243   :  { %3482 = vrot.lane.b32.xlu0 %v5329_v52, %s7035_s22  ;;  %3457 = vrot.lane.b32.xlu2 %v5329_v52, %s3521_s23  ;;  %s3525_s22 = smov 126  }
 0x244   :  { %3447 = vrot.lane.b32.xlu1 %v5329_v52, %s3522_s2 }
 0x24b   :  { %3472 = vrot.lane.b32.xlu2 %v5329_v52, %s7036_s19  ;;  %s3526_s19 = smov 90  }
 0x24c   :  { %3462 = vrot.lane.b32.xlu1 %v5329_v52, %s3524_s20 }
 0x253   :  { %3487 = vrot.lane.b32.xlu2 %v5329_v52, %s3505_s29 }
 0x254   :  { %v1356_v22 = vpop.f32.mrf.mxu1  ;;  %3477 = vrot.lane.b32.xlu1 %v5329_v52, %s3525_s22 }
 0x255   :  { %v1357_v23 = vadd.f32 %v1356_v22, %v1337_v61 }
 0x257   :  { %v1377_v7 = vadd.f32 %v1376_v42, %v1357_v23 }
 0x259   :  { %v5375_v40 = vadd.f32 %v1396_v28, %v1377_v7 }
 0x25b   :  { %1585 = vrot.lane.b32.xlu0 %v5375_v40, %s3509_s25  ;;  %1572 = vrot.lane.b32.xlu2 %v5375_v40, %s3508_s24  ;;  %s7059_s24 = smov 88   ;;  %s3527_s25 = smov 91  }
 0x25c   :  { %3492 = vrot.lane.b32.xlu1 %v5329_v52, %s3526_s19 }
 0x263   :  { %1546 = vrot.lane.b32.xlu0 %v5375_v40, %s3507_s3  ;;  %1534 = vrot.lane.b32.xlu2 %v5375_v40, %s3506_s30  ;;  %s7056_s30 = smov 78   ;;  %s7058_s3 = smov 89  }
 0x264   :  { %1559 = vrot.lane.b32.xlu1 %v5375_v40, %s3511_s27 }
 0x26b   :  { %1509 = vrot.lane.b32.xlu0 %v5375_v40, %s3510_s26  ;;  %1702 = vrot.lane.b32.xlu2 %v5375_v40, %s3516_s18 }
 0x26c   :  { %1522 = vrot.lane.b32.xlu1 %v5375_v40, %s3504_s0  ;;  %s7057_s0 = smov 125  }
 0x273   :  { %1496 = vrot.lane.b32.xlu0 %v5375_v40, %s3513_s28  ;;  %1470 = vrot.lane.b32.xlu2 %v5375_v40, %s3512_s1 }
 0x274   :  { %1483 = vrot.lane.b32.xlu1 %v5375_v40, %s3515_s17 }
 0x275   :  { %v5401_v55 = vpop.permute.xlu2 %3387 }
 0x276   :  { %v3390_v47 = vunpack.i.h.bf16 %v5401_v55  ;;  %v3389_v59 = vunpack.i.l.bf16 %v5401_v55 }
 0x278   :  { %v1576_v46 = vsel %vm1574_vm6, %v3389_v59, %v3390_v47 }
 0x27b   :  { %1689 = vrot.lane.b32.xlu0 %v5375_v40, %s3519_s21  ;;  %1663 = vrot.lane.b32.xlu2 %v5375_v40, %s3514_s16 }
 0x27c   :  { %1676 = vrot.lane.b32.xlu1 %v5375_v40, %s7056_s30 }
 0x27d   :  { %v5409_v0 = vpop.permute.xlu2 %3402 }
 0x27e   :  { %v3405_v18 = vunpack.i.h.bf16 %v5409_v0  ;;  %v3404_v38 = vunpack.i.l.bf16 %v5409_v0 }
 0x280   :  { %v1537_v3 = vsel %vm840_vm4, %v3404_v38, %v3405_v18 }
 0x283   :  { %1457 = vrot.lane.b32.xlu0 %v5375_v40, %s3522_s2  ;;  %1431 = vrot.lane.b32.xlu2 %v5375_v40, %s7057_s0 }
 0x284   :  { %1444 = vrot.lane.b32.xlu1 %v5375_v40, %s3521_s23 }
 0x285   :  { %v5417_v8 = vpop.permute.xlu2 %3417 }
 0x286   :  { %v3420_v25 = vunpack.i.h.bf16 %v5417_v8  ;;  %v3419_v26 = vunpack.i.l.bf16 %v5417_v8 }
 0x288   :  { %v1500_v32 = vsel %vm1498_vm10, %v3419_v26, %v3420_v25 }
 0x28b   :  { %1650 = vrot.lane.b32.xlu0 %v5375_v40, %s3524_s20  ;;  %1624 = vrot.lane.b32.xlu2 %v5375_v40, %s7058_s3 }
 0x28c   :  { %1637 = vrot.lane.b32.xlu1 %v5375_v40, %s7059_s24 }
 0x28d   :  { %v5425_v9 = vpop.permute.xlu0 %3397  ;;  %v5427_v24 = vpop.permute.xlu2 %3427 }
 0x28e   :  { %v5429_v10 = vpop.permute.xlu1 %3382  ;;  %v3400_v13 = vunpack.i.h.bf16 %v5425_v9  ;;  %v3399_v21 = vunpack.i.l.bf16 %v5425_v9  ;;  %v3430_v44 = vunpack.i.h.bf16 %v5427_v24  ;;  %v3429_v43 = vunpack.i.l.bf16 %v5427_v24 }
 0x28f   :  { %v3385_v14 = vunpack.i.h.bf16 %v5429_v10  ;;  %v3384_v12 = vunpack.i.l.bf16 %v5429_v10 }
 0x290   :  { %v1550_v45 = vsel %vm1548_vm8, %v3399_v21, %v3400_v13  ;;  %v1487_v20 = vsel %vm1485_vm11, %v3429_v43, %v3430_v44 }
 0x291   :  { %v1589_v39 = vsel %vm1587_vm5, %v3384_v12, %v3385_v14 }
 0x292   :  { %1797 = vmatpush.msrb.mxu0 %v1589_v39 }
 0x293   :  { %1418 = vrot.lane.b32.xlu0 %v5375_v40, %s3525_s22  ;;  %1611 = vrot.lane.b32.xlu2 %v5375_v40, %s3526_s19 }
 0x294   :  { %3497 = vrot.lane.b32.xlu1 %v5329_v52, %s3527_s25  ;;  %1798 = vmatpush.msrb.mxu0 %v1576_v46 }
 0x295   :  { %v5455_v6 = vpop.permute.xlu2 %3442  ;;  %v5457_v11 = vpop.permute.xlu0 %3412 }
 0x296   :  { %v5459_v16 = vpop.permute.xlu1 %3392  ;;  %v3415_v19 = vunpack.i.h.bf16 %v5457_v11  ;;  %v3414_v1 = vunpack.i.l.bf16 %v5457_v11  ;;  %v3445_v5 = vunpack.i.h.bf16 %v5455_v6  ;;  %v7040_v54 = vunpack.i.l.bf16 %v5455_v6 }
 0x297   :  { %v3395_v41 = vunpack.i.h.bf16 %v5459_v16  ;;  %v3394_v17 = vunpack.i.l.bf16 %v5459_v16 }
 0x298   :  { %v1513_v48 = vsel %vm1511_vm9, %v3414_v1, %v3415_v19  ;;  %v1680_v42 = vsel %vm7037_vm15, %v7040_v54, %v3445_v5  ;;  %vm7042_vm15 = vcmp.lt.s32.totalorder %v4183_v35, 124 }
 0x299   :  { %v1563_v58 = vsel %vm1561_vm7, %v3394_v17, %v3395_v41 }
 0x29a   :  { %1799 = vmatpush.msrb.mxu0 %v1563_v58 }
 0x29b   :  { %1406 = vrot.lane.b32.xlu0 %v5375_v40, %s3505_s29 }
 0x29c   :  { %1800 = vmatpush.msrb.mxu0 %v1550_v45 }
 0x29d   :  { %v5483_v57 = vpop.permute.xlu2 %3457  ;;  %v5497_v60 = vpop.permute.xlu0 %3437 }
 0x29e   :  { %v5491_v15 = vpop.permute.xlu1 %3407  ;;  %1801 = vmatpush.msrb.mxu0 %v1537_v3  ;;  %v3440_v51 = vunpack.i.h.bf16 %v5497_v60  ;;  %v3439_v27 = vunpack.i.l.bf16 %v5497_v60  ;;  %v7043_v58 = vunpack.i.h.bf16 %v5483_v57  ;;  %v7041_v45 = vunpack.i.l.bf16 %v5483_v57 }
 0x29f   :  { %v3410_v2 = vunpack.i.h.bf16 %v5491_v15  ;;  %v3409_v62 = vunpack.i.l.bf16 %v5491_v15 }
 0x2a0   :  { %v1474_v63 = vsel %vm1472_vm12, %v3439_v27, %v3440_v51 }
 0x2a1   :  { %v1525_v36 = vsel %vm803_vm3, %v3409_v62, %v3410_v2 }
 0x2a2   :  { %1802 = vmatpush.msrb.mxu0 %v1525_v36 }
 0x2a3   :  { %1598 = vrot.lane.b32.xlu0 %v5375_v40, %s3527_s25 }
 0x2a4   :  { %1803 = vmatpush.msrb.mxu0 %v1513_v48 }
 0x2a5   :  { %v5522_v30 = vpop.permute.xlu2 %3472  ;;  %v5554_v37 = vpop.permute.xlu0 %3452 }
 0x2a6   :  { %v5530_v33 = vpop.permute.xlu1 %3422  ;;  %1804 = vmatpush.msrb.mxu0 %v1500_v32  ;;  %v3455_v61 = vunpack.i.h.bf16 %v5554_v37  ;;  %v3454_v22 = vunpack.i.l.bf16 %v5554_v37 }
 0x2a7   :  { %v3425_v56 = vunpack.i.h.bf16 %v5530_v33  ;;  %v3424_v52 = vunpack.i.l.bf16 %v5530_v33 }
 0x2a8   :  { %1805 = vmatpush.msrb.mxu0 %v1487_v20  ;;  %v1667_v39 = vsel %vm1665_vm0, %v3454_v22, %v3455_v61 }
 0x2a9   :  { %v1706_v4 = vsel %vm1704_vm13, %v3424_v52, %v3425_v56 }
 0x2aa   :  { %1806 = vmatpush.msrb.mxu0 %v1474_v63  ;;  %1827 = vmatpush.msra.mxu1 %v1706_v4  ;;  %v1448_v63 = vsel %vm7042_vm15, %v7041_v45, %v7043_v58  ;;  %vm7050_vm15 = vcmp.lt.s32.totalorder %v4183_v35, 88 }
 0x2ad   :  { %v5556_v49 = vpop.permute.xlu2 %3487  ;;  %v5581_v7 = vpop.permute.xlu0 %3467 }
 0x2ae   :  { %v5558_v53 = vpop.permute.xlu1 %3432  ;;  %v7046_v48 = vunpack.i.h.bf16 %v5581_v7  ;;  %v7044_v32 = vunpack.i.l.bf16 %v5581_v7 }
 0x2af   :  { %v3435_v29 = vunpack.i.h.bf16 %v5558_v53  ;;  %v3434_v31 = vunpack.i.l.bf16 %v5558_v53 }
 0x2b1   :  { %v1693_v23 = vsel %vm7038_vm14, %v3434_v31, %v3435_v29  ;;  %vm7045_vm14 = vcmp.lt.s32.totalorder %v4183_v35, 125 }
 0x2b2   :  { %1828 = vmatpush.msra.mxu1 %v1693_v23  ;;  %v1435_v23 = vsel %vm7045_vm14, %v7044_v32, %v7046_v48  ;;  %vm1626_vm14 = vcmp.lt.s32.totalorder %v4183_v35, 89 }
 0x2b4   :  { %1829 = vmatpush.msra.mxu1 %v1680_v42 }
 0x2b5   :  { %v5583_v28 = vpop.permute.xlu2 %1572  ;;  %v5622_v42 = vpop.permute.xlu0 %3482 }
 0x2b6   :  { %v5591_v46 = vpop.permute.xlu1 %3447  ;;  %1830 = vmatpush.msra.mxu1 %v1667_v39  ;;  %v7052_v58 = vunpack.i.h.bf16 %v5622_v42  ;;  %v3484_v32 = vunpack.i.l.bf16 %v5622_v42 }
 0x2b7   :  { %v7048_v3 = vunpack.i.h.bf16 %v5591_v46  ;;  %v7047_v36 = vunpack.i.l.bf16 %v5591_v46 }
 0x2b9   :  { %v1461_v20 = vsel %vm7039_vm1, %v7047_v36, %v7048_v3  ;;  %vm1652_vm1 = vcmp.lt.s32.totalorder %v4183_v35, 80  ;;  %v1628_v3 = vsel %vm1626_vm14, %v3484_v32, %v7052_v58  ;;  %v7055_v58 = vunpack.i.l.bf16 %v5556_v49 }
 0x2ba   :  { %1807 = vmatpush.msrb.mxu0 %v1461_v20  ;;  %v7053_v20 = vunpack.i.h.bf16 %v5522_v30 }
 0x2bc   :  { %1808 = vmatpush.msrb.mxu0 %v1448_v63  ;;  %v7051_v63 = vunpack.i.l.bf16 %v5522_v30 }
 0x2bd   :  { %v5614_v4 = vpop.permute.xlu2 %1534 }
 0x2be   :  { %v5624_v39 = vpop.permute.xlu1 %3462  ;;  %1809 = vmatpush.msrb.mxu0 %v1435_v23  ;;  %v1641_v48 = vsel %vm7050_vm15, %v7051_v63, %v7053_v20  ;;  %vm1420_vm15 = vcmp.lt.s32.totalorder %v4183_v35, 126  ;;  %v3490_v63 = vunpack.i.h.bf16 %v5556_v49  ;;  %v1536_v16 = vsel %vm840_vm4, %v3405_v18, %v5614_v4 }
 0x2bf   :  { %v7054_v54 = vunpack.i.h.bf16 %v5624_v39  ;;  %v7049_v45 = vunpack.i.l.bf16 %v5624_v39 }
 0x2c1   :  { %v1654_v23 = vsel %vm1652_vm1, %v7049_v45, %v7054_v54 }
 0x2c2   :  { %1831 = vmatpush.msra.mxu1 %v1654_v23 }
 0x2c4   :  { %1832 = vmatpush.msra.mxu1 %v1641_v48 }
 0x2c5   :  { %v1703_v36 = vpop.permute.xlu2 %1702 }
 0x2c6   :  { %v1705_v23 = vsel %vm1704_vm13, %v3425_v56, %v1703_v36  ;;  %v5661_v45 = vsel %vm1704_vm13, %v1703_v36, %v3424_v52  ;;  %v5663_v48 = vpop.permute.xlu1 %3477  ;;  %1833 = vmatpush.msra.mxu1 %v1628_v3  ;;  %v1409_v56 = vsel %vm766_vm2, %v7055_v58, %v3490_v63  ;;  %vm1613_vm13 = vcmp.lt.s32.totalorder %v4183_v35, 90 }
 0x2c7   :  { %v3480_v20 = vunpack.i.h.bf16 %v5663_v48  ;;  %v3479_v54 = vunpack.i.l.bf16 %v5663_v48  ;;  %1873 = vmatpush.msra.mxu3 %v1705_v23  ;;  %v7080_v48 = vunpack.i.l.bf16 %v5556_v49  ;;  %v1714_v49 = vld [vmem:[%s7021_s4 + $0x18] sm:$0xff] }
 0x2c9   :  { %v1422_v33 = vsel %vm1420_vm15, %v3479_v54, %v3480_v20 }
 0x2ca   :  { %1810 = vmatpush.msrb.mxu0 %v1422_v33 }
 0x2cc   :  { %1811 = vmatpush.msrb.mxu0 %v1409_v56 }
 0x2cd   :  { %v1586_v52 = vpop.permute.xlu0 %1585  ;;  %v1471_v3 = vpop.permute.xlu2 %1470 }
 0x2ce   :  { %v1588_v36 = vsel %vm1587_vm5, %v3385_v14, %v1586_v52  ;;  %v1590_v23 = vsel %vm1587_vm5, %v1586_v52, %v3384_v12  ;;  %v5691_v33 = vpop.permute.xlu1 %3492  ;;  %1812 = vmatpush.msrb.mxu0 %v5323_v34  ;;  %v1473_v56 = vsel %vm1472_vm12, %v3440_v51, %v1471_v3  ;;  %v1475_v58 = vsel %vm1472_vm12, %v1471_v3, %v3439_v27 }
 0x2cf   :  { %v3495_v14 = vunpack.i.h.bf16 %v5691_v33  ;;  %v3494_v10 = vunpack.i.l.bf16 %v5691_v33  ;;  %1843 = vmatpush.msrb.mxu2 %v1588_v36  ;;  %v1575_v34 = vsel %vm1574_vm6, %v3390_v47, %v5583_v28  ;;  %v1577_v12 = vsel %vm1574_vm6, %v5583_v28, %v3389_v59 }
 0x2d0   :  { %1889 = vmatpush.msra.mxu0 %v1590_v23  ;;  %vm7062_vm5 = vcmp.lt.s32.totalorder %v4183_v35, 78  ;;  %v7063_v36 = vunpack.i.h.bf16 %v5591_v46  ;;  %vm7064_vm6 = vcmp.lt.s32.totalorder %v4183_v35, 116  ;;  %vm7078_vm12 = vcmp.lt.s32.totalorder %v4183_v35, 88 }
 0x2d1   :  { %1844 = vmatpush.msrb.mxu2 %v1575_v34  ;;  %v1615_v60 = vsel %vm1613_vm13, %v3494_v10, %v3495_v14 }
 0x2d2   :  { %1890 = vmatpush.msra.mxu0 %v1577_v12  ;;  %1834 = vmatpush.msra.mxu1 %v1615_v60  ;;  %v7073_v60 = vunpack.i.l.bf16 %v5581_v7 }
 0x2d5   :  { %v1547_v51 = vpop.permute.xlu0 %1546  ;;  %v1664_v27 = vpop.permute.xlu2 %1663 }
 0x2d6   :  { %v1560_v52 = vpop.permute.xlu1 %1559  ;;  %v5722_v55 = vsel %vm1665_vm0, %v1664_v27, %v3454_v22  ;;  %v1549_v28 = vsel %vm1548_vm8, %v3400_v13, %v1547_v51  ;;  %v1551_v22 = vsel %vm1548_vm8, %v1547_v51, %v3399_v21  ;;  %vm7068_vm8 = vcmp.lt.s32.totalorder %v4183_v35, 124 }
 0x2d7   :  { %v1562_v47 = vsel %vm1561_vm7, %v3395_v41, %v1560_v52  ;;  %v1564_v59 = vsel %vm1561_vm7, %v1560_v52, %v3394_v17  ;;  %v1538_v41 = vsel %vm840_vm4, %v5614_v4, %v3404_v38  ;;  %vm7066_vm7 = vmmov %vm7064_vm6 }
 0x2d8   :  { %1845 = vmatpush.msrb.mxu2 %v1562_v47  ;;  %1891 = vmatpush.msra.mxu0 %v1564_v59  ;;  %v7075_v47 = vunpack.i.h.bf16 %v5624_v39 }
 0x2da   :  { %1846 = vmatpush.msrb.mxu2 %v1549_v28  ;;  %1892 = vmatpush.msra.mxu0 %v1551_v22  ;;  %v7076_v28 = vunpack.i.l.bf16 %v5624_v39  ;;  %v7077_v22 = vunpack.i.h.bf16 %v5522_v30 }
 0x2dc   :  { %1847 = vmatpush.msrb.mxu2 %v1536_v16  ;;  %1893 = vmatpush.msra.mxu0 %v1538_v41  ;;  %v7079_v41 = vunpack.i.h.bf16 %v5622_v42 }
 0x2dd   :  { %v1510_v9 = vpop.permute.xlu0 %1509  ;;  %v1432_v13 = vpop.permute.xlu2 %1431 }
 0x2de   :  { %v1523_v17 = vpop.permute.xlu1 %1522  ;;  %v1512_v0 = vsel %vm1511_vm9, %v3415_v19, %v1510_v9  ;;  %v1514_v38 = vsel %vm1511_vm9, %v1510_v9, %v3414_v1  ;;  %vm7070_vm9 = vmmov %vm7068_vm8 }
 0x2df   :  { %v1524_v21 = vsel %vm803_vm3, %v3410_v2, %v1523_v17  ;;  %v1526_v18 = vsel %vm803_vm3, %v1523_v17, %v3409_v62  ;;  %vm7060_vm3 = vcmp.lt.s32.totalorder %v4183_v35, 77 }
 0x2e0   :  { %1848 = vmatpush.msrb.mxu2 %v1524_v21  ;;  %1894 = vmatpush.msra.mxu0 %v1526_v18  ;;  %vm7061_vm4 = vmmov %vm7060_vm3 }
 0x2e2   :  { %1849 = vmatpush.msrb.mxu2 %v1512_v0  ;;  %1895 = vmatpush.msra.mxu0 %v1514_v38  ;;  %v1712_v0 = vld [vmem:[%s7021_s4 + $0x8] sm:$0xff] }
 0x2e5   :  { %v1497_v2 = vpop.permute.xlu0 %1496  ;;  %v1625_v4 = vpop.permute.xlu2 %1624 }
 0x2e6   :  { %v1484_v15 = vpop.permute.xlu1 %1483  ;;  %v1499_v62 = vsel %vm1498_vm10, %v3420_v25, %v1497_v2  ;;  %v1501_v19 = vsel %vm1498_vm10, %v1497_v2, %v3419_v26  ;;  %v5778_v11 = vsel %vm1626_vm14, %v1625_v4, %v3484_v32  ;;  %vm7072_vm10 = vcmp.lt.s32.totalorder %v4183_v35, 125 }
 0x2e7   :  { %1850 = vmatpush.msrb.mxu2 %v1499_v62  ;;  %1896 = vmatpush.msra.mxu0 %v1501_v19  ;;  %v1486_v1 = vsel %vm1485_vm11, %v3430_v44, %v1484_v15  ;;  %v1488_v8 = vsel %vm1485_vm11, %v1484_v15, %v3429_v43  ;;  %vm7074_vm11 = vmmov %vm7072_vm10  ;;  %v1627_v9 = vsel %vm1626_vm14, %v7079_v41, %v1625_v4  ;;  %vm1600_vm14 = vcmp.lt.s32.totalorder %v4183_v35, 91  ;;  %v1966_v4 = vld [vmem:[%s7022_s6 + $0xf8] sm:$0xff]  ;;  %v1963_v19 = vld [vmem:[%s7022_s6 + $0xe0] sm:$0xff] }
 0x2e8   :  { %v1436_v51 = vsel %vm7074_vm11, %v1432_v13, %v7073_v60  ;;  %v7081_v2 = vunpack.i.l.bf16 %v5455_v6  ;;  %v1965_v6 = vld [vmem:[%s7022_s6 + $0xf0] sm:$0xff]  ;;  %v1950_v62 = vld [vmem:[%s7022_s6 + $0x78] sm:$0xff]  ;;  %v1936_v60 = vld [vmem:[%s7022_s6 + $0x8] sm:$0xff] }
 0x2e9   :  { %1851 = vmatpush.msrb.mxu2 %v1486_v1  ;;  %1897 = vmatpush.msra.mxu0 %v1488_v8  ;;  %v1962_v1 = vld [vmem:[%s7022_s6 + $0xd8] sm:$0xff]  ;;  %v1948_v8 = vld [vmem:[%s7022_s6 + $0x68] sm:$0xff]  ;;  %v1981_v35 = vld [vmem:[%s7022_s6 + $0x170] sm:$0xff] }
 0x2ea   :  { %v1972_v41 = vld [vmem:[%s7022_s6 + $0x128] sm:$0xff] }
 0x2eb   :  { %1852 = vmatpush.msrb.mxu2 %v1473_v56  ;;  %1898 = vmatpush.msra.mxu0 %v1475_v58 }
 0x2ed   :  { %v1690_v25 = vpop.permute.xlu0 %1689  ;;  %v1612_v26 = vpop.permute.xlu2 %1611 }
 0x2ee   :  { %v1677_v32 = vpop.permute.xlu1 %1676  ;;  %v1692_v3 = vsel %vm7060_vm3, %v3435_v29, %v1690_v25  ;;  %v1694_v24 = vsel %vm7061_vm4, %v1690_v25, %v3434_v31  ;;  %v5798_v44 = vsel %vm1613_vm13, %v1612_v26, %v3494_v10  ;;  %v1666_v29 = vsel %vm1665_vm0, %v3455_v61, %v1664_v27  ;;  %v1711_v31 = vld [vmem:[%s7021_s4] sm:$0xff]  ;;  %v1982_v25 = vld [vmem:[%s7022_s6 + $0x178] sm:$0xff] }
 0x2ef   :  { %1874 = vmatpush.msra.mxu3 %v1692_v3  ;;  %v1679_v43 = vsel %vm7062_vm5, %v3445_v5, %v1677_v32  ;;  %v7065_v5 = vunpack.i.l.bf16 %v5591_v46  ;;  %1813 = vmatmul.f32.vlgmr.msrb.gmra.mxu0 %v1711_v31  ;;  %v7067_v61 = vunpack.i.h.bf16 %v5483_v57  ;;  %v7069_v10 = vunpack.i.l.bf16 %v5483_v57  ;;  %v5838_v57 = vld [vmem:[%s7021_s4 + $0x10] sm:$0xff]  ;;  %v1946_v3 = vld [vmem:[%s7022_s6 + $0x58] sm:$0xff] }
 0x2f0   :  { %v7071_v46 = vunpack.i.h.bf16 %v5581_v7  ;;  %v1614_v39 = vsel %vm1613_vm13, %v3495_v14, %v1612_v26  ;;  %vm1790_vm0 = vcmask 588800   ;;  %v1961_v26 = vld [vmem:[%s7022_s6 + $0xd0] sm:$0xff]  ;;  %vm2944_vm13 = vcmask 982016  }
 0x2f1   :  { %1875 = vmatpush.msra.mxu3 %v1679_v43  ;;  %v1945_v43 = vld [vmem:[%s7022_s6 + $0x50] sm:$0xff]  ;;  %vm3039_vm3 = vcmask 1043456   ;;  %vm3032_vm4 = vcmask 490496  }
 0x2f2   :  { %v1434_v12 = vsel %vm7072_vm10, %v7071_v46, %v1432_v13  ;;  %v1938_v46 = vld [vmem:[%s7022_s6 + $0x18] sm:$0xff] }
 0x2f3   :  { %1876 = vmatpush.msra.mxu3 %v1666_v29  ;;  %v1959_v29 = vld [vmem:[%s7022_s6 + $0xc0] sm:$0xff] }
 0x2f5   :  { %v1458_v53 = vpop.permute.xlu0 %1457 }
 0x2f6   :  { %v1445_v58 = vpop.permute.xlu1 %1444  ;;  %v1460_v23 = vsel %vm7064_vm6, %v7063_v36, %v1458_v53  ;;  %v1462_v37 = vsel %vm7066_vm7, %v1458_v53, %v7065_v5  ;;  %v1979_v53 = vld [vmem:[%s7022_s6 + $0x160] sm:$0xff]  ;;  %v1978_v36 = vld [vmem:[%s7022_s6 + $0x158] sm:$0xff]  ;;  %v1957_v5 = vld [vmem:[%s7022_s6 + $0xb0] sm:$0xff]  ;;  %vm3068_vm6 = vcmask 9216  }
 0x2f7   :  { %1853 = vmatpush.msrb.mxu2 %v1460_v23  ;;  %1899 = vmatpush.msra.mxu0 %v1462_v37  ;;  %v1447_v56 = vsel %vm7068_vm8, %v7067_v61, %v1445_v58  ;;  %v1449_v34 = vsel %vm7070_vm9, %v1445_v58, %v7069_v10  ;;  %v1958_v58 = vld [vmem:[%s7022_s6 + $0xb8] sm:$0xff]  ;;  %v1943_v23 = vld [vmem:[%s7022_s6 + $0x40] sm:$0xff]  ;;  %v1977_v37 = vld [vmem:[%s7022_s6 + $0x150] sm:$0xff] }
 0x2f8   :  { %1816 = vmatmul.f32.gmra.mxu0 %v5838_v57  ;;  %v1942_v61 = vld [vmem:[%s7022_s6 + $0x38] sm:$0xff]  ;;  %v1940_v10 = vld [vmem:[%s7022_s6 + $0x28] sm:$0xff] }
 0x2f9   :  { %1854 = vmatpush.msrb.mxu2 %v1447_v56  ;;  %1900 = vmatpush.msra.mxu0 %v1449_v34  ;;  %v1941_v56 = vld [vmem:[%s7022_s6 + $0x30] sm:$0xff]  ;;  %v1939_v34 = vld [vmem:[%s7022_s6 + $0x20] sm:$0xff] }
 0x2fb   :  { %1855 = vmatpush.msrb.mxu2 %v1434_v12  ;;  %1901 = vmatpush.msra.mxu0 %v1436_v51  ;;  %v1937_v12 = vld [vmem:[%s7022_s6 + $0x10] sm:$0xff]  ;;  %v1956_v51 = vld [vmem:[%s7022_s6 + $0xa8] sm:$0xff] }
 0x2fd   :  { %v1651_v27 = vpop.permute.xlu0 %1650 }
 0x2fe   :  { %v1638_v52 = vpop.permute.xlu1 %1637  ;;  %v1653_v59 = vsel %vm1652_vm1, %v7075_v47, %v1651_v27  ;;  %v1655_v7 = vsel %vm1652_vm1, %v1651_v27, %v7076_v28  ;;  %v1935_v27 = vld [vmem:[%s7022_s6] sm:$0xff]  ;;  %v1974_v28 = vld [vmem:[%s7022_s6 + $0x138] sm:$0xff]  ;;  %vm2765_vm1 = vcmask 261120  }
 0x2ff   :  { %1877 = vmatpush.msra.mxu3 %v1653_v59  ;;  %v1640_v16 = vsel %vm7078_vm12, %v7077_v22, %v1638_v52  ;;  %v1975_v47 = vld [vmem:[%s7022_s6 + $0x140] sm:$0xff]  ;;  %v1954_v59 = vld [vmem:[%s7022_s6 + $0x98] sm:$0xff]  ;;  %v1973_v22 = vld [vmem:[%s7022_s6 + $0x130] sm:$0xff] }
 0x301   :  { %1878 = vmatpush.msra.mxu3 %v1640_v16  ;;  %v1952_v16 = vld [vmem:[%s7022_s6 + $0x88] sm:$0xff] }
 0x303   :  { %1879 = vmatpush.msra.mxu3 %v1627_v9  ;;  %v1951_v9 = vld [vmem:[%s7022_s6 + $0x80] sm:$0xff] }
 0x305   :  { %v1419_v13 = vpop.permute.xlu0 %1418  ;;  %1880 = vmatpush.msra.mxu3 %v1614_v39  ;;  %v1971_v39 = vld [vmem:[%s7022_s6 + $0x120] sm:$0xff] }
 0x306   :  { %v3498_v17 = vpop.permute.xlu1 %3497  ;;  %v1421_v21 = vsel %vm1420_vm15, %v3480_v20, %v1419_v13  ;;  %v1423_v42 = vsel %vm1420_vm15, %v1419_v13, %v3479_v54  ;;  %vm7082_vm15 = vmmov %vm7062_vm5  ;;  %v1970_v13 = vld [vmem:[%s7022_s6 + $0x118] sm:$0xff]  ;;  %vm3066_vm5 = vcmask 15360  }
 0x307   :  { %v3500_v18 = vunpack.i.h.bf16 %v3498_v17  ;;  %v3499_v33 = vunpack.i.l.bf16 %v3498_v17  ;;  %1856 = vmatpush.msrb.mxu2 %v1421_v21  ;;  %1902 = vmatpush.msra.mxu0 %v1423_v42  ;;  %v1969_v17 = vld [vmem:[%s7022_s6 + $0x110] sm:$0xff]  ;;  %v1968_v42 = vld [vmem:[%s7022_s6 + $0x108] sm:$0xff] }
 0x309   :  { %v1602_v14 = vsel %vm1600_vm14, %v3499_v33, %v3500_v18 }
 0x30a   :  { %1835 = vmatpush.msra.mxu1 %v1602_v14  ;;  %v1984_v14 = vld [vmem:[%s7023_s5 + $0x8] sm:$0xff] }
 0x30b   :  { %3092 = vmatmul.msk.f32.vlgmr.msra.gmra.mxu1 %vm1790_vm0, %v1712_v0  ;;  %1992 = vperm.xlu2 %3502, %v1984_v14   ;;  %v2896_v14 = vld [vmem:[%s7026_s12] sm:$0xff] }
 0x30c   :  { %1919 = vmatpush.msrb.mxu1 %v5661_v45  ;;  %v1681_v45 = vsel %vm7082_vm15, %v1677_v32, %v7081_v2  ;;  %v1947_v32 = vld [vmem:[%s7022_s6 + $0x60] sm:$0xff] }
 0x30d   :  { %v1407_v54 = vpop.permute.xlu0 %1406 }
 0x30e   :  { %1920 = vmatpush.msrb.mxu1 %v1694_v24  ;;  %v1408_v20 = vsel %vm766_vm2, %v3490_v63, %v1407_v54  ;;  %v1410_v38 = vsel %vm766_vm2, %v1407_v54, %v7080_v48  ;;  %vm7084_vm2 = vmmov %vm7078_vm12  ;;  %v1960_v24 = vld [vmem:[%s7022_s6 + $0xc8] sm:$0xff] }
 0x30f   :  { %1857 = vmatpush.msrb.mxu2 %v1408_v20  ;;  %1903 = vmatpush.msra.mxu0 %v1410_v38 }
 0x310   :  { %1921 = vmatpush.msrb.mxu1 %v1681_v45 }
 0x311   :  { %1858 = vmatpush.msrb.mxu2 %v5325_v50  ;;  %1904 = vmatpush.msra.mxu0 %v5375_v40  ;;  %v1964_v50 = vld [vmem:[%s7022_s6 + $0xe8] sm:$0xff]  ;;  %v7083_v40 = vunpack.i.l.bf16 %v5522_v30  ;;  %v1949_v30 = vld [vmem:[%s7022_s6 + $0x70] sm:$0xff] }
 0x312   :  { %1922 = vmatpush.msrb.mxu1 %v5722_v55  ;;  %1859 = vmatmul.f32.vlgmr.msrb.gmra.mxu2 %v1711_v31 }
 0x313   :  { %1905 = vmatmul.f32.vlgmr.msra.gmra.mxu0 %v1711_v31  ;;  %2018 = vmatpush.msra.mxu2 %v1966_v4  ;;  %v1642_v55 = vsel %vm7084_vm2, %v1638_v52, %v7083_v40  ;;  %v1944_v31 = vld [vmem:[%s7022_s6 + $0x48] sm:$0xff]  ;;  %v1955_v52 = vld [vmem:[%s7022_s6 + $0xa0] sm:$0xff] }
 0x314   :  { %1923 = vmatpush.msrb.mxu1 %v1655_v7  ;;  %v1953_v7 = vld [vmem:[%s7022_s6 + $0x90] sm:$0xff] }
 0x315   :  { %v1599_v63 = vpop.permute.xlu0 %1598  ;;  %3093 = vmatmul.msk.f32.gmra.mxu1 %vm1790_vm0, %v1714_v49  ;;  %2019 = vmatpush.msra.mxu2 %v1965_v6 }
 0x316   :  { %1924 = vmatpush.msrb.mxu1 %v1642_v55  ;;  %v1601_v15 = vsel %vm1600_vm14, %v3500_v18, %v1599_v63  ;;  %v1967_v18 = vld [vmem:[%s7022_s6 + $0x100] sm:$0xff] }
 0x317   :  { %1881 = vmatpush.msra.mxu3 %v1601_v15  ;;  %2020 = vmatpush.msra.mxu2 %v1964_v50 }
 0x318   :  { %3094 = vmatmul.msk.f32.vlgmr.msra.gmra.mxu3 %vm1790_vm0, %v1712_v0  ;;  %1925 = vmatpush.msrb.mxu1 %v5778_v11  ;;  %v1603_v11 = vsel %vm1600_vm14, %v1599_v63, %v3499_v33  ;;  %v1983_v33 = vld [vmem:[%s7023_s5] sm:$0xff]  ;;  %s3528_s5 = smov 119  }
 0x319   :  { %1995 = vmatpush.msrb.mxu3 %v1950_v62  ;;  %2021 = vmatpush.msra.mxu2 %v1963_v19 }
 0x31a   :  { %1926 = vmatpush.msrb.mxu1 %v5798_v44  ;;  %1862 = vmatmul.f32.gmra.mxu2 %v5838_v57  ;;  %v1980_v44 = vld [vmem:[%s7022_s6 + $0x168] sm:$0xff] }
 0x31b   :  { %1908 = vmatmul.f32.gmra.mxu0 %v5838_v57  ;;  %1996 = vmatpush.msrb.mxu3 %v1949_v30  ;;  %v1976_v57 = vld [vmem:[%s7022_s6 + $0x148] sm:$0xff]  ;;  %s3529_s6 = smov 120  }
 0x31c   :  { %1927 = vmatpush.msrb.mxu1 %v1603_v11  ;;  %2022 = vmatpush.msra.mxu2 %v1962_v1 }
 0x31d   :  { %3096 = vmatmul.msk.f32.vlgmr.msrb.gmra.mxu1 %vm1790_vm0, %v1712_v0  ;;  %1997 = vmatpush.msrb.mxu3 %v1948_v8 }
 0x31e   :  { %2041 = vmatpush.msra.mxu1 %v1982_v25  ;;  %2023 = vmatpush.msra.mxu2 %v1961_v26 }
 0x31f   :  { %1998 = vmatpush.msrb.mxu3 %v1947_v32  ;;  %1987 = vperm.xlu1 %3501, %v1983_v33   ;;  %v3020_v33 = vld [vmem:[%s7027_s14] sm:$0xff] }
 0x320   :  { %3095 = vmatmul.msk.f32.gmra.mxu3 %vm1790_vm0, %v1714_v49  ;;  %2042 = vmatpush.msra.mxu1 %v1981_v35 }
 0x321   :  { %1999 = vmatpush.msrb.mxu3 %v1946_v3  ;;  %2024 = vmatpush.msra.mxu2 %v1960_v24 }
 0x322   :  { %2043 = vmatpush.msra.mxu1 %v1980_v44 }
 0x323   :  { %2000 = vmatpush.msrb.mxu3 %v1945_v43  ;;  %2025 = vmatpush.msra.mxu2 %v1959_v29 }
 0x324   :  { %2044 = vmatpush.msra.mxu1 %v1979_v53 }
 0x325   :  { %3097 = vmatmul.msk.f32.gmra.mxu1 %vm1790_vm0, %v1714_v49  ;;  %2001 = vmatpush.msrb.mxu3 %v1944_v31 }
 0x326   :  { %2026 = vmatpush.msra.mxu2 %v1958_v58  ;;  %2045 = vmatpush.msra.mxu1 %v1978_v36  ;;  %v2687_v36 = vld [vmem:[%s7024_s9 + $0x60] sm:$0xff] }
 0x327   :  { %2002 = vmatpush.msrb.mxu3 %v1943_v23  ;;  %v2688_v23 = vld [vmem:[%s7024_s9 + $0x68] sm:$0xff] }
 0x328   :  { %2027 = vmatpush.msra.mxu2 %v1957_v5  ;;  %2046 = vmatpush.msra.mxu1 %v1977_v37  ;;  %v2689_v5 = vld [vmem:[%s7024_s9 + $0x70] sm:$0xff]  ;;  %v2684_v37 = vld [vmem:[%s7024_s9 + $0x48] sm:$0xff] }
 0x329   :  { %2003 = vmatpush.msrb.mxu3 %v1942_v61  ;;  %v2685_v61 = vld [vmem:[%s7024_s9 + $0x50] sm:$0xff] }
 0x32a   :  { %2028 = vmatpush.msra.mxu2 %v1956_v51  ;;  %2047 = vmatpush.msra.mxu1 %v1976_v57  ;;  %v2680_v51 = vld [vmem:[%s7024_s9 + $0x28] sm:$0xff]  ;;  %v2675_v57 = vld [vmem:[%s7024_s9] sm:$0xff] }
 0x32b   :  { %2004 = vmatpush.msrb.mxu3 %v1941_v56  ;;  %v2686_v56 = vld [vmem:[%s7024_s9 + $0x58] sm:$0xff] }
 0x32c   :  { %2029 = vmatpush.msra.mxu2 %v1955_v52  ;;  %2048 = vmatpush.msra.mxu1 %v1975_v47  ;;  %v2677_v52 = vld [vmem:[%s7024_s9 + $0x10] sm:$0xff]  ;;  %v2081_v47 = vld [vmem:[%s7025_s7 + $0x78] sm:$0xff] }
 0x32d   :  { %2005 = vmatpush.msrb.mxu3 %v1940_v10  ;;  %v2681_v10 = vld [vmem:[%s7024_s9 + $0x30] sm:$0xff]  ;;  %2100 = vmatpush.msrb.mxu0 %v2081_v47 }
 0x32e   :  { %2030 = vmatpush.msra.mxu2 %v1954_v59  ;;  %2049 = vmatpush.msra.mxu1 %v1974_v28  ;;  %v2901_v59 = vld [vmem:[%s7026_s12 + $0x28] sm:$0xff]  ;;  %v2902_v28 = vld [vmem:[%s7026_s12 + $0x30] sm:$0xff] }
 0x32f   :  { %2006 = vmatpush.msrb.mxu3 %v1939_v34  ;;  %v2682_v34 = vld [vmem:[%s7024_s9 + $0x38] sm:$0xff] }
 0x330   :  { %2031 = vmatpush.msra.mxu2 %v1953_v7  ;;  %2050 = vmatpush.msra.mxu1 %v1973_v22  ;;  %v2903_v7 = vld [vmem:[%s7026_s12 + $0x38] sm:$0xf]  ;;  %v2080_v22 = vld [vmem:[%s7025_s7 + $0x70] sm:$0xff] }
 0x331   :  { %2007 = vmatpush.msrb.mxu3 %v1938_v46  ;;  %v2683_v46 = vld [vmem:[%s7024_s9 + $0x40] sm:$0xff]  ;;  %2101 = vmatpush.msrb.mxu0 %v2080_v22  ;;  %v3173_v22 = vld [vmem:[%s7029_s8 + $0x2d0] sm:$0xff] }
 0x332   :  { %2032 = vmatpush.msra.mxu2 %v1952_v16  ;;  %2051 = vmatpush.msra.mxu1 %v1972_v41  ;;  %v2079_v16 = vld [vmem:[%s7025_s7 + $0x68] sm:$0xff]  ;;  %v2078_v41 = vld [vmem:[%s7025_s7 + $0x60] sm:$0xff] }
 0x333   :  { %2008 = vmatpush.msrb.mxu3 %v1937_v12  ;;  %v2678_v12 = vld [vmem:[%s7024_s9 + $0x18] sm:$0xff]  ;;  %2102 = vmatpush.msrb.mxu0 %v2079_v16  ;;  %v3188_v16 = vld [vmem:[%s7029_s8 + $0x348] sm:$0xff] }
 0x334   :  { %2033 = vmatpush.msra.mxu2 %v1951_v9  ;;  %2052 = vmatpush.msra.mxu1 %v1971_v39  ;;  %v2898_v9 = vld [vmem:[%s7026_s12 + $0x10] sm:$0xff]  ;;  %v2899_v39 = vld [vmem:[%s7026_s12 + $0x18] sm:$0xff] }
 0x335   :  { %2009 = vmatpush.msrb.mxu3 %v1936_v60  ;;  %v2679_v60 = vld [vmem:[%s7024_s9 + $0x20] sm:$0xff]  ;;  %2103 = vmatpush.msrb.mxu0 %v2078_v41  ;;  %v3134_v41 = vld [vmem:[%s7029_s8 + $0x198] sm:$0xff] }
 0x336   :  { %2053 = vmatpush.msra.mxu1 %v1970_v13  ;;  %v2900_v13 = vld [vmem:[%s7026_s12 + $0x20] sm:$0xff] }
 0x337   :  { %2010 = vmatpush.msrb.mxu3 %v1935_v27  ;;  %v2676_v27 = vld [vmem:[%s7024_s9 + $0x8] sm:$0xff] }
 0x338   :  { %2054 = vmatpush.msra.mxu1 %v1969_v17  ;;  %v2077_v17 = vld [vmem:[%s7025_s7 + $0x58] sm:$0xff] }
 0x339   :  { %2104 = vmatpush.msrb.mxu0 %v2077_v17 }
 0x33a   :  { %2055 = vmatpush.msra.mxu1 %v1968_v42  ;;  %v2075_v42 = vld [vmem:[%s7025_s7 + $0x48] sm:$0xff] }
 0x33c   :  { %2056 = vmatpush.msra.mxu1 %v1967_v18  ;;  %v2074_v18 = vld [vmem:[%s7025_s7 + $0x40] sm:$0xff] }
 0x365   :  { %v1993_v35 = vpop.permute.xlu2 %1992 }
 0x36c   :  { %v1814_v21 = vpop.f32.mrf.mxu0 }
 0x375   :  { %v1817_v20 = vpop.f32.mrf.mxu0 }
 0x388   :  { %v1837_v0 = vpop.f32.mrf.mxu1 }
 0x389   :  { %v1838_v54 = vadd.f32 %v1837_v0, %v1814_v21  ;;  %v2076_v21 = vld [vmem:[%s7025_s7 + $0x50] sm:$0xff]  ;;  %v2897_v0 = vld [vmem:[%s7026_s12 + $0x8] sm:$0xff] }
 0x38a   :  { %2105 = vmatpush.msrb.mxu0 %v2076_v21 }
 0x38b   :  { %2011 = vmatmul.f32.vlgmr.msrb.gmra.mxu3 %v1838_v54  ;;  %v2073_v54 = vld [vmem:[%s7025_s7 + $0x38] sm:$0xff] }
 0x38c   :  { %2106 = vmatpush.msrb.mxu0 %v2075_v42 }
 0x38e   :  { %2107 = vmatpush.msrb.mxu0 %v2074_v18 }
 0x390   :  { %v1906_v2 = vpop.f32.mrf.mxu0  ;;  %2108 = vmatpush.msrb.mxu0 %v2073_v54 }
 0x391   :  { %v1988_v1 = vpop.permute.xlu1 %1987 }
 0x392   :  { %v1840_v48 = vpop.f32.mrf.mxu1 }
 0x393   :  { %v1841_v38 = vadd.f32 %v1840_v48, %v1817_v20  ;;  %v2072_v20 = vld [vmem:[%s7025_s7 + $0x30] sm:$0xff]  ;;  %v2071_v48 = vld [vmem:[%s7025_s7 + $0x28] sm:$0xff] }
 0x394   :  { %2109 = vmatpush.msrb.mxu0 %v2072_v20 }
 0x395   :  { %2014 = vmatmul.f32.gmra.mxu3 %v1841_v38  ;;  %v1860_v45 = vpop.f32.mrf.mxu2  ;;  %v2070_v38 = vld [vmem:[%s7025_s7 + $0x20] sm:$0xff] }
 0x396   :  { %2110 = vmatpush.msrb.mxu0 %v2071_v48 }
 0x398   :  { %v1909_v63 = vpop.f32.mrf.mxu0  ;;  %2111 = vmatpush.msrb.mxu0 %v2070_v38 }
 0x39a   :  { %v1929_v4 = vpop.f32.mrf.mxu1 }
 0x39b   :  { %v1883_v49 = vpop.f32.mrf.mxu3  ;;  %v1930_v6 = vadd.f32 %v1929_v4, %v1906_v2  ;;  %v3021_v2 = vld [vmem:[%s7027_s14 + $0x8] sm:$0x3]  ;;  %v2068_v4 = vld [vmem:[%s7025_s7 + $0x10] sm:$0xff] }
 0x39c   :  { %v1884_v50 = vadd.f32 %v1883_v49, %v1860_v45  ;;  %v2069_v45 = vld [vmem:[%s7025_s7 + $0x18] sm:$0xff]  ;;  %v2067_v49 = vld [vmem:[%s7025_s7 + $0x8] sm:$0xff] }
 0x39d   :  { %2057 = vmatmul.f32.vlgmr.msra.gmra.mxu1 %v1930_v6  ;;  %v1863_v40 = vpop.f32.mrf.mxu2  ;;  %2112 = vmatpush.msrb.mxu0 %v2069_v45  ;;  %v2066_v6 = vld [vmem:[%s7025_s7] sm:$0xff] }
 0x39e   :  { %2034 = vmatmul.f32.vlgmr.msra.gmra.mxu2 %v1884_v50  ;;  %v3179_v45 = vld [vmem:[%s7029_s8 + $0x300] sm:$0xff] }
 0x39f   :  { %2113 = vmatpush.msrb.mxu0 %v2068_v4 }
 0x3a1   :  { %2114 = vmatpush.msrb.mxu0 %v2067_v49 }
 0x3a2   :  { %v1932_v55 = vpop.f32.mrf.mxu1 }
 0x3a3   :  { %v1886_v15 = vpop.f32.mrf.mxu3  ;;  %v1933_v62 = vadd.f32 %v1932_v55, %v1909_v63  ;;  %2115 = vmatpush.msrb.mxu0 %v2066_v6 }
 0x3a4   :  { %v1887_v19 = vadd.f32 %v1886_v15, %v1863_v40 }
 0x3a5   :  { %2060 = vmatmul.f32.gmra.mxu1 %v1933_v62 }
 0x3a6   :  { %2037 = vmatmul.f32.gmra.mxu2 %v1887_v19 }
 0x40e   :  { %v2012_v30 = vpop.f32.mrf.mxu3 }
 0x40f   :  { %v2013_v11 = vadd.f32 %v2012_v30, %v1988_v1 }
 0x418   :  { %v2015_v3 = vpop.f32.mrf.mxu3 }
 0x419   :  { %v2016_v44 = vadd.f32 %v2015_v3, %v1993_v35  ;;  %v2672_v35 = vld [vmem:[%s7028_s10 + $0x8] sm:$0xff]  ;;  %v2671_v3 = vld [vmem:[%s7028_s10] sm:$0xff] }
 0x41a   :  { %v2058_v8 = vpop.f32.mrf.mxu1 }
 0x421   :  { %v2035_v25 = vpop.f32.mrf.mxu2 }
 0x422   :  { %v2036_v26 = vadd.f32 %v2035_v25, %v2013_v11  ;;  %v2061_v29 = vpop.f32.mrf.mxu1 }
 0x424   :  { %v2059_v32 = vadd.f32 %v2058_v8, %v2036_v26  ;;  %v2674_v26 = vld [vmem:[%s7028_s10 + $0x18] sm:$0xff] }
 0x425   :  { %3289 = vmatpush.msra.mxu3 %v2674_v26  ;;  %2823 = vmatpush.msra.mxu0 %v2674_v26  ;;  %v3233_v26 = vld [vmem:[%s7029_s8 + $0x4b0] sm:$0xff] }
 0x426   :  { %v6062_v24 = vmax.f32 %v2059_v32, 0.0  ;;  %v2673_v32 = vld [vmem:[%s7028_s10 + $0x10] sm:$0xff] }
 0x427   :  { %3290 = vmatpush.msra.mxu3 %v2673_v32  ;;  %2824 = vmatpush.msra.mxu0 %v2673_v32 }
 0x428   :  { %2094 = vrot.lane.b32.xlu2 %v6062_v24, %s3528_s5  ;;  %2088 = vrot.lane.b32.xlu1 %v6062_v24, %s3529_s6 }
 0x429   :  { %2082 = vrot.lane.b32.xlu0 %v6062_v24, %s3505_s29  ;;  %v2038_v43 = vpop.f32.mrf.mxu2  ;;  %3291 = vmatpush.msra.mxu3 %v2672_v35 }
 0x42a   :  { %v2039_v53 = vadd.f32 %v2038_v43, %v2016_v44  ;;  %2825 = vmatpush.msra.mxu0 %v2672_v35  ;;  %v2123_v44 = vld [vmem:[%s7029_s8] sm:$0xff]  ;;  %v3098_v43 = vld [vmem:[%s7029_s8 + $0x78] sm:$0xff] }
 0x42b   :  { %3292 = vmatpush.msra.mxu3 %v2671_v3 }
 0x42c   :  { %v2062_v31 = vadd.f32 %v2061_v29, %v2039_v53  ;;  %2826 = vmatpush.msra.mxu0 %v2671_v3 }
 0x42e   :  { %v6068_v58 = vmax.f32 %v2062_v31, 0.0 }
 0x430   :  { %2096 = vrot.lane.b32.xlu2 %v6068_v58, %s3528_s5  ;;  %2090 = vrot.lane.b32.xlu1 %v6068_v58, %s3529_s6 }
 0x431   :  { %2084 = vrot.lane.b32.xlu0 %v6068_v58, %s3505_s29 }
 0x438   :  { %2752 = vperm.xlu2 %3502, %v2687_v36   ;;  %2757 = vperm.xlu1 %3501, %v2688_v23   ;;  %v2129_v36 = vld [vmem:[%s7029_s8 + $0x30] sm:$0xff]  ;;  %v3104_v23 = vld [vmem:[%s7029_s8 + $0xa8] sm:$0xff] }
 0x439   :  { %2762 = vperm.xlu0 %3320, %v2689_v5  }
 0x440   :  { %2737 = vperm.xlu2 %3502, %v2684_v37   ;;  %2742 = vperm.xlu1 %3501, %v2685_v61  }
 0x441   :  { %2747 = vperm.xlu0 %3320, %v2686_v56   ;;  %v3128_v56 = vld [vmem:[%s7029_s8 + $0x168] sm:$0xff] }
 0x448   :  { %2722 = vperm.xlu2 %3502, %v2681_v10   ;;  %2727 = vperm.xlu1 %3501, %v2682_v34  }
 0x449   :  { %2732 = vperm.xlu0 %3320, %v2683_v46  }
 0x450   :  { %2707 = vperm.xlu2 %3502, %v2678_v12   ;;  %2712 = vperm.xlu1 %3501, %v2679_v60   ;;  %v3143_v60 = vld [vmem:[%s7029_s8 + $0x1e0] sm:$0xff] }
 0x451   :  { %2717 = vperm.xlu0 %3320, %v2680_v51   ;;  %v2124_v51 = vld [vmem:[%s7029_s8 + $0x8] sm:$0xff] }
 0x458   :  { %2692 = vperm.xlu2 %3502, %v2675_v57   ;;  %2697 = vperm.xlu1 %3501, %v2676_v27  }
 0x459   :  { %2702 = vperm.xlu0 %3320, %v2677_v52   ;;  %v3158_v52 = vld [vmem:[%s7029_s8 + $0x258] sm:$0xff] }
 0x460   :  { %2931 = vperm.xlu2 %3502, %v2901_v59   ;;  %2936 = vperm.xlu1 %3501, %v2902_v28   ;;  %v3119_v28 = vld [vmem:[%s7029_s8 + $0x120] sm:$0xff] }
 0x461   :  { %2941 = vperm.xlu0 %3320, %v2903_v7   ;;  %v3099_v7 = vld [vmem:[%s7029_s8 + $0x80] sm:$0xff] }
 0x468   :  { %2916 = vperm.xlu2 %3502, %v2898_v9   ;;  %2921 = vperm.xlu1 %3501, %v2899_v39  }
 0x469   :  { %2926 = vperm.xlu0 %3320, %v2900_v13   ;;  %v3149_v13 = vld [vmem:[%s7029_s8 + $0x210] sm:$0xff] }
 0x470   :  { %3024 = vperm.xlu2 %3502, %v3020_v33   ;;  %2906 = vperm.xlu1 %3501, %v2896_v14  }
 0x471   :  { %2911 = vperm.xlu0 %3320, %v2897_v0   ;;  %v3114_v0 = vld [vmem:[%s7029_s8 + $0xf8] sm:$0xff] }
 0x479   :  { %3029 = vperm.xlu0 %3320, %v3021_v2   ;;  %v3164_v2 = vld [vmem:[%s7029_s8 + $0x288] sm:$0xff] }
 0x482   :  { %v2095_v55 = vpop.permute.xlu2 %2094 }
 0x48a   :  { %v2097_v11 = vpop.permute.xlu2 %2096 }
 0x49a   :  { %v2089_v50 = vpop.permute.xlu1 %2088 }
 0x49b   :  { %v2083_v63 = vpop.permute.xlu0 %2082 }
 0x49c   :  { %v2086_v40 = vmax.f32 %v6062_v24, %v2083_v63 }
 0x49e   :  { %v2092_v15 = vmax.f32 %v2086_v40, %v2089_v50  ;;  %v3194_v50 = vld [vmem:[%s7029_s8 + $0x378] sm:$0xff]  ;;  %v3129_v40 = vld [vmem:[%s7029_s8 + $0x170] sm:$0xff] }
 0x4a0   :  { %v2098_v62 = vmax.f32 %v2092_v15, %v2095_v55 }
 0x4a2   :  { %2116 = vmatmul.f32.vlgmr.msrb.gmra.mxu0 %v2098_v62  ;;  %v2091_v1 = vpop.permute.xlu1 %2090 }
 0x4a3   :  { %v2085_v19 = vpop.permute.xlu0 %2084 }
 0x4a4   :  { %v2087_v30 = vmax.f32 %v6068_v58, %v2085_v19  ;;  %v3113_v58 = vld [vmem:[%s7029_s8 + $0xf0] sm:$0xff] }
 0x4a6   :  { %v2093_v8 = vmax.f32 %v2087_v30, %v2091_v1  ;;  %v3144_v30 = vld [vmem:[%s7029_s8 + $0x1e8] sm:$0xff]  ;;  %v3159_v1 = vld [vmem:[%s7029_s8 + $0x260] sm:$0xff] }
 0x4a8   :  { %v2099_v25 = vmax.f32 %v2093_v8, %v2097_v11  ;;  %v3203_v11 = vld [vmem:[%s7029_s8 + $0x3c0] sm:$0xff] }
 0x4aa   :  { %2119 = vmatmul.f32.gmra.mxu0 %v2099_v25  ;;  %v3218_v25 = vld [vmem:[%s7029_s8 + $0x438] sm:$0xff] }
 0x51f   :  { %v2117_v24 = vpop.f32.mrf.mxu0 }
 0x520   :  { %v6217_v29 = vperm.slane %v2117_v24, 0  ;;  %v6219_v53 = vperm.slane %v2117_v24, 1  ;;  %v6221_v31 = vperm.slane %v2117_v24, 2  ;;  %v6232_v5 = vperm.slane %v2117_v24, 3 }
 0x521   :  { %v6239_v10 = vperm.slane %v2117_v24, 4  ;;  %v6241_v34 = vperm.slane %v2117_v24, 5  ;;  %v6243_v46 = vperm.slane %v2117_v24, 6  ;;  %v6245_v12 = vperm.slane %v2117_v24, 7 }
 0x522   :  { %v2139_v37 = vmul.f32 %v6217_v29, %v2123_v44  ;;  %v2171_v61 = vmul.f32 %v3098_v43, %v6219_v53  ;;  %v2218_v27 = vmul.f32 %v3113_v58, %v6221_v31  ;;  %v2145_v47 = vmul.f32 %v6217_v29, %v2129_v36  ;;  %v2130_v36 = vld [vmem:[%s7029_s8 + $0x38] sm:$0xff] }
 0x523   :  { %v2177_v59 = vmul.f32 %v3104_v23, %v6219_v53  ;;  %v2140_v17 = vmul.f32 %v6217_v29, %v2124_v51  ;;  %v2265_v42 = vmul.f32 %v3128_v56, %v6232_v5  ;;  %v2312_v18 = vmul.f32 %v3143_v60, %v6239_v10  ;;  %v3105_v23 = vld [vmem:[%s7029_s8 + $0xb0] sm:$0xff]  ;;  %v3224_v51 = vld [vmem:[%s7029_s8 + $0x468] sm:$0xff] }
 0x524   :  { %v2186_v57 = vadd.f32 %v2171_v61, %v2139_v37  ;;  %v2224_v33 = vmul.f32 %v3119_v28, %v6221_v31  ;;  %v2172_v14 = vmul.f32 %v3099_v7, %v6219_v53  ;;  %v2359_v54 = vmul.f32 %v3158_v52, %v6241_v34  ;;  %v3248_v61 = vld [vmem:[%s7029_s8 + $0x528] sm:$0xff]  ;;  %v3209_v60 = vld [vmem:[%s7029_s8 + $0x3f0] sm:$0xff] }
 0x525   :  { %v2192_v39 = vadd.f32 %v2177_v59, %v2145_v47  ;;  %v2406_v20 = vmul.f32 %v3173_v22, %v6243_v46  ;;  %v2453_v48 = vmul.f32 %v3188_v16, %v6245_v12  ;;  %v2271_v38 = vmul.f32 %v3134_v41, %v6232_v5  ;;  %v3120_v7 = vld [vmem:[%s7029_s8 + $0x128] sm:$0xff]  ;;  %v3239_v41 = vld [vmem:[%s7029_s8 + $0x4e0] sm:$0xff] }
 0x526   :  { %v2233_v9 = vadd.f32 %v2218_v27, %v2186_v57  ;;  %v2318_v6 = vmul.f32 %v3149_v13, %v6239_v10  ;;  %v2187_v63 = vadd.f32 %v2172_v14, %v2140_v17  ;;  %v2219_v19 = vmul.f32 %v3114_v0, %v6221_v31  ;;  %v3135_v14 = vld [vmem:[%s7029_s8 + $0x1a0] sm:$0xff] }
 0x527   :  { %v2120_v21 = vpop.f32.mrf.mxu0  ;;  %v2239_v49 = vadd.f32 %v2224_v33, %v2192_v39  ;;  %v2365_v35 = vmul.f32 %v3164_v2, %v6241_v34  ;;  %v2412_v3 = vmul.f32 %v3179_v45, %v6243_v46  ;;  %v2459_v44 = vmul.f32 %v3194_v50, %v6245_v12  ;;  %v3174_v39 = vld [vmem:[%s7029_s8 + $0x2d8] sm:$0xff] }
 0x528   :  { %v2280_v4 = vadd.f32 %v2265_v42, %v2233_v9  ;;  %v6302_v55 = vperm.slane %v2120_v21, 0  ;;  %v6304_v15 = vperm.slane %v2120_v21, 1  ;;  %v6306_v62 = vperm.slane %v2120_v21, 2  ;;  %v3254_v9 = vld [vmem:[%s7029_s8 + $0x558] sm:$0xff] }
 0x529   :  { %v2286_v32 = vadd.f32 %v2271_v38, %v2239_v49  ;;  %v6326_v24 = vperm.slane %v2120_v21, 3  ;;  %v2234_v43 = vadd.f32 %v2219_v19, %v2187_v63  ;;  %v2266_v58 = vmul.f32 %v3129_v40, %v6232_v5  ;;  %v3150_v45 = vld [vmem:[%s7029_s8 + $0x218] sm:$0xff]  ;;  %v3100_v63 = vld [vmem:[%s7029_s8 + $0x88] sm:$0xff] }
 0x52a   :  { %v2327_v8 = vadd.f32 %v2312_v18, %v2280_v4  ;;  %v2313_v57 = vmul.f32 %v3144_v30, %v6239_v10  ;;  %v2360_v27 = vmul.f32 %v3159_v1, %v6241_v34  ;;  %v2500_v52 = vmul.f32 %v3203_v11, %v6302_v55  ;;  %v2125_v4 = vld [vmem:[%s7029_s8 + $0x10] sm:$0xff]  ;;  %v3204_v30 = vld [vmem:[%s7029_s8 + $0x3c8] sm:$0xff] }
 0x52b   :  { %v2333_v56 = vadd.f32 %v2318_v6, %v2286_v32  ;;  %v2547_v47 = vmul.f32 %v3218_v25, %v6304_v15  ;;  %v2594_v59 = vmul.f32 %v3233_v26, %v6306_v62  ;;  %v2281_v28 = vadd.f32 %v2266_v58, %v2234_v43  ;;  %v3165_v11 = vld [vmem:[%s7029_s8 + $0x290] sm:$0xff]  ;;  %v3115_v25 = vld [vmem:[%s7029_s8 + $0x100] sm:$0xff] }
 0x52c   :  { %v2374_v37 = vadd.f32 %v2359_v54, %v2327_v8  ;;  %v2146_v13 = vmul.f32 %v6217_v29, %v2130_v36  ;;  %v2178_v17 = vmul.f32 %v3105_v23, %v6219_v53  ;;  %v2641_v21 = vmul.f32 %v3248_v61, %v6326_v24  ;;  %v3219_v58 = vld [vmem:[%s7029_s8 + $0x440] sm:$0xff]  ;;  %v3180_v23 = vld [vmem:[%s7029_s8 + $0x308] sm:$0xff]  ;;  %v3130_v61 = vld [vmem:[%s7029_s8 + $0x178] sm:$0xff] }
 0x52d   :  { %v2380_v16 = vadd.f32 %v2365_v35, %v2333_v56  ;;  %v2506_v42 = vmul.f32 %v3209_v60, %v6302_v55  ;;  %v2553_v18 = vmul.f32 %v3224_v51, %v6304_v15  ;;  %v2328_v33 = vadd.f32 %v2313_v57, %v2281_v28 }
 0x52e   :  { %v2421_v22 = vadd.f32 %v2406_v20, %v2374_v37  ;;  %v3189_v20 = vld [vmem:[%s7029_s8 + $0x350] sm:$0xff]  ;;  %v2193_v38 = vadd.f32 %v2178_v17, %v2146_v13  ;;  %v2225_v2 = vmul.f32 %v3120_v7, %v6221_v31  ;;  %v2600_v49 = vmul.f32 %v3239_v41, %v6306_v62  ;;  %v3195_v7 = vld [vmem:[%s7029_s8 + $0x380] sm:$0xff] }
 0x52f   :  { %v2427_v54 = vadd.f32 %v2412_v3, %v2380_v16  ;;  %v2375_v6 = vadd.f32 %v2360_v27, %v2328_v33  ;;  %v2407_v50 = vmul.f32 %v3174_v39, %v6243_v46  ;;  %v2272_v8 = vmul.f32 %v3135_v14, %v6232_v5  ;;  %v2131_v14 = vld [vmem:[%s7029_s8 + $0x40] sm:$0xff] }
 0x530   :  { %v2468_v0 = vadd.f32 %v2453_v48, %v2421_v22  ;;  %v2647_v48 = vmul.f32 %v3254_v9, %v6326_v24  ;;  %v2240_v1 = vadd.f32 %v2225_v2, %v2193_v38  ;;  %v2454_v32 = vmul.f32 %v3189_v20, %v6245_v12  ;;  %v3210_v38 = vld [vmem:[%s7029_s8 + $0x3f8] sm:$0xff]  ;;  %v3160_v2 = vld [vmem:[%s7029_s8 + $0x268] sm:$0xff] }
 0x531   :  { %v2474_v19 = vadd.f32 %v2459_v44, %v2427_v54  ;;  %v2422_v26 = vadd.f32 %v2407_v50, %v2375_v6  ;;  %v2319_v35 = vmul.f32 %v3150_v45, %v6239_v10  ;;  %v2141_v3 = vmul.f32 %v6217_v29, %v2125_v4  ;;  %v3240_v6 = vld [vmem:[%s7029_s8 + $0x4e8] sm:$0xff] }
 0x532   :  { %v2515_v40 = vadd.f32 %v2500_v52, %v2468_v0  ;;  %v2287_v36 = vadd.f32 %v2272_v8, %v2240_v1  ;;  %v2173_v37 = vmul.f32 %v3100_v63, %v6219_v53  ;;  %v2501_v60 = vmul.f32 %v3204_v30, %v6302_v55  ;;  %v3106_v0 = vld [vmem:[%s7029_s8 + $0xb8] sm:$0xff]  ;;  %v3175_v1 = vld [vmem:[%s7029_s8 + $0x2e0] sm:$0xff] }
 0x533   :  { %v2521_v43 = vadd.f32 %v2506_v42, %v2474_v19  ;;  %v2469_v56 = vadd.f32 %v2454_v32, %v2422_v26  ;;  %v2366_v51 = vmul.f32 %v3165_v11, %v6241_v34  ;;  %v2220_v57 = vmul.f32 %v3115_v25, %v6221_v31  ;;  %v3249_v42 = vld [vmem:[%s7029_s8 + $0x530] sm:$0xff] }
 0x534   :  { %v2562_v44 = vadd.f32 %v2547_v47, %v2515_v40  ;;  %v3234_v47 = vld [vmem:[%s7029_s8 + $0x4b8] sm:$0xff]  ;;  %v2334_v28 = vadd.f32 %v2319_v35, %v2287_v36  ;;  %v2188_v22 = vadd.f32 %v2173_v37, %v2141_v3  ;;  %v2548_v41 = vmul.f32 %v3219_v58, %v6304_v15  ;;  %v3121_v40 = vld [vmem:[%s7029_s8 + $0x130] sm:$0xff] }
 0x535   :  { %v2568_v52 = vadd.f32 %v2553_v18, %v2521_v43  ;;  %v2516_v16 = vadd.f32 %v2501_v60, %v2469_v56  ;;  %v2413_v9 = vmul.f32 %v3180_v23, %v6243_v46  ;;  %v2267_v39 = vmul.f32 %v3130_v61, %v6232_v5  ;;  %v3190_v3 = vld [vmem:[%s7029_s8 + $0x358] sm:$0xff]  ;;  %v3101_v61 = vld [vmem:[%s7029_s8 + $0x90] sm:$0xff] }
 0x536   :  { %v2609_v27 = vadd.f32 %v2594_v59, %v2562_v44  ;;  %v3145_v59 = vld [vmem:[%s7029_s8 + $0x1f0] sm:$0xff]  ;;  %v2381_v18 = vadd.f32 %v2366_v51, %v2334_v28  ;;  %v2235_v33 = vadd.f32 %v2220_v57, %v2188_v22  ;;  %v2595_v20 = vmul.f32 %v3234_v47, %v6306_v62  ;;  %v3136_v44 = vld [vmem:[%s7029_s8 + $0x1a8] sm:$0xff]  ;;  %v2126_v37 = vld [vmem:[%s7029_s8 + $0x18] sm:$0xff] }
 0x537   :  { %v2615_v17 = vadd.f32 %v2600_v49, %v2568_v52  ;;  %v2563_v54 = vadd.f32 %v2548_v41, %v2516_v16  ;;  %v3225_v49 = vld [vmem:[%s7029_s8 + $0x470] sm:$0xff]  ;;  %v2314_v63 = vmul.f32 %v3145_v59, %v6239_v10  ;;  %v2642_v30 = vmul.f32 %v3249_v42, %v6326_v24  ;;  %v3220_v52 = vld [vmem:[%s7029_s8 + $0x448] sm:$0xff]  ;;  %v3151_v47 = vld [vmem:[%s7029_s8 + $0x220] sm:$0xff] }
 0x538   :  { %v2656_v13 = vadd.f32 %v2641_v21, %v2609_v27  ;;  %v2460_v21 = vmul.f32 %v3195_v7, %v6245_v12  ;;  %v2428_v4 = vadd.f32 %v2413_v9, %v2381_v18  ;;  %v2282_v50 = vadd.f32 %v2267_v39, %v2235_v33  ;;  %v3205_v27 = vld [vmem:[%s7029_s8 + $0x3d0] sm:$0xff]  ;;  %v3116_v41 = vld [vmem:[%s7029_s8 + $0x108] sm:$0xff]  ;;  %v3235_v59 = vld [vmem:[%s7029_s8 + $0x4c0] sm:$0xff] }
 0x539   :  { %v2662_v45 = vadd.f32 %v2647_v48, %v2615_v17  ;;  %v2610_v19 = vadd.f32 %v2595_v20, %v2563_v54  ;;  %v3255_v48 = vld [vmem:[%s7029_s8 + $0x560] sm:$0xff]  ;;  %v2147_v8 = vmul.f32 %v6217_v29, %v2131_v14  ;;  %v2179_v11 = vmul.f32 %v3106_v0, %v6219_v53  ;;  %v3166_v17 = vld [vmem:[%s7029_s8 + $0x298] sm:$0xff] }
 0x53a   :  { %3263 = vmatmul.msk.f32.vlgmr.msra.gmra.mxu0 %vm2765_vm1, %v2656_v13  ;;  %v2475_v25 = vadd.f32 %v2460_v21, %v2428_v4  ;;  %v2507_v26 = vmul.f32 %v3210_v38, %v6302_v55  ;;  %v2329_v32 = vadd.f32 %v2314_v63, %v2282_v50  ;;  %v2361_v35 = vmul.f32 %v3160_v2, %v6241_v34  ;;  %v3250_v13 = vld [vmem:[%s7029_s8 + $0x538] sm:$0xff]  ;;  %v3131_v20 = vld [vmem:[%s7029_s8 + $0x180] sm:$0xff]  ;;  %v3181_v2 = vld [vmem:[%s7029_s8 + $0x310] sm:$0xff] }
 0x53b   :  { %3269 = vmatmul.msk.f32.vlgmr.msra.gmra.mxu3 %vm2765_vm1, %v2662_v45  ;;  %v2554_v43 = vmul.f32 %v3225_v49, %v6304_v15  ;;  %v2601_v58 = vmul.f32 %v3240_v6, %v6306_v62  ;;  %v2194_v36 = vadd.f32 %v2179_v11, %v2147_v8  ;;  %v2226_v23 = vmul.f32 %v3121_v40, %v6221_v31  ;;  %v3196_v45 = vld [vmem:[%s7029_s8 + $0x388] sm:$0xff]  ;;  %v3211_v11 = vld [vmem:[%s7029_s8 + $0x400] sm:$0xff] }
 0x53c   :  { %v2522_v56 = vadd.f32 %v2507_v26, %v2475_v25  ;;  %v2648_v60 = vmul.f32 %v3255_v48, %v6326_v24  ;;  %v2376_v51 = vadd.f32 %v2361_v35, %v2329_v32  ;;  %v2408_v57 = vmul.f32 %v3175_v1, %v6243_v46  ;;  %v2132_v6 = vld [vmem:[%s7029_s8 + $0x48] sm:$0xff]  ;;  %v3107_v48 = vld [vmem:[%s7029_s8 + $0xc0] sm:$0xff]  ;;  %v3226_v25 = vld [vmem:[%s7029_s8 + $0x478] sm:$0xff] }
 0x53d   :  { %v2657_v28 = vadd.f32 %v2642_v30, %v2610_v19  ;;  %v2455_v7 = vmul.f32 %v3190_v3, %v6245_v12  ;;  %v2241_v22 = vadd.f32 %v2226_v23, %v2194_v36  ;;  %v2273_v16 = vmul.f32 %v3136_v44, %v6232_v5  ;;  %v3146_v30 = vld [vmem:[%s7029_s8 + $0x1f8] sm:$0xff]  ;;  %v3161_v35 = vld [vmem:[%s7029_s8 + $0x270] sm:$0xff] }
 0x53e   :  { %v2569_v9 = vadd.f32 %v2554_v43, %v2522_v56  ;;  %v2423_v39 = vadd.f32 %v2408_v57, %v2376_v51  ;;  %v2142_v42 = vmul.f32 %v6217_v29, %v2126_v37  ;;  %v2174_v18 = vmul.f32 %v3101_v61, %v6219_v53  ;;  %v3122_v36 = vld [vmem:[%s7029_s8 + $0x138] sm:$0xff]  ;;  %v3241_v37 = vld [vmem:[%s7029_s8 + $0x4f0] sm:$0xff]  ;;  %v3256_v61 = vld [vmem:[%s7029_s8 + $0x568] sm:$0xff] }
 0x53f   :  { %v2502_v33 = vmul.f32 %v3205_v27, %v6302_v55  ;;  %v2549_v14 = vmul.f32 %v3220_v52, %v6304_v15  ;;  %v2288_v0 = vadd.f32 %v2273_v16, %v2241_v22  ;;  %v2320_v54 = vmul.f32 %v3151_v47, %v6239_v10  ;;  %v3176_v51 = vld [vmem:[%s7029_s8 + $0x2e8] sm:$0xff] }
 0x540   :  { %v2616_v21 = vadd.f32 %v2601_v58, %v2569_v9  ;;  %v2470_v38 = vadd.f32 %v2455_v7, %v2423_v39  ;;  %v2189_v4 = vadd.f32 %v2174_v18, %v2142_v42  ;;  %v2221_v49 = vmul.f32 %v3116_v41, %v6221_v31  ;;  %v3137_v7 = vld [vmem:[%s7029_s8 + $0x1b0] sm:$0xff]  ;;  %v3191_v41 = vld [vmem:[%s7029_s8 + $0x360] sm:$0xff] }
 0x541   :  { %v2596_v50 = vmul.f32 %v3235_v59, %v6306_v62  ;;  %v2643_v63 = vmul.f32 %v3250_v13, %v6326_v24  ;;  %v2335_v40 = vadd.f32 %v2320_v54, %v2288_v0  ;;  %v2367_v19 = vmul.f32 %v3166_v17, %v6241_v34  ;;  %v2127_v59 = vld [vmem:[%s7029_s8 + $0x20] sm:$0xff]  ;;  %v3102_v13 = vld [vmem:[%s7029_s8 + $0x98] sm:$0xff]  ;;  %v3152_v0 = vld [vmem:[%s7029_s8 + $0x228] sm:$0xff] }
 0x542   :  { %3264 = vmatmul.msk.f32.gmra.mxu0 %vm2765_vm1, %v2657_v28  ;;  %v2663_v1 = vadd.f32 %v2648_v60, %v2616_v21  ;;  %v2517_v8 = vadd.f32 %v2502_v33, %v2470_v38  ;;  %v2236_v26 = vadd.f32 %v2221_v49, %v2189_v4  ;;  %v2268_v32 = vmul.f32 %v3131_v20, %v6232_v5  ;;  %v3221_v21 = vld [vmem:[%s7029_s8 + $0x450] sm:$0xff] }
 0x543   :  { %v2382_v3 = vadd.f32 %v2367_v19, %v2335_v40  ;;  %v2414_v44 = vmul.f32 %v3181_v2, %v6243_v46  ;;  %v2461_v43 = vmul.f32 %v3196_v45, %v6245_v12  ;;  %v2148_v58 = vmul.f32 %v6217_v29, %v2132_v6  ;;  %v3117_v45 = vld [vmem:[%s7029_s8 + $0x110] sm:$0xff]  ;;  %v3236_v6 = vld [vmem:[%s7029_s8 + $0x4c8] sm:$0xff] }
 0x544   :  { %3270 = vmatmul.msk.f32.gmra.mxu3 %vm2765_vm1, %v2663_v1  ;;  %v2564_v23 = vadd.f32 %v2549_v14, %v2517_v8  ;;  %v2283_v56 = vadd.f32 %v2268_v32, %v2236_v26  ;;  %v2315_v60 = vmul.f32 %v3146_v30, %v6239_v10  ;;  %v2180_v57 = vmul.f32 %v3107_v48, %v6219_v53  ;;  %v3206_v14 = vld [vmem:[%s7029_s8 + $0x3d8] sm:$0xff]  ;;  %v3251_v48 = vld [vmem:[%s7029_s8 + $0x540] sm:$0xff] }
 0x545   :  { %v2429_v27 = vadd.f32 %v2414_v44, %v2382_v3  ;;  %v2508_v52 = vmul.f32 %v3211_v11, %v6302_v55  ;;  %v2555_v47 = vmul.f32 %v3226_v25, %v6304_v15  ;;  %v2362_v28 = vmul.f32 %v3161_v35, %v6241_v34  ;;  %v3132_v11 = vld [vmem:[%s7029_s8 + $0x188] sm:$0xff]  ;;  %v3182_v32 = vld [vmem:[%s7029_s8 + $0x318] sm:$0xff]  ;;  %v3147_v44 = vld [vmem:[%s7029_s8 + $0x200] sm:$0xff] }
 0x546   :  { %v2611_v22 = vadd.f32 %v2596_v50, %v2564_v23  ;;  %v2330_v16 = vadd.f32 %v2315_v60, %v2283_v56  ;;  %v2195_v9 = vadd.f32 %v2180_v57, %v2148_v58  ;;  %v2227_v39 = vmul.f32 %v3122_v36, %v6221_v31  ;;  %v3167_v50 = vld [vmem:[%s7029_s8 + $0x2a0] sm:$0xff]  ;;  %v3212_v57 = vld [vmem:[%s7029_s8 + $0x408] sm:$0xff] }
 0x547   :  { %v2476_v17 = vadd.f32 %v2461_v43, %v2429_v27  ;;  %v2602_v42 = vmul.f32 %v3241_v37, %v6306_v62  ;;  %v2649_v18 = vmul.f32 %v3256_v61, %v6326_v24  ;;  %v2409_v33 = vmul.f32 %v3176_v51, %v6243_v46  ;;  %v2133_v37 = vld [vmem:[%s7029_s8 + $0x50] sm:$0xff]  ;;  %v3108_v61 = vld [vmem:[%s7029_s8 + $0xc8] sm:$0xff] }
 0x548   :  { %v2658_v54 = vadd.f32 %v2643_v63, %v2611_v22  ;;  %v2377_v20 = vadd.f32 %v2362_v28, %v2330_v16  ;;  %v2242_v38 = vadd.f32 %v2227_v39, %v2195_v9  ;;  %v2274_v2 = vmul.f32 %v3137_v7, %v6232_v5  ;;  %v3197_v51 = vld [vmem:[%s7029_s8 + $0x390] sm:$0xff]  ;;  %v3162_v16 = vld [vmem:[%s7029_s8 + $0x278] sm:$0xff]  ;;  %v3227_v39 = vld [vmem:[%s7029_s8 + $0x480] sm:$0xff] }
 0x549   :  { %v2523_v4 = vadd.f32 %v2508_v52, %v2476_v17  ;;  %v2456_v49 = vmul.f32 %v3191_v41, %v6245_v12  ;;  %v2143_v63 = vmul.f32 %v6217_v29, %v2127_v59  ;;  %v2175_v40 = vmul.f32 %v3102_v13, %v6219_v53  ;;  %v3123_v41 = vld [vmem:[%s7029_s8 + $0x140] sm:$0xff]  ;;  %v3242_v59 = vld [vmem:[%s7029_s8 + $0x4f8] sm:$0xff] }
 0x54a   :  { %3265 = vmatmul.msk.f32.gmra.mxu0 %vm2765_vm1, %v2658_v54  ;;  %v2424_v19 = vadd.f32 %v2409_v33, %v2377_v20  ;;  %v2503_v30 = vmul.f32 %v3206_v14, %v6302_v55  ;;  %v2289_v1 = vadd.f32 %v2274_v2, %v2242_v38  ;;  %v2321_v8 = vmul.f32 %v3152_v0, %v6239_v10  ;;  %v3138_v20 = vld [vmem:[%s7029_s8 + $0x1b8] sm:$0xff]  ;;  %v3192_v2 = vld [vmem:[%s7029_s8 + $0x368] sm:$0xff] }
 0x54b   :  { %v2570_v25 = vadd.f32 %v2555_v47, %v2523_v4  ;;  %v2550_v26 = vmul.f32 %v3221_v21, %v6304_v15  ;;  %v2190_v35 = vadd.f32 %v2175_v40, %v2143_v63  ;;  %v2222_v3 = vmul.f32 %v3117_v45, %v6221_v31 }
 0x54c   :  { %v2471_v43 = vadd.f32 %v2456_v49, %v2424_v19  ;;  %v2597_v58 = vmul.f32 %v3236_v6, %v6306_v62  ;;  %v2336_v36 = vadd.f32 %v2321_v8, %v2289_v1  ;;  %v2368_v23 = vmul.f32 %v3167_v50, %v6241_v34  ;;  %v3153_v49 = vld [vmem:[%s7029_s8 + $0x230] sm:$0xff]  ;;  %v2128_v19 = vld [vmem:[%s7029_s8 + $0x28] sm:$0xff] }
 0x54d   :  { %v2617_v56 = vadd.f32 %v2602_v42, %v2570_v25  ;;  %v2644_v60 = vmul.f32 %v3251_v48, %v6326_v24  ;;  %v2237_v27 = vadd.f32 %v2222_v3, %v2190_v35  ;;  %v2269_v52 = vmul.f32 %v3132_v11, %v6232_v5  ;;  %v3257_v48 = vld [vmem:[%s7029_s8 + $0x570] sm:$0xff]  ;;  %v3207_v11 = vld [vmem:[%s7029_s8 + $0x3e0] sm:$0xff] }
 0x54e   :  { %v2518_v47 = vadd.f32 %v2503_v30, %v2471_v43  ;;  %v2383_v28 = vadd.f32 %v2368_v23, %v2336_v36  ;;  %v2415_v7 = vmul.f32 %v3182_v32, %v6243_v46  ;;  %v2316_v22 = vmul.f32 %v3147_v44, %v6239_v10  ;;  %v3103_v30 = vld [vmem:[%s7029_s8 + $0xa0] sm:$0xff]  ;;  %v3168_v32 = vld [vmem:[%s7029_s8 + $0x2a8] sm:$0xff]  ;;  %v3222_v23 = vld [vmem:[%s7029_s8 + $0x458] sm:$0xff] }
 0x54f   :  { %v2664_v9 = vadd.f32 %v2649_v18, %v2617_v56  ;;  %v2284_v13 = vadd.f32 %v2269_v52, %v2237_v27  ;;  %v2149_v17 = vmul.f32 %v6217_v29, %v2133_v37  ;;  %v2181_v42 = vmul.f32 %v3108_v61, %v6219_v53  ;;  %v3177_v18 = vld [vmem:[%s7029_s8 + $0x2f0] sm:$0xff]  ;;  %v3183_v56 = vld [vmem:[%s7029_s8 + $0x320] sm:$0xff] }
 0x550   :  { %v2565_v33 = vadd.f32 %v2550_v26, %v2518_v47  ;;  %v2430_v14 = vadd.f32 %v2415_v7, %v2383_v28  ;;  %v2462_v0 = vmul.f32 %v3197_v51, %v6245_v12  ;;  %v2509_v54 = vmul.f32 %v3212_v57, %v6302_v55  ;;  %v3237_v37 = vld [vmem:[%s7029_s8 + $0x4d0] sm:$0xff] }
 0x551   :  { %3271 = vmatmul.msk.f32.gmra.mxu3 %vm2765_vm1, %v2664_v9  ;;  %v2331_v21 = vadd.f32 %v2316_v22, %v2284_v13  ;;  %v2363_v38 = vmul.f32 %v3162_v16, %v6241_v34  ;;  %v2196_v45 = vadd.f32 %v2181_v42, %v2149_v17  ;;  %v2228_v4 = vmul.f32 %v3123_v41, %v6221_v31  ;;  %v3133_v28 = vld [vmem:[%s7029_s8 + $0x190] sm:$0xff]  ;;  %v3198_v16 = vld [vmem:[%s7029_s8 + $0x398] sm:$0xff] }
 0x552   :  { %v2612_v6 = vadd.f32 %v2597_v58, %v2565_v33  ;;  %v2477_v50 = vadd.f32 %v2462_v0, %v2430_v14  ;;  %v2556_v63 = vmul.f32 %v3227_v39, %v6304_v15  ;;  %v2603_v40 = vmul.f32 %v3242_v59, %v6306_v62  ;;  %v3118_v58 = vld [vmem:[%s7029_s8 + $0x118] sm:$0xff]  ;;  %v3148_v39 = vld [vmem:[%s7029_s8 + $0x208] sm:$0xff]  ;;  %v3109_v0 = vld [vmem:[%s7029_s8 + $0xd0] sm:$0xff] }
 0x553   :  { %v2378_v1 = vadd.f32 %v2363_v38, %v2331_v21  ;;  %v2410_v8 = vmul.f32 %v3177_v18, %v6243_v46  ;;  %v2243_v25 = vadd.f32 %v2228_v4, %v2196_v45  ;;  %v2275_v26 = vmul.f32 %v3138_v20, %v6232_v5  ;;  %v2134_v59 = vld [vmem:[%s7029_s8 + $0x58] sm:$0xff]  ;;  %v3252_v33 = vld [vmem:[%s7029_s8 + $0x548] sm:$0xff]  ;;  %v3213_v20 = vld [vmem:[%s7029_s8 + $0x410] sm:$0xff] }
 0x554   :  { %v2659_v35 = vadd.f32 %v2644_v60, %v2612_v6  ;;  %v2524_v3 = vadd.f32 %v2509_v54, %v2477_v50  ;;  %v2457_v44 = vmul.f32 %v3192_v2, %v6245_v12  ;;  %v2322_v43 = vmul.f32 %v3153_v49, %v6239_v10  ;;  %v3163_v2 = vld [vmem:[%s7029_s8 + $0x280] sm:$0xff]  ;;  %v3124_v45 = vld [vmem:[%s7029_s8 + $0x148] sm:$0xff] }
 0x555   :  { %v2425_v36 = vadd.f32 %v2410_v8, %v2378_v1  ;;  %v2290_v61 = vadd.f32 %v2275_v26, %v2243_v25  ;;  %v2144_v60 = vmul.f32 %v6217_v29, %v2128_v19  ;;  %v2176_v51 = vmul.f32 %v3103_v30, %v6219_v53  ;;  %v3228_v19 = vld [vmem:[%s7029_s8 + $0x488] sm:$0xff]  ;;  %v3139_v8 = vld [vmem:[%s7029_s8 + $0x1c0] sm:$0xff] }
 0x556   :  { %3266 = vmatmul.msk.f32.gmra.mxu0 %vm2765_vm1, %v2659_v35  ;;  %v2571_v57 = vadd.f32 %v2556_v63, %v2524_v3  ;;  %v2650_v27 = vmul.f32 %v3257_v48, %v6326_v24  ;;  %v2504_v52 = vmul.f32 %v3207_v11, %v6302_v55  ;;  %v2369_v47 = vmul.f32 %v3168_v32, %v6241_v34  ;;  %v3178_v48 = vld [vmem:[%s7029_s8 + $0x2f8] sm:$0xff]  ;;  %v3193_v32 = vld [vmem:[%s7029_s8 + $0x370] sm:$0xff] }
 0x557   :  { %v2472_v7 = vadd.f32 %v2457_v44, %v2425_v36  ;;  %v2337_v22 = vadd.f32 %v2322_v43, %v2290_v61  ;;  %v2191_v41 = vadd.f32 %v2176_v51, %v2144_v60  ;;  %v2223_v9 = vmul.f32 %v3118_v58, %v6221_v31  ;;  %v3243_v43 = vld [vmem:[%s7029_s8 + $0x500] sm:$0xff]  ;;  %v3154_v51 = vld [vmem:[%s7029_s8 + $0x238] sm:$0xff] }
 0x558   :  { %v2618_v13 = vadd.f32 %v2603_v40, %v2571_v57  ;;  %v2551_v17 = vmul.f32 %v3222_v23, %v6304_v15  ;;  %v2598_v42 = vmul.f32 %v3237_v37, %v6306_v62  ;;  %v2416_v14 = vmul.f32 %v3183_v56, %v6243_v46  ;;  %v2135_v23 = vld [vmem:[%s7029_s8 + $0x60] sm:$0xff]  ;;  %v3110_v37 = vld [vmem:[%s7029_s8 + $0xd8] sm:$0xff] }
 0x559   :  { %v2519_v54 = vadd.f32 %v2504_v52, %v2472_v7  ;;  %v2384_v18 = vadd.f32 %v2369_v47, %v2337_v22  ;;  %v2238_v21 = vadd.f32 %v2223_v9, %v2191_v41  ;;  %v2270_v38 = vmul.f32 %v3133_v28, %v6232_v5  ;;  %v3258_v52 = vld [vmem:[%s7029_s8 + $0x578] sm:$0xff]  ;;  %v3208_v28 = vld [vmem:[%s7029_s8 + $0x3e8] sm:$0xff]  ;;  %v3125_v22 = vld [vmem:[%s7029_s8 + $0x150] sm:$0xff] }
 0x55a   :  { %v2665_v4 = vadd.f32 %v2650_v27, %v2618_v13  ;;  %v2463_v49 = vmul.f32 %v3198_v16, %v6245_v12  ;;  %v2317_v6 = vmul.f32 %v3148_v39, %v6239_v10  ;;  %v2150_v50 = vmul.f32 %v6217_v29, %v2134_v59  ;;  %v3169_v9 = vld [vmem:[%s7029_s8 + $0x2b0] sm:$0xff] }
 0x55b   :  { %v2566_v63 = vadd.f32 %v2551_v17, %v2519_v54  ;;  %v2431_v40 = vadd.f32 %v2416_v14, %v2384_v18  ;;  %v2285_v30 = vadd.f32 %v2270_v38, %v2238_v21  ;;  %v2182_v1 = vmul.f32 %v3109_v0, %v6219_v53  ;;  %v3140_v54 = vld [vmem:[%s7029_s8 + $0x1c8] sm:$0xff] }
 0x55c   :  { %3272 = vmatmul.msk.f32.gmra.mxu3 %vm2765_vm1, %v2665_v4  ;;  %v2645_v11 = vmul.f32 %v3252_v33, %v6326_v24  ;;  %v2510_v25 = vmul.f32 %v3213_v20, %v6302_v55  ;;  %v2364_v26 = vmul.f32 %v3163_v2, %v6241_v34  ;;  %v2229_v35 = vmul.f32 %v3124_v45, %v6221_v31  ;;  %v3238_v33 = vld [vmem:[%s7029_s8 + $0x4d8] sm:$0xff]  ;;  %v3184_v21 = vld [vmem:[%s7029_s8 + $0x328] sm:$0xff] }
 0x55d   :  { %v2613_v3 = vadd.f32 %v2598_v42, %v2566_v63  ;;  %v2478_v44 = vadd.f32 %v2463_v49, %v2431_v40  ;;  %v2332_v58 = vadd.f32 %v2317_v6, %v2285_v30  ;;  %v2197_v36 = vadd.f32 %v2182_v1, %v2150_v50  ;;  %v3223_v42 = vld [vmem:[%s7029_s8 + $0x460] sm:$0xff]  ;;  %v2136_v63 = vld [vmem:[%s7029_s8 + $0x68] sm:$0xff] }
 0x55e   :  { %v2557_v61 = vmul.f32 %v3228_v19, %v6304_v15  ;;  %v2411_v56 = vmul.f32 %v3178_v48, %v6243_v46  ;;  %v2276_v60 = vmul.f32 %v3139_v8, %v6232_v5  ;;  %v2604_v16 = vmul.f32 %v3243_v43, %v6306_v62  ;;  %v3155_v50 = vld [vmem:[%s7029_s8 + $0x240] sm:$0xff]  ;;  %v3253_v48 = vld [vmem:[%s7029_s8 + $0x550] sm:$0xff]  ;;  %v3214_v43 = vld [vmem:[%s7029_s8 + $0x418] sm:$0xff] }
 0x55f   :  { %v2660_v57 = vadd.f32 %v2645_v11, %v2613_v3  ;;  %v2525_v27 = vadd.f32 %v2510_v25, %v2478_v44  ;;  %v2379_v47 = vadd.f32 %v2364_v26, %v2332_v58  ;;  %v2244_v7 = vadd.f32 %v2229_v35, %v2197_v36  ;;  %v3111_v40 = vld [vmem:[%s7029_s8 + $0xe0] sm:$0xff]  ;;  %v3170_v3 = vld [vmem:[%s7029_s8 + $0x2b8] sm:$0xff]  ;;  %v3229_v58 = vld [vmem:[%s7029_s8 + $0x490] sm:$0xff] }
 0x560   :  { %v2458_v41 = vmul.f32 %v3193_v32, %v6245_v12  ;;  %v2151_v39 = vmul.f32 %v6217_v29, %v2135_v23  ;;  %v2183_v59 = vmul.f32 %v3110_v37, %v6219_v53  ;;  %v2323_v0 = vmul.f32 %v3154_v51, %v6239_v10  ;;  %v3199_v1 = vld [vmem:[%s7029_s8 + $0x3a0] sm:$0xff]  ;;  %v3126_v44 = vld [vmem:[%s7029_s8 + $0x158] sm:$0xff] }
 0x561   :  { %3267 = vmatmul.msk.f32.gmra.mxu0 %vm2765_vm1, %v2660_v57  ;;  %v2572_v13 = vadd.f32 %v2557_v61, %v2525_v27  ;;  %v2426_v17 = vadd.f32 %v2411_v56, %v2379_v47  ;;  %v2291_v14 = vadd.f32 %v2276_v60, %v2244_v7  ;;  %v2651_v18 = vmul.f32 %v3258_v52, %v6326_v24  ;;  %v3185_v27 = vld [vmem:[%s7029_s8 + $0x330] sm:$0xff]  ;;  %v3200_v7 = vld [vmem:[%s7029_s8 + $0x3a8] sm:$0xff] }
 0x562   :  { %v2505_v20 = vmul.f32 %v3208_v28, %v6302_v55  ;;  %v2198_v38 = vadd.f32 %v2183_v59, %v2151_v39  ;;  %v2230_v2 = vmul.f32 %v3125_v22, %v6221_v31  ;;  %v2370_v6 = vmul.f32 %v3169_v9, %v6241_v34  ;;  %v3141_v52 = vld [vmem:[%s7029_s8 + $0x1d0] sm:$0xff] }
 0x563   :  { %v2619_v45 = vadd.f32 %v2604_v16, %v2572_v13  ;;  %v2473_v4 = vadd.f32 %v2458_v41, %v2426_v17  ;;  %v2338_v49 = vadd.f32 %v2323_v0, %v2291_v14  ;;  %v2552_v19 = vmul.f32 %v3223_v42, %v6304_v15  ;;  %v3156_v41 = vld [vmem:[%s7029_s8 + $0x248] sm:$0xff]  ;;  %v2137_v17 = vld [vmem:[%s7029_s8 + $0x70] sm:$0xff] }
 0x564   :  { %v2599_v30 = vmul.f32 %v3238_v33, %v6306_v62  ;;  %v2245_v8 = vadd.f32 %v2230_v2, %v2198_v38  ;;  %v2277_v11 = vmul.f32 %v3140_v54, %v6232_v5  ;;  %v2417_v35 = vmul.f32 %v3184_v21, %v6243_v46  ;;  %v3112_v42 = vld [vmem:[%s7029_s8 + $0xe8] sm:$0xff]  ;;  %v3215_v54 = vld [vmem:[%s7029_s8 + $0x420] sm:$0xff] }
 0x565   :  { %v2666_v25 = vadd.f32 %v2651_v18, %v2619_v45  ;;  %v2520_v26 = vadd.f32 %v2505_v20, %v2473_v4  ;;  %v2385_v32 = vadd.f32 %v2370_v6, %v2338_v49  ;;  %v2324_v23 = vmul.f32 %v3155_v50, %v6239_v10  ;;  %v3244_v33 = vld [vmem:[%s7029_s8 + $0x508] sm:$0xff]  ;;  %v3171_v21 = vld [vmem:[%s7029_s8 + $0x2c0] sm:$0xff] }
 0x566   :  { %v2292_v36 = vadd.f32 %v2277_v11, %v2245_v8  ;;  %v2152_v37 = vmul.f32 %v6217_v29, %v2136_v63  ;;  %v2184_v61 = vmul.f32 %v3111_v40, %v6219_v53  ;;  %v2646_v60 = vmul.f32 %v3253_v48, %v6326_v24  ;;  %v3127_v49 = vld [vmem:[%s7029_s8 + $0x160] sm:$0xff]  ;;  %v3230_v63 = vld [vmem:[%s7029_s8 + $0x498] sm:$0xff] }
 0x567   :  { %3273 = vmatmul.msk.f32.gmra.mxu3 %vm2765_vm1, %v2666_v25  ;;  %v2567_v56 = vadd.f32 %v2552_v19, %v2520_v26  ;;  %v2432_v51 = vadd.f32 %v2417_v35, %v2385_v32  ;;  %v2464_v57 = vmul.f32 %v3199_v1, %v6245_v12  ;;  %v2371_v28 = vmul.f32 %v3170_v3, %v6241_v34  ;;  %v3259_v6 = vld [vmem:[%s7029_s8 + $0x580] sm:$0xff]  ;;  %v3186_v19 = vld [vmem:[%s7029_s8 + $0x338] sm:$0xff] }
 0x568   :  { %v2339_v47 = vadd.f32 %v2324_v23, %v2292_v36  ;;  %v2199_v22 = vadd.f32 %v2184_v61, %v2152_v37  ;;  %v2231_v16 = vmul.f32 %v3126_v44, %v6221_v31  ;;  %v2511_v59 = vmul.f32 %v3214_v43, %v6302_v55  ;;  %v3142_v26 = vld [vmem:[%s7029_s8 + $0x1d8] sm:$0xff]  ;;  %v3157_v23 = vld [vmem:[%s7029_s8 + $0x250] sm:$0xff] }
 0x569   :  { %v2614_v9 = vadd.f32 %v2599_v30, %v2567_v56  ;;  %v2479_v39 = vadd.f32 %v2464_v57, %v2432_v51  ;;  %v2558_v13 = vmul.f32 %v3229_v58, %v6304_v15  ;;  %v2418_v0 = vmul.f32 %v3185_v27, %v6243_v46  ;;  %v3245_v61 = vld [vmem:[%s7029_s8 + $0x510] sm:$0xff]  ;;  %v3216_v27 = vld [vmem:[%s7029_s8 + $0x428] sm:$0xff] }
 0x56a   :  { %v2386_v14 = vadd.f32 %v2371_v28, %v2339_v47  ;;  %v2246_v18 = vadd.f32 %v2231_v16, %v2199_v22  ;;  %v2278_v20 = vmul.f32 %v3141_v52, %v6232_v5  ;;  %v2465_v45 = vmul.f32 %v3200_v7, %v6245_v12  ;;  %v3172_v52 = vld [vmem:[%s7029_s8 + $0x2c8] sm:$0xff]  ;;  %v3187_v16 = vld [vmem:[%s7029_s8 + $0x340] sm:$0xff] }
 0x56b   :  { %v2661_v38 = vadd.f32 %v2646_v60, %v2614_v9  ;;  %v2526_v2 = vadd.f32 %v2511_v59, %v2479_v39  ;;  %v2325_v4 = vmul.f32 %v3156_v41, %v6239_v10  ;;  %v2153_v30 = vmul.f32 %v6217_v29, %v2137_v17  ;;  %v3201_v29 = vld [vmem:[%s7029_s8 + $0x3b0] sm:$0xff]  ;;  %v3260_v41 = vld [vmem:[%s7029_s8 + $0x588] sm:$0xff]  ;;  %v3231_v59 = vld [vmem:[%s7029_s8 + $0x4a0] sm:$0xff] }
 0x56c   :  { %v2433_v50 = vadd.f32 %v2418_v0, %v2386_v14  ;;  %v2293_v40 = vadd.f32 %v2278_v20, %v2246_v18  ;;  %v2185_v48 = vmul.f32 %v3112_v42, %v6219_v53  ;;  %v2605_v8 = vmul.f32 %v3244_v33, %v6306_v62  ;;  %v3202_v42 = vld [vmem:[%s7029_s8 + $0x3b8] sm:$0xff] }
 0x56d   :  { %3268 = vmatmul.msk.f32.gmra.mxu0 %vm2765_vm1, %v2661_v38  ;;  %v2573_v1 = vadd.f32 %v2558_v13, %v2526_v2  ;;  %v2512_v11 = vmul.f32 %v3215_v54, %v6302_v55  ;;  %v2372_v25 = vmul.f32 %v3171_v21, %v6241_v34  ;;  %v2232_v3 = vmul.f32 %v3127_v49, %v6221_v31  ;;  %v3246_v20 = vld [vmem:[%s7029_s8 + $0x518] sm:$0xff]  ;;  %v3217_v38 = vld [vmem:[%s7029_s8 + $0x430] sm:$0xff] }
 0x56e   :  { %v2480_v32 = vadd.f32 %v2465_v45, %v2433_v50  ;;  %v2340_v35 = vadd.f32 %v2325_v4, %v2293_v40  ;;  %v2200_v53 = vadd.f32 %v2185_v48, %v2153_v30  ;;  %v2652_v43 = vmul.f32 %v3259_v6, %v6326_v24  ;;  %v3261_v6 = vld [vmem:[%s7029_s8 + $0x590] sm:$0xff]  ;;  %v3247_v30 = vld [vmem:[%s7029_s8 + $0x520] sm:$0xff] }
 0x56f   :  { %v2620_v44 = vadd.f32 %v2605_v8, %v2573_v1  ;;  %v2559_v58 = vmul.f32 %v3230_v63, %v6304_v15  ;;  %v2419_v36 = vmul.f32 %v3186_v19, %v6243_v46  ;;  %v2279_v31 = vmul.f32 %v3142_v26, %v6232_v5  ;;  %v3262_v8 = vld [vmem:[%s7029_s8 + $0x598] sm:$0xff] }
 0x570   :  { %v2527_v37 = vadd.f32 %v2512_v11, %v2480_v32  ;;  %v2387_v56 = vadd.f32 %v2372_v25, %v2340_v35  ;;  %v2247_v60 = vadd.f32 %v2232_v3, %v2200_v53  ;;  %v2466_v57 = vmul.f32 %v3201_v29, %v6245_v12 }
 0x571   :  { %v2667_v51 = vadd.f32 %v2652_v43, %v2620_v44  ;;  %v2326_v22 = vmul.f32 %v3157_v23, %v6239_v10  ;;  %v2606_v5 = vmul.f32 %v3245_v61, %v6306_v62  ;;  %v2513_v39 = vmul.f32 %v3216_v27, %v6302_v55 }
 0x572   :  { %v2574_v47 = vadd.f32 %v2559_v58, %v2527_v37  ;;  %v2434_v28 = vadd.f32 %v2419_v36, %v2387_v56  ;;  %v2294_v7 = vadd.f32 %v2279_v31, %v2247_v60  ;;  %v2373_v13 = vmul.f32 %v3172_v52, %v6241_v34  ;;  %v2758_v58 = vpop.permute.xlu1 %2757  ;;  %v2753_v37 = vpop.permute.xlu2 %2752 }
 0x573   :  { %3274 = vmatmul.msk.f32.gmra.mxu3 %vm2765_vm1, %v2667_v51  ;;  %v2420_v0 = vmul.f32 %v3187_v16, %v6243_v46  ;;  %v2653_v54 = vmul.f32 %v3260_v41, %v6326_v24  ;;  %v2560_v18 = vmul.f32 %v3231_v59, %v6304_v15  ;;  %v2467_v34 = vmul.f32 %v3202_v42, %v6245_v12  ;;  %v3232_v12 = vld [vmem:[%s7029_s8 + $0x4a8] sm:$0xff] }
 0x574   :  { %v2481_v9 = vadd.f32 %v2466_v57, %v2434_v28  ;;  %v2341_v10 = vadd.f32 %v2326_v22, %v2294_v7  ;;  %v2621_v17 = vadd.f32 %v2606_v5, %v2574_v47  ;;  %v2607_v46 = vmul.f32 %v3246_v20, %v6306_v62 }
 0x575   :  { %v2514_v49 = vmul.f32 %v3217_v38, %v6302_v55  ;;  %v2654_v40 = vmul.f32 %v3261_v6, %v6326_v24  ;;  %v2561_v19 = vmul.f32 %v3232_v12, %v6304_v15  ;;  %v2608_v1 = vmul.f32 %v3247_v30, %v6306_v62  ;;  %v2763_v62 = vpop.permute.xlu0 %2762 }
 0x576   :  { %v2528_v33 = vadd.f32 %v2513_v39, %v2481_v9  ;;  %v2388_v14 = vadd.f32 %v2373_v13, %v2341_v10  ;;  %v2668_v2 = vadd.f32 %v2653_v54, %v2621_v17  ;;  %v2655_v25 = vmul.f32 %v3262_v8, %v6326_v24  ;;  %v2888_v8 = vld [vmem:[%s7030_s11] sm:$0xff] }
 0x578   :  { %v2435_v21 = vadd.f32 %v2420_v0, %v2388_v14  ;;  %v2575_v45 = vadd.f32 %v2560_v18, %v2528_v33 }
 0x57a   :  { %v2482_v4 = vadd.f32 %v2467_v34, %v2435_v21  ;;  %v2622_v50 = vadd.f32 %v2607_v46, %v2575_v45  ;;  %v2743_v24 = vpop.permute.xlu1 %2742  ;;  %v2738_v31 = vpop.permute.xlu2 %2737 }
 0x57b   :  { %3275 = vmatmul.msk.f32.gmra.mxu3 %vm2765_vm1, %v2668_v2 }
 0x57c   :  { %v2529_v63 = vadd.f32 %v2514_v49, %v2482_v4  ;;  %v2669_v48 = vadd.f32 %v2654_v40, %v2622_v50 }
 0x57d   :  { %v2748_v61 = vpop.permute.xlu0 %2747 }
 0x57e   :  { %v2576_v55 = vadd.f32 %v2561_v19, %v2529_v63 }
 0x580   :  { %v2623_v11 = vadd.f32 %v2608_v1, %v2576_v55 }
 0x582   :  { %v2670_v26 = vadd.f32 %v2655_v25, %v2623_v11  ;;  %v2728_v7 = vpop.permute.xlu1 %2727  ;;  %v2723_v41 = vpop.permute.xlu2 %2722  ;;  %v2889_v11 = vld [vmem:[%s7030_s11 + $0x8] sm:$0xff]  ;;  %v2890_v25 = vld [vmem:[%s7030_s11 + $0x10] sm:$0xff] }
 0x583   :  { %3276 = vmatmul.msk.f32.gmra.mxu3 %vm2765_vm1, %v2669_v48 }
 0x585   :  { %v2733_v52 = vpop.permute.xlu0 %2732 }
 0x58a   :  { %v2713_v0 = vpop.permute.xlu1 %2712  ;;  %v2708_v21 = vpop.permute.xlu2 %2707 }
 0x58b   :  { %3277 = vmatmul.msk.f32.gmra.mxu3 %vm2765_vm1, %v2670_v26  ;;  %v2891_v26 = vld [vmem:[%s7030_s11 + $0x18] sm:$0xff] }
 0x58d   :  { %v2718_v42 = vpop.permute.xlu0 %2717 }
 0x592   :  { %v2698_v50 = vpop.permute.xlu1 %2697  ;;  %v2693_v19 = vpop.permute.xlu2 %2692 }
 0x595   :  { %v2703_v49 = vpop.permute.xlu0 %2702 }
 0x5b7   :  { %v6970_v53 = vpop.f32.mrf.mxu0 }
 0x5b8   :  { %v2829_v30 = vadd.f32 %v6970_v53, %v2693_v19 }
 0x5ba   :  { %v2873_v1 = vmax.f32 %v2829_v30, 0.0 }
 0x5be   :  { %v2846_v15 = vpop.f32.mrf.mxu3 }
 0x5bf   :  { %v2831_v44 = vpop.f32.mrf.mxu0  ;;  %v2847_v18 = vadd.f32 %v2846_v15, %v2723_v41  ;;  %v2892_v15 = vld [vmem:[%s7030_s11 + $0x20] sm:$0xff] }
 0x5c0   :  { %v2832_v63 = vadd.f32 %v2831_v44, %v2698_v50 }
 0x5c1   :  { %v2879_v2 = vmax.f32 %v2847_v18, 0.0 }
 0x5c2   :  { %v2874_v55 = vmax.f32 %v2832_v63, 0.0 }
 0x5c7   :  { %v2849_v32 = vpop.f32.mrf.mxu3  ;;  %v2834_v36 = vpop.f32.mrf.mxu0 }
 0x5c8   :  { %v2850_v33 = vadd.f32 %v2849_v32, %v2728_v7  ;;  %v2835_v6 = vadd.f32 %v2834_v36, %v2703_v49  ;;  %v2893_v32 = vld [vmem:[%s7030_s11 + $0x28] sm:$0xff]  ;;  %v2942_v36 = vpop.permute.xlu0 %2941 }
 0x5ca   :  { %v2880_v34 = vmax.f32 %v2850_v33, 0.0  ;;  %v2875_v48 = vmax.f32 %v2835_v6, 0.0  ;;  %v3018_v33 = vld [vmem:[%s7031_s13] sm:$0xff] }
 0x5d3   :  { %v2837_v60 = vpop.f32.mrf.mxu0 }
 0x5d4   :  { %v2852_v35 = vpop.f32.mrf.mxu3  ;;  %v2838_v4 = vadd.f32 %v2837_v60, %v2708_v21 }
 0x5d5   :  { %v2853_v13 = vadd.f32 %v2852_v35, %v2733_v52  ;;  %v2894_v35 = vld [vmem:[%s7030_s11 + $0x30] sm:$0xff] }
 0x5d6   :  { %v2876_v40 = vmax.f32 %v2838_v4, 0.0 }
 0x5d7   :  { %v2881_v20 = vmax.f32 %v2853_v13, 0.0 }
 0x5de   :  { %v2840_v22 = vpop.f32.mrf.mxu0 }
 0x5df   :  { %v2855_v29 = vpop.f32.mrf.mxu3  ;;  %v2841_v45 = vadd.f32 %v2840_v22, %v2713_v0 }
 0x5e0   :  { %v2856_v59 = vadd.f32 %v2855_v29, %v2738_v31  ;;  %v2895_v29 = vld [vmem:[%s7030_s11 + $0x38] sm:$0xf] }
 0x5e1   :  { %v2877_v12 = vmax.f32 %v2841_v45, 0.0 }
 0x5e2   :  { %v2882_v14 = vmax.f32 %v2856_v59, 0.0 }
 0x5ea   :  { %v2858_v3 = vpop.f32.mrf.mxu3  ;;  %v2843_v54 = vpop.f32.mrf.mxu0 }
 0x5eb   :  { %v2859_v9 = vadd.f32 %v2858_v3, %v2743_v24  ;;  %v2844_v38 = vadd.f32 %v2843_v54, %v2718_v42 }
 0x5ed   :  { %v2883_v17 = vmax.f32 %v2859_v9, 0.0  ;;  %v2878_v46 = vmax.f32 %v2844_v38, 0.0 }
 0x5f6   :  { %v2861_v43 = vpop.f32.mrf.mxu3 }
 0x5f7   :  { %v2862_v5 = vadd.f32 %v2861_v43, %v2748_v61  ;;  %v2932_v61 = vpop.permute.xlu2 %2931 }
 0x5f9   :  { %v2884_v10 = vmax.f32 %v2862_v5, 0.0 }
 0x5fe   :  { %v2864_v23 = vpop.f32.mrf.mxu3 }
 0x5ff   :  { %v2865_v47 = vadd.f32 %v2864_v23, %v2753_v37  ;;  %v2937_v23 = vpop.permute.xlu1 %2936  ;;  %v2917_v22 = vpop.permute.xlu2 %2916 }
 0x601   :  { %v2885_v39 = vmax.f32 %v2865_v47, 0.0 }
 0x606   :  { %v2867_v56 = vpop.f32.mrf.mxu3 }
 0x607   :  { %v2868_v57 = vadd.f32 %v2867_v56, %v2758_v58  ;;  %v2927_v56 = vpop.permute.xlu0 %2926  ;;  %v3025_v0 = vpop.permute.xlu2 %3024 }
 0x609   :  { %v2886_v16 = vmax.f32 %v2868_v57, 0.0 }
 0x60e   :  { %v2870_v51 = vpop.f32.mrf.mxu3 }
 0x60f   :  { %v2871_v27 = vadd.f32 %v2870_v51, %v2763_v62  ;;  %v2922_v51 = vpop.permute.xlu1 %2921  ;;  %v2912_v41 = vpop.permute.xlu0 %2911 }
 0x611   :  { %v2887_v28 = vmax.f32 %v2871_v27, 0.0 }
 0x613   :  { %2970 = vmatpush.msrb.mxu2 %v2887_v28 }
 0x615   :  { %2971 = vmatpush.msrb.mxu2 %v2886_v16 }
 0x617   :  { %2972 = vmatpush.msrb.mxu2 %v2885_v39  ;;  %v2907_v59 = vpop.permute.xlu1 %2906 }
 0x619   :  { %2973 = vmatpush.msrb.mxu2 %v2884_v10 }
 0x61b   :  { %2974 = vmatpush.msrb.mxu2 %v2883_v17 }
 0x61d   :  { %2975 = vmatpush.msrb.mxu2 %v2882_v14  ;;  %v3019_v14 = vld [vmem:[%s7031_s13 + $0x8] sm:$0x3] }
 0x61f   :  { %2976 = vmatpush.msrb.mxu2 %v2881_v20  ;;  %v3030_v20 = vpop.permute.xlu0 %3029 }
 0x621   :  { %2977 = vmatpush.msrb.mxu2 %v2880_v34 }
 0x623   :  { %2978 = vmatpush.msrb.mxu2 %v2879_v2 }
 0x625   :  { %2979 = vmatpush.msrb.mxu2 %v2878_v46 }
 0x627   :  { %2980 = vmatpush.msrb.mxu2 %v2877_v12 }
 0x629   :  { %2981 = vmatpush.msrb.mxu2 %v2876_v40 }
 0x62b   :  { %2982 = vmatpush.msrb.mxu2 %v2875_v48 }
 0x62d   :  { %2983 = vmatpush.msrb.mxu2 %v2874_v55 }
 0x62f   :  { %2984 = vmatpush.msrb.mxu2 %v2873_v1 }
 0x630   :  { %3278 = vmatmul.msk.f32.vlgmr.msrb.gmra.mxu2 %vm2944_vm13, %v2888_v8 }
 0x638   :  { %3279 = vmatmul.msk.f32.gmra.mxu2 %vm2944_vm13, %v2889_v11 }
 0x640   :  { %3280 = vmatmul.msk.f32.gmra.mxu2 %vm2944_vm13, %v2890_v25 }
 0x648   :  { %3281 = vmatmul.msk.f32.gmra.mxu2 %vm2944_vm13, %v2891_v26 }
 0x650   :  { %3282 = vmatmul.msk.f32.gmra.mxu2 %vm2944_vm13, %v2892_v15 }
 0x658   :  { %3283 = vmatmul.msk.f32.gmra.mxu2 %vm2944_vm13, %v2893_v32 }
 0x660   :  { %3284 = vmatmul.msk.f32.gmra.mxu2 %vm2944_vm13, %v2894_v35 }
 0x668   :  { %3285 = vmatmul.msk.f32.gmra.mxu2 %vm2944_vm13, %v2895_v29 }
 0x6b3   :  { %v2986_v53 = vpop.f32.mrf.mxu2 }
 0x6b4   :  { %v2987_v10 = vadd.f32 %v2986_v53, %v2907_v59 }
 0x6b6   :  { %v3010_v42 = vmax.f32 %v2987_v10, 0.0 }
 0x6bb   :  { %v2989_v3 = vpop.f32.mrf.mxu2 }
 0x6bc   :  { %v2990_v9 = vadd.f32 %v2989_v3, %v2912_v41 }
 0x6be   :  { %v3011_v17 = vmax.f32 %v2990_v9, 0.0 }
 0x6c3   :  { %v2992_v44 = vpop.f32.mrf.mxu2 }
 0x6c4   :  { %v2993_v5 = vadd.f32 %v2992_v44, %v2917_v22 }
 0x6c6   :  { %v3012_v13 = vmax.f32 %v2993_v5, 0.0 }
 0x6cb   :  { %v2995_v43 = vpop.f32.mrf.mxu2 }
 0x6cc   :  { %v2996_v28 = vadd.f32 %v2995_v43, %v2922_v51 }
 0x6ce   :  { %v3013_v39 = vmax.f32 %v2996_v28, 0.0 }
 0x6d3   :  { %v2998_v62 = vpop.f32.mrf.mxu2 }
 0x6d4   :  { %v2999_v52 = vadd.f32 %v2998_v62, %v2927_v56 }
 0x6d6   :  { %v3014_v16 = vmax.f32 %v2999_v52, 0.0 }
 0x6db   :  { %v3001_v58 = vpop.f32.mrf.mxu2 }
 0x6dc   :  { %v3002_v57 = vadd.f32 %v3001_v58, %v2932_v61 }
 0x6de   :  { %v3015_v7 = vmax.f32 %v3002_v57, 0.0 }
 0x6e3   :  { %v3004_v37 = vpop.f32.mrf.mxu2 }
 0x6e4   :  { %v3005_v60 = vadd.f32 %v3004_v37, %v2937_v23 }
 0x6e6   :  { %v3016_v47 = vmax.f32 %v3005_v60, 0.0 }
 0x6eb   :  { %v3007_v24 = vpop.f32.mrf.mxu2 }
 0x6ec   :  { %v3008_v31 = vadd.f32 %v3007_v24, %v2942_v36 }
 0x6ee   :  { %v3017_v27 = vmax.f32 %v3008_v31, 0.0 }
 0x6f0   :  { %3286 = vmatpush.msk.msrb.mxu1 %vm3039_vm3, %v3017_v27 }
 0x6f2   :  { %3052 = vmatpush.msrb.mxu1 %v3016_v47 }
 0x6f4   :  { %3053 = vmatpush.msrb.mxu1 %v3015_v7 }
 0x6f6   :  { %3054 = vmatpush.msrb.mxu1 %v3014_v16 }
 0x6f8   :  { %3055 = vmatpush.msrb.mxu1 %v3013_v39 }
 0x6fa   :  { %3056 = vmatpush.msrb.mxu1 %v3012_v13 }
 0x6fc   :  { %3057 = vmatpush.msrb.mxu1 %v3011_v17 }
 0x6fe   :  { %3058 = vmatpush.msrb.mxu1 %v3010_v42 }
 0x6ff   :  { %3287 = vmatmul.msk.f32.vlgmr.msrb.gmra.mxu1 %vm3032_vm4, %v3018_v33 }
 0x707   :  { %3288 = vmatmul.msk.f32.gmra.mxu1 %vm3032_vm4, %v3019_v14 }
 0x77c   :  { %v3060_v54 = vpop.f32.mrf.mxu1 }
 0x77d   :  { %v3061_v18 = vadd.f32 %v3060_v54, %v3025_v0 }
 0x77f   :  { %3067 = vst.msk [vmem:[%s7032_s15] sm:$0xff] %vm3066_vm5, %v3061_v18 }
 0x784   :  { %v3063_v21 = vpop.f32.mrf.mxu1 }
 0x785   :  { %v3064_v34 = vadd.f32 %v3063_v21, %v3030_v20 }
 0x787   :  { %3069 = vst.msk [vmem:[%s7032_s15 + $0x8] sm:$0x3] %vm3068_vm6, %v3064_v34 }

</bundles_post_ra>
